<compile_context>
chip_gen: v5e
topology: v5e:2x2
jax: 0.10.0
libtpu: 0.0.40
codegen_flags: <defaults>
</compile_context>

<pallas_src>
import math
from functools import partial

import jax
import jax.numpy as jnp
from jax.experimental import pallas as pl
from jax.experimental.pallas import tpu as pltpu

LANE = 128       # TPU lane width; every kernel operand's last dim is a multiple of this.
HEAD_HID = 256   # hidden width of each classifier head (matches nn.Linear(H, 256))


def _round_up(n, m):
    return ((n + m - 1) // m) * m


# ----------------------------- kernel helpers -------------------------------

def _masked_layernorm(x, gamma, beta, lane_mask, h_true, eps):
    """LayerNorm over the first h_true lanes of a zero-padded [M, Hp] slab."""
    mean = jnp.sum(x, axis=-1, keepdims=True) / h_true
    cent = (x - mean) * lane_mask
    var = jnp.sum(cent * cent, axis=-1, keepdims=True) / h_true
    # gamma/beta are zero in padded lanes, so padded outputs stay exactly zero.
    return cent * jax.lax.rsqrt(var + eps) * gamma + beta


# ------------------------------ fused kernel --------------------------------

def _fused_forward_kernel(ids_ref,                               # SMEM [M] int32 (scalar prefetch)
                          mbias_ref,                             # [B, Sp] additive key-mask bias
                          wemb_ref, pemb_ref, temb_ref,          # embeddings (padded to Hp lanes)
                          elng_ref, elnb_ref,                    # embedding LayerNorm
                          wqkv_ref, bqkv_ref, wo_ref, bo_ref,    # per-layer stacked [L, ...]
                          ln1g_ref, ln1b_ref,
                          wi_ref, bi_ref, wfo_ref, bfo_ref,
                          ln2g_ref, ln2b_ref,
                          wp_ref, bp_ref,                        # pooler
                          w1_ref, b1_ref, w2_ref, b2_ref,        # fused sentiment+aspect heads
                          o_ref,                                 # [B, 128] output slab
                          *, B, S, NH, Dh, H, L, eps):
    Hp = wemb_ref.shape[-1]
    M = B * S
    scale = 1.0 / math.sqrt(Dh)

    lane = jax.lax.broadcasted_iota(jnp.int32, (1, Hp), 1)
    mask = (lane < H).astype(jnp.float32)

    # ---- embedding gather + sum + LayerNorm (ids come from SMEM) ----
    # token_type_ids assumed all-zero (default BERT usage).
    t0 = temb_ref[0:1, :]
    rows = []
    for r in range(M):                              # M = 16, unrolled
        tok = ids_ref[r]
        p = r % S
        rows.append(wemb_ref[pl.ds(tok, 1), :] + pemb_ref[p:p + 1, :] + t0)
    x = jnp.concatenate(rows, axis=0)               # [M, Hp], padded lanes zero
    x = _masked_layernorm(x, elng_ref[...], elnb_ref[...], mask, H, eps)

    # ---- encoder layers (L = 2, fully unrolled) ----
    for l in range(L):
        # fused packed QKV projection: [M,Hp] x [Hp,Qp]; cols 0..H-1 = Q,
        # H..2H-1 = K, 2H..3H-1 = V, rest zero.
        qkv = jnp.dot(x, wqkv_ref[l], preferred_element_type=jnp.float32) + bqkv_ref[l]

        # multi-head attention, context kept in vregs (no VMEM scratch)
        ctx_rows = []
        for b in range(B):
            bias_row = mbias_ref[b:b + 1, :][:, :S]          # [1, S]
            r0 = b * S
            pieces = []
            for h in range(NH):
                c = h * Dh
                q_h = qkv[r0:r0 + S, c:c + Dh]
                k_h = qkv[r0:r0 + S, H + c:H + c + Dh]
                v_h = qkv[r0:r0 + S, 2 * H + c:2 * H + c + Dh]
                # q @ k^T without materializing a transpose
                s = jax.lax.dot_general(
                    q_h, k_h, (((1,), (1,)), ((), ())),
                    preferred_element_type=jnp.float32) * scale
                s = s + bias_row
                s = s - jnp.max(s, axis=-1, keepdims=True)
                p_ = jnp.exp(s)
                p_ = p_ * pl.reciprocal(jnp.sum(p_, axis=-1, keepdims=True),
                                        approx=False)        # exact divide
                pieces.append(jnp.dot(p_, v_h, preferred_element_type=jnp.float32))
            pieces.append(jnp.zeros((S, Hp - NH * Dh), jnp.float32))  # padded lanes
            ctx_rows.append(jnp.concatenate(pieces, axis=1))  # [S, Hp]
        ctx = jnp.concatenate(ctx_rows, axis=0)               # [M, Hp]

        # output projection + residual + LayerNorm
        attn = jnp.dot(ctx, wo_ref[l], preferred_element_type=jnp.float32) + bo_ref[l]
        h1 = _masked_layernorm(x + attn, ln1g_ref[l], ln1b_ref[l], mask, H, eps)

        # FFN (GELU) + residual + LayerNorm
        inter = jnp.dot(h1, wi_ref[l], preferred_element_type=jnp.float32) + bi_ref[l]
        # TODO(synk): tanh-approx GELU (HF BERT uses erf-GELU); ~1e-3 drift vs torch.
        inter = 0.5 * inter * (1.0 + jnp.tanh(
            0.7978845608028654 * (inter + 0.044715 * inter * inter * inter)))
        ffn = jnp.dot(inter, wfo_ref[l], preferred_element_type=jnp.float32) + bfo_ref[l]
        x = _masked_layernorm(h1 + ffn, ln2g_ref[l], ln2b_ref[l], mask, H, eps)

    # ---- pooler + fused sentiment/aspect heads ----
    cls = jnp.concatenate([x[b * S:b * S + 1, :] for b in range(B)], axis=0)  # [B, Hp]
    pooled = jnp.tanh(jnp.dot(cls, wp_ref[...],
                              preferred_element_type=jnp.float32) + bp_ref[...])
    # TODO(synk): Dropout(0.1) in both heads omitted (eval-mode identity).
    hid = jnp.maximum(jnp.dot(pooled, w1_ref[...],
                              preferred_element_type=jnp.float32) + b1_ref[...], 0.0)
    out = jnp.tanh(jnp.dot(hid, w2_ref[...],
                           preferred_element_type=jnp.float32) + b2_ref[...])
    o_ref[...] = out.astype(o_ref.dtype)              # col0 = sentiment, cols 1..NA = aspects


# ----------------------------- pallas wrapper --------------------------------

def _vspec(shape):
    nd = len(shape)
    # index_map receives (grid idx, *scalar-prefetch refs); always block (0,...).
    return pl.BlockSpec(shape, lambda *args: (0,) * nd)


def nuclear_bert_forward(packed, input_ids, attention_mask, cfg):
    B, S = input_ids.shape
    H, NH, NA, L = cfg["hidden"], cfg["heads"], cfg["num_aspects"], cfg["layers"]
    Dh = H // NH
    Hp = packed["word_emb"].shape[-1]
    Qp = packed["wqkv"].shape[-1]
    Ip = packed["wi"].shape[-1]
    V = packed["word_emb"].shape[0]
    P = packed["pos_emb"].shape[0]
    M = B * S
    Sp = _round_up(S, LANE)

    ids = input_ids.reshape(M).astype(jnp.int32)
    # HF-style additive key-mask bias, zero-padded lane-dense to [B, Sp].
    mbias = jnp.pad((1.0 - attention_mask.astype(jnp.float32)) * -1e9,
                    ((0, 0), (0, Sp - S)))

    kernel = partial(_fused_forward_kernel, B=B, S=S, NH=NH, Dh=Dh, H=H, L=L,
                     eps=1e-12)

    out = pl.pallas_call(
        kernel,
        out_shape=jax.ShapeDtypeStruct((B, LANE), jnp.float32),
        grid_spec=pltpu.PrefetchScalarGridSpec(
            num_scalar_prefetch=1,
            grid=(1,),
            in_specs=[
                _vspec((B, Sp)),
                _vspec((V, Hp)), _vspec((P, Hp)), _vspec((2, Hp)),
                _vspec((1, Hp)), _vspec((1, Hp)),
                _vspec((L, Hp, Qp)), _vspec((L, 1, Qp)),
                _vspec((L, Hp, Hp)), _vspec((L, 1, Hp)),
                _vspec((L, 1, Hp)), _vspec((L, 1, Hp)),
                _vspec((L, Hp, Ip)), _vspec((L, 1, Ip)),
                _vspec((L, Ip, Hp)), _vspec((L, 1, Hp)),
                _vspec((L, 1, Hp)), _vspec((L, 1, Hp)),
                _vspec((Hp, Hp)), _vspec((1, Hp)),
                _vspec((Hp, 2 * HEAD_HID)), _vspec((1, 2 * HEAD_HID)),
                _vspec((2 * HEAD_HID, LANE)), _vspec((1, LANE)),
            ],
            out_specs=_vspec((B, LANE)),
        ),
        compiler_params=pltpu.CompilerParams(dimension_semantics=("arbitrary",)),
    )(ids, mbias,
      packed["word_emb"], packed["pos_emb"], packed["type_emb"],
      packed["emb_ln_g"], packed["emb_ln_b"],
      packed["wqkv"], packed["bqkv"], packed["wo"], packed["bo"],
      packed["ln1_g"], packed["ln1_b"],
      packed["wi"], packed["bi"], packed["wfo"], packed["bfo"],
      packed["ln2_g"], packed["ln2_b"],
      packed["pool_w"], packed["pool_b"],
      packed["head_w1"], packed["head_b1"],
      packed["head_w2"], packed["head_b2"])

    sentiment = out[:, 0:1]            # [B, 1]
    aspects = out[:, 1:1 + NA]         # [B, NA]
    return sentiment, aspects


# ------------------------------ parameters -----------------------------------

def _w(key, shape, scale=0.02):
    return (scale * jax.random.normal(key, shape)).astype(jnp.float32)


def init_params(key, cfg):
    """Logical (unpadded) parameters, same shapes/semantics as the torch reference."""
    H, I, V, P = cfg["hidden"], cfg["intermediate"], cfg["vocab"], cfg["max_pos"]
    NA = cfg["num_aspects"]
    keys = iter(jax.random.split(key, 64))
    params = {
        "word_emb": _w(next(keys), (V, H)),
        "pos_emb": _w(next(keys), (P, H)),
        "type_emb": _w(next(keys), (2, H)),
        "emb_ln_g": jnp.ones((H,), jnp.float32),
        "emb_ln_b": jnp.zeros((H,), jnp.float32),
        "pool_w": _w(next(keys), (H, H)),
        "pool_b": jnp.zeros((H,), jnp.float32),
        "sent_w1": _w(next(keys), (H, HEAD_HID)),
        "sent_b1": jnp.zeros((HEAD_HID,), jnp.float32),
        "sent_w2": _w(next(keys), (HEAD_HID, 1)),
        "sent_b2": jnp.zeros((1,), jnp.float32),
        "asp_w1": _w(next(keys), (H, HEAD_HID)),
        "asp_b1": jnp.zeros((HEAD_HID,), jnp.float32),
        "asp_w2": _w(next(keys), (HEAD_HID, NA)),
        "asp_b2": jnp.zeros((NA,), jnp.float32),
        "layers": [],
    }
    for _ in range(cfg["layers"]):
        lp = {
            "q_w": _w(next(keys), (H, H)), "q_b": jnp.zeros((H,), jnp.float32),
            "k_w": _w(next(keys), (H, H)), "k_b": jnp.zeros((H,), jnp.float32),
            "v_w": _w(next(keys), (H, H)), "v_b": jnp.zeros((H,), jnp.float32),
            "o_w": _w(next(keys), (H, H)), "o_b": jnp.zeros((H,), jnp.float32),
            "ln1_g": jnp.ones((H,), jnp.float32), "ln1_b": jnp.zeros((H,), jnp.float32),
            "i_w": _w(next(keys), (H, I)), "i_b": jnp.zeros((I,), jnp.float32),
            "fo_w": _w(next(keys), (I, H)), "fo_b": jnp.zeros((H,), jnp.float32),
            "ln2_g": jnp.ones((H,), jnp.float32), "ln2_b": jnp.zeros((H,), jnp.float32),
        }
        params["layers"].append(lp)
    return params


def pack_params(params, cfg):
    """Zero-pad / pack / stack once so every kernel operand is lane-dense."""
    H, I_, NA, L = cfg["hidden"], cfg["intermediate"], cfg["num_aspects"], cfg["layers"]
    Hp = _round_up(H, LANE)
    Ip = _round_up(I_, LANE)
    Qp = _round_up(3 * H, LANE)      # packed QKV lanes (Q|K|V each H lanes)

    def pad_mat(w, rows, cols):
        return jnp.pad(w, ((0, rows - w.shape[0]), (0, cols - w.shape[1])))

    def pad_vec(v, cols):
        return jnp.pad(v, (0, cols - v.shape[0])).reshape(1, cols)

    packed = {
        "word_emb": pad_mat(params["word_emb"], params["word_emb"].shape[0], Hp),
        "pos_emb": pad_mat(params["pos_emb"], params["pos_emb"].shape[0], Hp),
        "type_emb": pad_mat(params["type_emb"], params["type_emb"].shape[0], Hp),
        "emb_ln_g": pad_vec(params["emb_ln_g"], Hp),   # padded gamma/beta are ZERO
        "emb_ln_b": pad_vec(params["emb_ln_b"], Hp),
        "pool_w": pad_mat(params["pool_w"], Hp, Hp),
        "pool_b": pad_vec(params["pool_b"], Hp),
    }

    # Fused classifier heads: shared [Hp, 512] hidden, [512, 128] lane-dense output.
    w1 = jnp.zeros((Hp, 2 * HEAD_HID), jnp.float32)
    w1 = w1.at[:H, :HEAD_HID].set(params["sent_w1"])
    w1 = w1.at[:H, HEAD_HID:].set(params["asp_w1"])
    b1 = jnp.concatenate([params["sent_b1"], params["asp_b1"]]).reshape(1, 2 * HEAD_HID)
    w2 = jnp.zeros((2 * HEAD_HID, LANE), jnp.float32)
    w2 = w2.at[:HEAD_HID, 0].set(params["sent_w2"][:, 0])
    w2 = w2.at[HEAD_HID:, 1:1 + NA].set(params["asp_w2"])
    b2 = jnp.zeros((1, LANE), jnp.float32)
    b2 = b2.at[0, 0].set(params["sent_b2"][0])
    b2 = b2.at[0, 1:1 + NA].set(params["asp_b2"])
    packed.update(head_w1=w1, head_b1=b1, head_w2=w2, head_b2=b2)

    # Per-layer weights, packed QKV, stacked along a leading L axis.
    def qkv_w(lp):
        w = jnp.zeros((Hp, Qp), jnp.float32)
        w = w.at[:H, 0:H].set(lp["q_w"])
        w = w.at[:H, H:2 * H].set(lp["k_w"])
        w = w.at[:H, 2 * H:3 * H].set(lp["v_w"])
        return w

    def qkv_b(lp):
        b = jnp.zeros((1, Qp), jnp.float32)
        b = b.at[0, 0:H].set(lp["q_b"])
        b = b.at[0, H:2 * H].set(lp["k_b"])
        b = b.at[0, 2 * H:3 * H].set(lp["v_b"])
        return b

    def stack(fn):
        return jnp.stack([fn(lp) for lp in params["layers"]], axis=0)

    packed.update(
        wqkv=stack(qkv_w), bqkv=stack(qkv_b),
        wo=stack(lambda lp: pad_mat(lp["o_w"], Hp, Hp)),
        bo=stack(lambda lp: pad_vec(lp["o_b"], Hp)),
        ln1_g=stack(lambda lp: pad_vec(lp["ln1_g"], Hp)),
        ln1_b=stack(lambda lp: pad_vec(lp["ln1_b"], Hp)),
        wi=stack(lambda lp: pad_mat(lp["i_w"], Hp, Ip)),
        bi=stack(lambda lp: pad_vec(lp["i_b"], Ip)),
        wfo=stack(lambda lp: pad_mat(lp["fo_w"], Ip, Hp)),
        bfo=stack(lambda lp: pad_vec(lp["fo_b"], Hp)),
        ln2_g=stack(lambda lp: pad_vec(lp["ln2_g"], Hp)),
        ln2_b=stack(lambda lp: pad_vec(lp["ln2_b"], Hp)),
    )
    return packed


# --------------------------------- main ---------------------------------------

if __name__ == "__main__":
    cfg = dict(vocab=128, hidden=32, layers=2, heads=2, intermediate=64,
               max_pos=32, num_aspects=6)
    B, S = 2, 8

    root = jax.random.PRNGKey(0)
    k_params, k_ids = jax.random.split(root)

    params = init_params(k_params, cfg)
    packed = pack_params(params, cfg)

    input_ids = jax.random.randint(k_ids, (B, S), 0, cfg["vocab"], dtype=jnp.int32)
    attention_mask = jnp.ones((B, S), jnp.int32).at[1, -2:].set(0)  # pad last 2 tokens of row 1

    fwd = jax.jit(lambda p, ids, m: nuclear_bert_forward(p, ids, m, cfg))
    sentiment, aspects = fwd(packed, input_ids, attention_mask)
    jax.block_until_ready((sentiment, aspects))

    assert sentiment.shape == (B, 1)
    assert aspects.shape == (B, cfg["num_aspects"])
    assert jnp.all(jnp.isfinite(sentiment)) and jnp.all(jnp.isfinite(aspects))
    print("KERNEL_OK")
</pallas_src>

<mosaic_0001>
module attributes {stable_mosaic.version = 11 : i64} {
  func.func @_fused_forward_kernel(%arg0: i32, %arg1: memref<16xi32, #tpu.memory_space<smem>>, %arg2: memref<2x128xf32, #tpu.memory_space<vmem>>, %arg3: memref<128x128xf32, #tpu.memory_space<vmem>>, %arg4: memref<32x128xf32, #tpu.memory_space<vmem>>, %arg5: memref<2x128xf32, #tpu.memory_space<vmem>>, %arg6: memref<1x128xf32, #tpu.memory_space<vmem>>, %arg7: memref<1x128xf32, #tpu.memory_space<vmem>>, %arg8: memref<2x128x128xf32, #tpu.memory_space<vmem>>, %arg9: memref<2x1x128xf32, #tpu.memory_space<vmem>>, %arg10: memref<2x128x128xf32, #tpu.memory_space<vmem>>, %arg11: memref<2x1x128xf32, #tpu.memory_space<vmem>>, %arg12: memref<2x1x128xf32, #tpu.memory_space<vmem>>, %arg13: memref<2x1x128xf32, #tpu.memory_space<vmem>>, %arg14: memref<2x128x128xf32, #tpu.memory_space<vmem>>, %arg15: memref<2x1x128xf32, #tpu.memory_space<vmem>>, %arg16: memref<2x128x128xf32, #tpu.memory_space<vmem>>, %arg17: memref<2x1x128xf32, #tpu.memory_space<vmem>>, %arg18: memref<2x1x128xf32, #tpu.memory_space<vmem>>, %arg19: memref<2x1x128xf32, #tpu.memory_space<vmem>>, %arg20: memref<128x128xf32, #tpu.memory_space<vmem>>, %arg21: memref<1x128xf32, #tpu.memory_space<vmem>>, %arg22: memref<128x512xf32, #tpu.memory_space<vmem>>, %arg23: memref<1x512xf32, #tpu.memory_space<vmem>>, %arg24: memref<512x128xf32, #tpu.memory_space<vmem>>, %arg25: memref<1x128xf32, #tpu.memory_space<vmem>>, %arg26: memref<2x128xf32, #tpu.memory_space<vmem>>) attributes {dimension_semantics = [#tpu.dimension_semantics<arbitrary>], iteration_bounds = array<i64: 1>, scalar_prefetch = 1 : i64, scratch_operands = 0 : i64, tpu.core_type = #tpu.core_type<tc>, window_params = [{pipeline_mode = #tpu.pipeline_mode<synchronous>, transform_indices = @transform_0, window_bounds = array<i64: 2, 128>}, {pipeline_mode = #tpu.pipeline_mode<synchronous>, transform_indices = @transform_1, window_bounds = array<i64: 128, 128>}, {pipeline_mode = #tpu.pipeline_mode<synchronous>, transform_indices = @transform_2, window_bounds = array<i64: 32, 128>}, {pipeline_mode = #tpu.pipeline_mode<synchronous>, transform_indices = @transform_3, window_bounds = array<i64: 2, 128>}, {pipeline_mode = #tpu.pipeline_mode<synchronous>, transform_indices = @transform_4, window_bounds = array<i64: 1, 128>}, {pipeline_mode = #tpu.pipeline_mode<synchronous>, transform_indices = @transform_5, window_bounds = array<i64: 1, 128>}, {pipeline_mode = #tpu.pipeline_mode<synchronous>, transform_indices = @transform_6, window_bounds = array<i64: 2, 128, 128>}, {pipeline_mode = #tpu.pipeline_mode<synchronous>, transform_indices = @transform_7, window_bounds = array<i64: 2, 1, 128>}, {pipeline_mode = #tpu.pipeline_mode<synchronous>, transform_indices = @transform_8, window_bounds = array<i64: 2, 128, 128>}, {pipeline_mode = #tpu.pipeline_mode<synchronous>, transform_indices = @transform_9, window_bounds = array<i64: 2, 1, 128>}, {pipeline_mode = #tpu.pipeline_mode<synchronous>, transform_indices = @transform_10, window_bounds = array<i64: 2, 1, 128>}, {pipeline_mode = #tpu.pipeline_mode<synchronous>, transform_indices = @transform_11, window_bounds = array<i64: 2, 1, 128>}, {pipeline_mode = #tpu.pipeline_mode<synchronous>, transform_indices = @transform_12, window_bounds = array<i64: 2, 128, 128>}, {pipeline_mode = #tpu.pipeline_mode<synchronous>, transform_indices = @transform_13, window_bounds = array<i64: 2, 1, 128>}, {pipeline_mode = #tpu.pipeline_mode<synchronous>, transform_indices = @transform_14, window_bounds = array<i64: 2, 128, 128>}, {pipeline_mode = #tpu.pipeline_mode<synchronous>, transform_indices = @transform_15, window_bounds = array<i64: 2, 1, 128>}, {pipeline_mode = #tpu.pipeline_mode<synchronous>, transform_indices = @transform_16, window_bounds = array<i64: 2, 1, 128>}, {pipeline_mode = #tpu.pipeline_mode<synchronous>, transform_indices = @transform_17, window_bounds = array<i64: 2, 1, 128>}, {pipeline_mode = #tpu.pipeline_mode<synchronous>, transform_indices = @transform_18, window_bounds = array<i64: 128, 128>}, {pipeline_mode = #tpu.pipeline_mode<synchronous>, transform_indices = @transform_19, window_bounds = array<i64: 1, 128>}, {pipeline_mode = #tpu.pipeline_mode<synchronous>, transform_indices = @transform_20, window_bounds = array<i64: 128, 512>}, {pipeline_mode = #tpu.pipeline_mode<synchronous>, transform_indices = @transform_21, window_bounds = array<i64: 1, 512>}, {pipeline_mode = #tpu.pipeline_mode<synchronous>, transform_indices = @transform_22, window_bounds = array<i64: 512, 128>}, {pipeline_mode = #tpu.pipeline_mode<synchronous>, transform_indices = @transform_23, window_bounds = array<i64: 1, 128>}, {pipeline_mode = #tpu.pipeline_mode<synchronous>, transform_indices = @transform_24, window_bounds = array<i64: 2, 128>}]} {
    %0 = tpu.iota {dimensions = array<i32: 1>} : vector<1x128xi32>
    %c32_i32 = arith.constant 32 : i32
    %1 = vector.broadcast %c32_i32 : i32 to vector<1x128xi32>
    %2 = arith.cmpi slt, %0, %1 : vector<1x128xi32>
    %3 = arith.extui %2 : vector<1x128xi1> to vector<1x128xi32>
    %4 = arith.sitofp %3 : vector<1x128xi32> to vector<1x128xf32>
    %c0 = arith.constant 0 : index
    %c0_0 = arith.constant 0 : index
    %5 = vector.load %arg5[%c0, %c0_0] : memref<2x128xf32, #tpu.memory_space<vmem>>, vector<1x128xf32>
    %c0_1 = arith.constant 0 : index
    %6 = memref.load %arg1[%c0_1] : memref<16xi32, #tpu.memory_space<smem>>
    %7 = arith.index_cast %6 : i32 to index
    %c0_2 = arith.constant 0 : index
    %8 = vector.load %arg3[%7, %c0_2] : memref<128x128xf32, #tpu.memory_space<vmem>>, vector<1x128xf32>
    %c0_3 = arith.constant 0 : index
    %c0_4 = arith.constant 0 : index
    %9 = vector.load %arg4[%c0_3, %c0_4] : memref<32x128xf32, #tpu.memory_space<vmem>>, vector<1x128xf32>
    %10 = arith.addf %8, %9 : vector<1x128xf32>
    %11 = arith.addf %10, %5 : vector<1x128xf32>
    %c1 = arith.constant 1 : index
    %12 = memref.load %arg1[%c1] : memref<16xi32, #tpu.memory_space<smem>>
    %13 = arith.index_cast %12 : i32 to index
    %c0_5 = arith.constant 0 : index
    %14 = vector.load %arg3[%13, %c0_5] : memref<128x128xf32, #tpu.memory_space<vmem>>, vector<1x128xf32>
    %c1_6 = arith.constant 1 : index
    %c0_7 = arith.constant 0 : index
    %15 = vector.load %arg4[%c1_6, %c0_7] : memref<32x128xf32, #tpu.memory_space<vmem>>, vector<1x128xf32>
    %16 = arith.addf %14, %15 : vector<1x128xf32>
    %17 = arith.addf %16, %5 : vector<1x128xf32>
    %c2 = arith.constant 2 : index
    %18 = memref.load %arg1[%c2] : memref<16xi32, #tpu.memory_space<smem>>
    %19 = arith.index_cast %18 : i32 to index
    %c0_8 = arith.constant 0 : index
    %20 = vector.load %arg3[%19, %c0_8] : memref<128x128xf32, #tpu.memory_space<vmem>>, vector<1x128xf32>
    %c2_9 = arith.constant 2 : index
    %c0_10 = arith.constant 0 : index
    %21 = vector.load %arg4[%c2_9, %c0_10] : memref<32x128xf32, #tpu.memory_space<vmem>>, vector<1x128xf32>
    %22 = arith.addf %20, %21 : vector<1x128xf32>
    %23 = arith.addf %22, %5 : vector<1x128xf32>
    %c3 = arith.constant 3 : index
    %24 = memref.load %arg1[%c3] : memref<16xi32, #tpu.memory_space<smem>>
    %25 = arith.index_cast %24 : i32 to index
    %c0_11 = arith.constant 0 : index
    %26 = vector.load %arg3[%25, %c0_11] : memref<128x128xf32, #tpu.memory_space<vmem>>, vector<1x128xf32>
    %c3_12 = arith.constant 3 : index
    %c0_13 = arith.constant 0 : index
    %27 = vector.load %arg4[%c3_12, %c0_13] : memref<32x128xf32, #tpu.memory_space<vmem>>, vector<1x128xf32>
    %28 = arith.addf %26, %27 : vector<1x128xf32>
    %29 = arith.addf %28, %5 : vector<1x128xf32>
    %c4 = arith.constant 4 : index
    %30 = memref.load %arg1[%c4] : memref<16xi32, #tpu.memory_space<smem>>
    %31 = arith.index_cast %30 : i32 to index
    %c0_14 = arith.constant 0 : index
    %32 = vector.load %arg3[%31, %c0_14] : memref<128x128xf32, #tpu.memory_space<vmem>>, vector<1x128xf32>
    %c4_15 = arith.constant 4 : index
    %c0_16 = arith.constant 0 : index
    %33 = vector.load %arg4[%c4_15, %c0_16] : memref<32x128xf32, #tpu.memory_space<vmem>>, vector<1x128xf32>
    %34 = arith.addf %32, %33 : vector<1x128xf32>
    %35 = arith.addf %34, %5 : vector<1x128xf32>
    %c5 = arith.constant 5 : index
    %36 = memref.load %arg1[%c5] : memref<16xi32, #tpu.memory_space<smem>>
    %37 = arith.index_cast %36 : i32 to index
    %c0_17 = arith.constant 0 : index
    %38 = vector.load %arg3[%37, %c0_17] : memref<128x128xf32, #tpu.memory_space<vmem>>, vector<1x128xf32>
    %c5_18 = arith.constant 5 : index
    %c0_19 = arith.constant 0 : index
    %39 = vector.load %arg4[%c5_18, %c0_19] : memref<32x128xf32, #tpu.memory_space<vmem>>, vector<1x128xf32>
    %40 = arith.addf %38, %39 : vector<1x128xf32>
    %41 = arith.addf %40, %5 : vector<1x128xf32>
    %c6 = arith.constant 6 : index
    %42 = memref.load %arg1[%c6] : memref<16xi32, #tpu.memory_space<smem>>
    %43 = arith.index_cast %42 : i32 to index
    %c0_20 = arith.constant 0 : index
    %44 = vector.load %arg3[%43, %c0_20] : memref<128x128xf32, #tpu.memory_space<vmem>>, vector<1x128xf32>
    %c6_21 = arith.constant 6 : index
    %c0_22 = arith.constant 0 : index
    %45 = vector.load %arg4[%c6_21, %c0_22] : memref<32x128xf32, #tpu.memory_space<vmem>>, vector<1x128xf32>
    %46 = arith.addf %44, %45 : vector<1x128xf32>
    %47 = arith.addf %46, %5 : vector<1x128xf32>
    %c7 = arith.constant 7 : index
    %48 = memref.load %arg1[%c7] : memref<16xi32, #tpu.memory_space<smem>>
    %49 = arith.index_cast %48 : i32 to index
    %c0_23 = arith.constant 0 : index
    %50 = vector.load %arg3[%49, %c0_23] : memref<128x128xf32, #tpu.memory_space<vmem>>, vector<1x128xf32>
    %c7_24 = arith.constant 7 : index
    %c0_25 = arith.constant 0 : index
    %51 = vector.load %arg4[%c7_24, %c0_25] : memref<32x128xf32, #tpu.memory_space<vmem>>, vector<1x128xf32>
    %52 = arith.addf %50, %51 : vector<1x128xf32>
    %53 = arith.addf %52, %5 : vector<1x128xf32>
    %c8 = arith.constant 8 : index
    %54 = memref.load %arg1[%c8] : memref<16xi32, #tpu.memory_space<smem>>
    %55 = arith.index_cast %54 : i32 to index
    %c0_26 = arith.constant 0 : index
    %56 = vector.load %arg3[%55, %c0_26] : memref<128x128xf32, #tpu.memory_space<vmem>>, vector<1x128xf32>
    %c0_27 = arith.constant 0 : index
    %c0_28 = arith.constant 0 : index
    %57 = vector.load %arg4[%c0_27, %c0_28] : memref<32x128xf32, #tpu.memory_space<vmem>>, vector<1x128xf32>
    %58 = arith.addf %56, %57 : vector<1x128xf32>
    %59 = arith.addf %58, %5 : vector<1x128xf32>
    %c9 = arith.constant 9 : index
    %60 = memref.load %arg1[%c9] : memref<16xi32, #tpu.memory_space<smem>>
    %61 = arith.index_cast %60 : i32 to index
    %c0_29 = arith.constant 0 : index
    %62 = vector.load %arg3[%61, %c0_29] : memref<128x128xf32, #tpu.memory_space<vmem>>, vector<1x128xf32>
    %c1_30 = arith.constant 1 : index
    %c0_31 = arith.constant 0 : index
    %63 = vector.load %arg4[%c1_30, %c0_31] : memref<32x128xf32, #tpu.memory_space<vmem>>, vector<1x128xf32>
    %64 = arith.addf %62, %63 : vector<1x128xf32>
    %65 = arith.addf %64, %5 : vector<1x128xf32>
    %c10 = arith.constant 10 : index
    %66 = memref.load %arg1[%c10] : memref<16xi32, #tpu.memory_space<smem>>
    %67 = arith.index_cast %66 : i32 to index
    %c0_32 = arith.constant 0 : index
    %68 = vector.load %arg3[%67, %c0_32] : memref<128x128xf32, #tpu.memory_space<vmem>>, vector<1x128xf32>
    %c2_33 = arith.constant 2 : index
    %c0_34 = arith.constant 0 : index
    %69 = vector.load %arg4[%c2_33, %c0_34] : memref<32x128xf32, #tpu.memory_space<vmem>>, vector<1x128xf32>
    %70 = arith.addf %68, %69 : vector<1x128xf32>
    %71 = arith.addf %70, %5 : vector<1x128xf32>
    %c11 = arith.constant 11 : index
    %72 = memref.load %arg1[%c11] : memref<16xi32, #tpu.memory_space<smem>>
    %73 = arith.index_cast %72 : i32 to index
    %c0_35 = arith.constant 0 : index
    %74 = vector.load %arg3[%73, %c0_35] : memref<128x128xf32, #tpu.memory_space<vmem>>, vector<1x128xf32>
    %c3_36 = arith.constant 3 : index
    %c0_37 = arith.constant 0 : index
    %75 = vector.load %arg4[%c3_36, %c0_37] : memref<32x128xf32, #tpu.memory_space<vmem>>, vector<1x128xf32>
    %76 = arith.addf %74, %75 : vector<1x128xf32>
    %77 = arith.addf %76, %5 : vector<1x128xf32>
    %c12 = arith.constant 12 : index
    %78 = memref.load %arg1[%c12] : memref<16xi32, #tpu.memory_space<smem>>
    %79 = arith.index_cast %78 : i32 to index
    %c0_38 = arith.constant 0 : index
    %80 = vector.load %arg3[%79, %c0_38] : memref<128x128xf32, #tpu.memory_space<vmem>>, vector<1x128xf32>
    %c4_39 = arith.constant 4 : index
    %c0_40 = arith.constant 0 : index
    %81 = vector.load %arg4[%c4_39, %c0_40] : memref<32x128xf32, #tpu.memory_space<vmem>>, vector<1x128xf32>
    %82 = arith.addf %80, %81 : vector<1x128xf32>
    %83 = arith.addf %82, %5 : vector<1x128xf32>
    %c13 = arith.constant 13 : index
    %84 = memref.load %arg1[%c13] : memref<16xi32, #tpu.memory_space<smem>>
    %85 = arith.index_cast %84 : i32 to index
    %c0_41 = arith.constant 0 : index
    %86 = vector.load %arg3[%85, %c0_41] : memref<128x128xf32, #tpu.memory_space<vmem>>, vector<1x128xf32>
    %c5_42 = arith.constant 5 : index
    %c0_43 = arith.constant 0 : index
    %87 = vector.load %arg4[%c5_42, %c0_43] : memref<32x128xf32, #tpu.memory_space<vmem>>, vector<1x128xf32>
    %88 = arith.addf %86, %87 : vector<1x128xf32>
    %89 = arith.addf %88, %5 : vector<1x128xf32>
    %c14 = arith.constant 14 : index
    %90 = memref.load %arg1[%c14] : memref<16xi32, #tpu.memory_space<smem>>
    %91 = arith.index_cast %90 : i32 to index
    %c0_44 = arith.constant 0 : index
    %92 = vector.load %arg3[%91, %c0_44] : memref<128x128xf32, #tpu.memory_space<vmem>>, vector<1x128xf32>
    %c6_45 = arith.constant 6 : index
    %c0_46 = arith.constant 0 : index
    %93 = vector.load %arg4[%c6_45, %c0_46] : memref<32x128xf32, #tpu.memory_space<vmem>>, vector<1x128xf32>
    %94 = arith.addf %92, %93 : vector<1x128xf32>
    %95 = arith.addf %94, %5 : vector<1x128xf32>
    %c15 = arith.constant 15 : index
    %96 = memref.load %arg1[%c15] : memref<16xi32, #tpu.memory_space<smem>>
    %97 = arith.index_cast %96 : i32 to index
    %c0_47 = arith.constant 0 : index
    %98 = vector.load %arg3[%97, %c0_47] : memref<128x128xf32, #tpu.memory_space<vmem>>, vector<1x128xf32>
    %c7_48 = arith.constant 7 : index
    %c0_49 = arith.constant 0 : index
    %99 = vector.load %arg4[%c7_48, %c0_49] : memref<32x128xf32, #tpu.memory_space<vmem>>, vector<1x128xf32>
    %100 = arith.addf %98, %99 : vector<1x128xf32>
    %101 = arith.addf %100, %5 : vector<1x128xf32>
    %102 = tpu.concatenate %11, %17, %23, %29, %35, %41, %47, %53, %59, %65, %71, %77, %83, %89, %95, %101 in 0 : vector<1x128xf32>, vector<1x128xf32>, vector<1x128xf32>, vector<1x128xf32>, vector<1x128xf32>, vector<1x128xf32>, vector<1x128xf32>, vector<1x128xf32>, vector<1x128xf32>, vector<1x128xf32>, vector<1x128xf32>, vector<1x128xf32>, vector<1x128xf32>, vector<1x128xf32>, vector<1x128xf32>, vector<1x128xf32> -> vector<16x128xf32>
    %c0_50 = arith.constant 0 : index
    %c0_51 = arith.constant 0 : index
    %103 = vector.load %arg6[%c0_50, %c0_51] : memref<1x128xf32, #tpu.memory_space<vmem>>, vector<1x128xf32>
    %c0_52 = arith.constant 0 : index
    %c0_53 = arith.constant 0 : index
    %104 = vector.load %arg7[%c0_52, %c0_53] : memref<1x128xf32, #tpu.memory_space<vmem>>, vector<1x128xf32>
    %cst = arith.constant dense<0.000000e+00> : vector<16xf32>
    %105 = vector.multi_reduction <add>, %102, %cst [1] : vector<16x128xf32> to vector<16xf32>
    %106 = vector.shape_cast %105 : vector<16xf32> to vector<16x1xf32>
    %cst_54 = arith.constant 3.200000e+01 : f32
    %107 = vector.broadcast %cst_54 : f32 to vector<16x1xf32>
    %108 = arith.divf %106, %107 : vector<16x1xf32>
    %109 = vector.broadcast %108 : vector<16x1xf32> to vector<16x128xf32>
    %110 = arith.subf %102, %109 : vector<16x128xf32>
    %111 = vector.broadcast %4 : vector<1x128xf32> to vector<16x128xf32>
    %112 = arith.mulf %110, %111 : vector<16x128xf32>
    %113 = arith.mulf %112, %112 : vector<16x128xf32>
    %cst_55 = arith.constant dense<0.000000e+00> : vector<16xf32>
    %114 = vector.multi_reduction <add>, %113, %cst_55 [1] : vector<16x128xf32> to vector<16xf32>
    %115 = vector.shape_cast %114 : vector<16xf32> to vector<16x1xf32>
    %cst_56 = arith.constant 3.200000e+01 : f32
    %116 = vector.broadcast %cst_56 : f32 to vector<16x1xf32>
    %117 = arith.divf %115, %116 : vector<16x1xf32>
    %cst_57 = arith.constant 9.99999996E-13 : f32
    %118 = vector.broadcast %cst_57 : f32 to vector<16x1xf32>
    %119 = arith.addf %117, %118 : vector<16x1xf32>
    %120 = math.rsqrt %119 : vector<16x1xf32>
    %121 = vector.broadcast %120 : vector<16x1xf32> to vector<16x128xf32>
    %122 = arith.mulf %112, %121 : vector<16x128xf32>
    %123 = vector.broadcast %103 : vector<1x128xf32> to vector<16x128xf32>
    %124 = arith.mulf %122, %123 : vector<16x128xf32>
    %125 = vector.broadcast %104 : vector<1x128xf32> to vector<16x128xf32>
    %126 = arith.addf %124, %125 : vector<16x128xf32>
    %c0_58 = arith.constant 0 : index
    %c0_59 = arith.constant 0 : index
    %c0_60 = arith.constant 0 : index
    %127 = vector.load %arg8[%c0_58, %c0_59, %c0_60] : memref<2x128x128xf32, #tpu.memory_space<vmem>>, vector<1x128x128xf32>
    %128 = vector.shape_cast %127 : vector<1x128x128xf32> to vector<128x128xf32>
    %cst_61 = arith.constant dense<0.000000e+00> : vector<16x128xf32>
    %129 = tpu.matmul %126, %128, %cst_61 {dimension_numbers = #tpu.dot_dimension_numbers<[1], [0], [0], [1], [0, 0, 1, 1], [], []>} : vector<16x128xf32>, vector<128x128xf32>, vector<16x128xf32> -> vector<16x128xf32>
    %c0_62 = arith.constant 0 : index
    %c0_63 = arith.constant 0 : index
    %c0_64 = arith.constant 0 : index
    %130 = vector.load %arg9[%c0_62, %c0_63, %c0_64] : memref<2x1x128xf32, #tpu.memory_space<vmem>>, vector<1x1x128xf32>
    %131 = vector.shape_cast %130 : vector<1x1x128xf32> to vector<1x128xf32>
    %132 = vector.broadcast %131 : vector<1x128xf32> to vector<16x128xf32>
    %133 = arith.addf %129, %132 : vector<16x128xf32>
    %c0_65 = arith.constant 0 : index
    %c0_66 = arith.constant 0 : index
    %134 = vector.load %arg2[%c0_65, %c0_66] : memref<2x128xf32, #tpu.memory_space<vmem>>, vector<1x128xf32>
    %135 = vector.extract_strided_slice %134 {offsets = [0, 0], sizes = [1, 8], strides = [1, 1]} : vector<1x128xf32> to vector<1x8xf32>
    %136 = vector.extract_strided_slice %133 {offsets = [0, 0], sizes = [8, 16], strides = [1, 1]} : vector<16x128xf32> to vector<8x16xf32>
    %137 = vector.extract_strided_slice %133 {offsets = [0, 32], sizes = [8, 16], strides = [1, 1]} : vector<16x128xf32> to vector<8x16xf32>
    %138 = vector.extract_strided_slice %133 {offsets = [0, 64], sizes = [8, 16], strides = [1, 1]} : vector<16x128xf32> to vector<8x16xf32>
    %cst_67 = arith.constant dense<0.000000e+00> : vector<8x8xf32>
    %139 = tpu.matmul %136, %137, %cst_67 {dimension_numbers = #tpu.dot_dimension_numbers<[1], [1], [0], [0], [0, 0, 1, 0], [], []>} : vector<8x16xf32>, vector<8x16xf32>, vector<8x8xf32> -> vector<8x8xf32>
    %cst_68 = arith.constant 2.500000e-01 : f32
    %140 = vector.broadcast %cst_68 : f32 to vector<8x8xf32>
    %141 = arith.mulf %139, %140 : vector<8x8xf32>
    %142 = vector.broadcast %135 : vector<1x8xf32> to vector<8x8xf32>
    %143 = arith.addf %141, %142 : vector<8x8xf32>
    %cst_69 = arith.constant dense<0xFF800000> : vector<8xf32>
    %144 = vector.multi_reduction <maximumf>, %143, %cst_69 [1] : vector<8x8xf32> to vector<8xf32>
    %145 = vector.shape_cast %144 : vector<8xf32> to vector<8x1xf32>
    %146 = vector.broadcast %145 : vector<8x1xf32> to vector<8x8xf32>
    %147 = arith.subf %143, %146 : vector<8x8xf32>
    %148 = math.exp %147 : vector<8x8xf32>
    %cst_70 = arith.constant dense<0.000000e+00> : vector<8xf32>
    %149 = vector.multi_reduction <add>, %148, %cst_70 [1] : vector<8x8xf32> to vector<8xf32>
    %150 = vector.shape_cast %149 : vector<8xf32> to vector<8x1xf32>
    %151 = tpu.reciprocal %150 : vector<8x1xf32> -> vector<8x1xf32>
    %152 = vector.broadcast %151 : vector<8x1xf32> to vector<8x8xf32>
    %153 = arith.mulf %148, %152 : vector<8x8xf32>
    %cst_71 = arith.constant dense<0.000000e+00> : vector<8x16xf32>
    %154 = tpu.matmul %153, %138, %cst_71 {dimension_numbers = #tpu.dot_dimension_numbers<[1], [0], [0], [1], [0, 0, 1, 1], [], []>} : vector<8x8xf32>, vector<8x16xf32>, vector<8x16xf32> -> vector<8x16xf32>
    %155 = vector.extract_strided_slice %133 {offsets = [0, 16], sizes = [8, 16], strides = [1, 1]} : vector<16x128xf32> to vector<8x16xf32>
    %156 = vector.extract_strided_slice %133 {offsets = [0, 48], sizes = [8, 16], strides = [1, 1]} : vector<16x128xf32> to vector<8x16xf32>
    %157 = vector.extract_strided_slice %133 {offsets = [0, 80], sizes = [8, 16], strides = [1, 1]} : vector<16x128xf32> to vector<8x16xf32>
    %cst_72 = arith.constant dense<0.000000e+00> : vector<8x8xf32>
    %158 = tpu.matmul %155, %156, %cst_72 {dimension_numbers = #tpu.dot_dimension_numbers<[1], [1], [0], [0], [0, 0, 1, 0], [], []>} : vector<8x16xf32>, vector<8x16xf32>, vector<8x8xf32> -> vector<8x8xf32>
    %cst_73 = arith.constant 2.500000e-01 : f32
    %159 = vector.broadcast %cst_73 : f32 to vector<8x8xf32>
    %160 = arith.mulf %158, %159 : vector<8x8xf32>
    %161 = vector.broadcast %135 : vector<1x8xf32> to vector<8x8xf32>
    %162 = arith.addf %160, %161 : vector<8x8xf32>
    %cst_74 = arith.constant dense<0xFF800000> : vector<8xf32>
    %163 = vector.multi_reduction <maximumf>, %162, %cst_74 [1] : vector<8x8xf32> to vector<8xf32>
    %164 = vector.shape_cast %163 : vector<8xf32> to vector<8x1xf32>
    %165 = vector.broadcast %164 : vector<8x1xf32> to vector<8x8xf32>
    %166 = arith.subf %162, %165 : vector<8x8xf32>
    %167 = math.exp %166 : vector<8x8xf32>
    %cst_75 = arith.constant dense<0.000000e+00> : vector<8xf32>
    %168 = vector.multi_reduction <add>, %167, %cst_75 [1] : vector<8x8xf32> to vector<8xf32>
    %169 = vector.shape_cast %168 : vector<8xf32> to vector<8x1xf32>
    %170 = tpu.reciprocal %169 : vector<8x1xf32> -> vector<8x1xf32>
    %171 = vector.broadcast %170 : vector<8x1xf32> to vector<8x8xf32>
    %172 = arith.mulf %167, %171 : vector<8x8xf32>
    %cst_76 = arith.constant dense<0.000000e+00> : vector<8x16xf32>
    %173 = tpu.matmul %172, %157, %cst_76 {dimension_numbers = #tpu.dot_dimension_numbers<[1], [0], [0], [1], [0, 0, 1, 1], [], []>} : vector<8x8xf32>, vector<8x16xf32>, vector<8x16xf32> -> vector<8x16xf32>
    %cst_77 = arith.constant 0.000000e+00 : f32
    %174 = vector.broadcast %cst_77 : f32 to vector<8x96xf32>
    %175 = tpu.concatenate %154, %173, %174 in 1 : vector<8x16xf32>, vector<8x16xf32>, vector<8x96xf32> -> vector<8x128xf32>
    %c1_78 = arith.constant 1 : index
    %c0_79 = arith.constant 0 : index
    %176 = vector.load %arg2[%c1_78, %c0_79] : memref<2x128xf32, #tpu.memory_space<vmem>>, vector<1x128xf32>
    %177 = vector.extract_strided_slice %176 {offsets = [0, 0], sizes = [1, 8], strides = [1, 1]} : vector<1x128xf32> to vector<1x8xf32>
    %178 = vector.extract_strided_slice %133 {offsets = [8, 0], sizes = [8, 16], strides = [1, 1]} : vector<16x128xf32> to vector<8x16xf32>
    %179 = vector.extract_strided_slice %133 {offsets = [8, 32], sizes = [8, 16], strides = [1, 1]} : vector<16x128xf32> to vector<8x16xf32>
    %180 = vector.extract_strided_slice %133 {offsets = [8, 64], sizes = [8, 16], strides = [1, 1]} : vector<16x128xf32> to vector<8x16xf32>
    %cst_80 = arith.constant dense<0.000000e+00> : vector<8x8xf32>
    %181 = tpu.matmul %178, %179, %cst_80 {dimension_numbers = #tpu.dot_dimension_numbers<[1], [1], [0], [0], [0, 0, 1, 0], [], []>} : vector<8x16xf32>, vector<8x16xf32>, vector<8x8xf32> -> vector<8x8xf32>
    %cst_81 = arith.constant 2.500000e-01 : f32
    %182 = vector.broadcast %cst_81 : f32 to vector<8x8xf32>
    %183 = arith.mulf %181, %182 : vector<8x8xf32>
    %184 = vector.broadcast %177 : vector<1x8xf32> to vector<8x8xf32>
    %185 = arith.addf %183, %184 : vector<8x8xf32>
    %cst_82 = arith.constant dense<0xFF800000> : vector<8xf32>
    %186 = vector.multi_reduction <maximumf>, %185, %cst_82 [1] : vector<8x8xf32> to vector<8xf32>
    %187 = vector.shape_cast %186 : vector<8xf32> to vector<8x1xf32>
    %188 = vector.broadcast %187 : vector<8x1xf32> to vector<8x8xf32>
    %189 = arith.subf %185, %188 : vector<8x8xf32>
    %190 = math.exp %189 : vector<8x8xf32>
    %cst_83 = arith.constant dense<0.000000e+00> : vector<8xf32>
    %191 = vector.multi_reduction <add>, %190, %cst_83 [1] : vector<8x8xf32> to vector<8xf32>
    %192 = vector.shape_cast %191 : vector<8xf32> to vector<8x1xf32>
    %193 = tpu.reciprocal %192 : vector<8x1xf32> -> vector<8x1xf32>
    %194 = vector.broadcast %193 : vector<8x1xf32> to vector<8x8xf32>
    %195 = arith.mulf %190, %194 : vector<8x8xf32>
    %cst_84 = arith.constant dense<0.000000e+00> : vector<8x16xf32>
    %196 = tpu.matmul %195, %180, %cst_84 {dimension_numbers = #tpu.dot_dimension_numbers<[1], [0], [0], [1], [0, 0, 1, 1], [], []>} : vector<8x8xf32>, vector<8x16xf32>, vector<8x16xf32> -> vector<8x16xf32>
    %197 = vector.extract_strided_slice %133 {offsets = [8, 16], sizes = [8, 16], strides = [1, 1]} : vector<16x128xf32> to vector<8x16xf32>
    %198 = vector.extract_strided_slice %133 {offsets = [8, 48], sizes = [8, 16], strides = [1, 1]} : vector<16x128xf32> to vector<8x16xf32>
    %199 = vector.extract_strided_slice %133 {offsets = [8, 80], sizes = [8, 16], strides = [1, 1]} : vector<16x128xf32> to vector<8x16xf32>
    %cst_85 = arith.constant dense<0.000000e+00> : vector<8x8xf32>
    %200 = tpu.matmul %197, %198, %cst_85 {dimension_numbers = #tpu.dot_dimension_numbers<[1], [1], [0], [0], [0, 0, 1, 0], [], []>} : vector<8x16xf32>, vector<8x16xf32>, vector<8x8xf32> -> vector<8x8xf32>
    %cst_86 = arith.constant 2.500000e-01 : f32
    %201 = vector.broadcast %cst_86 : f32 to vector<8x8xf32>
    %202 = arith.mulf %200, %201 : vector<8x8xf32>
    %203 = vector.broadcast %177 : vector<1x8xf32> to vector<8x8xf32>
    %204 = arith.addf %202, %203 : vector<8x8xf32>
    %cst_87 = arith.constant dense<0xFF800000> : vector<8xf32>
    %205 = vector.multi_reduction <maximumf>, %204, %cst_87 [1] : vector<8x8xf32> to vector<8xf32>
    %206 = vector.shape_cast %205 : vector<8xf32> to vector<8x1xf32>
    %207 = vector.broadcast %206 : vector<8x1xf32> to vector<8x8xf32>
    %208 = arith.subf %204, %207 : vector<8x8xf32>
    %209 = math.exp %208 : vector<8x8xf32>
    %cst_88 = arith.constant dense<0.000000e+00> : vector<8xf32>
    %210 = vector.multi_reduction <add>, %209, %cst_88 [1] : vector<8x8xf32> to vector<8xf32>
    %211 = vector.shape_cast %210 : vector<8xf32> to vector<8x1xf32>
    %212 = tpu.reciprocal %211 : vector<8x1xf32> -> vector<8x1xf32>
    %213 = vector.broadcast %212 : vector<8x1xf32> to vector<8x8xf32>
    %214 = arith.mulf %209, %213 : vector<8x8xf32>
    %cst_89 = arith.constant dense<0.000000e+00> : vector<8x16xf32>
    %215 = tpu.matmul %214, %199, %cst_89 {dimension_numbers = #tpu.dot_dimension_numbers<[1], [0], [0], [1], [0, 0, 1, 1], [], []>} : vector<8x8xf32>, vector<8x16xf32>, vector<8x16xf32> -> vector<8x16xf32>
    %cst_90 = arith.constant 0.000000e+00 : f32
    %216 = vector.broadcast %cst_90 : f32 to vector<8x96xf32>
    %217 = tpu.concatenate %196, %215, %216 in 1 : vector<8x16xf32>, vector<8x16xf32>, vector<8x96xf32> -> vector<8x128xf32>
    %218 = tpu.concatenate %175, %217 in 0 : vector<8x128xf32>, vector<8x128xf32> -> vector<16x128xf32>
    %c0_91 = arith.constant 0 : index
    %c0_92 = arith.constant 0 : index
    %c0_93 = arith.constant 0 : index
    %219 = vector.load %arg10[%c0_91, %c0_92, %c0_93] : memref<2x128x128xf32, #tpu.memory_space<vmem>>, vector<1x128x128xf32>
    %220 = vector.shape_cast %219 : vector<1x128x128xf32> to vector<128x128xf32>
    %cst_94 = arith.constant dense<0.000000e+00> : vector<16x128xf32>
    %221 = tpu.matmul %218, %220, %cst_94 {dimension_numbers = #tpu.dot_dimension_numbers<[1], [0], [0], [1], [0, 0, 1, 1], [], []>} : vector<16x128xf32>, vector<128x128xf32>, vector<16x128xf32> -> vector<16x128xf32>
    %c0_95 = arith.constant 0 : index
    %c0_96 = arith.constant 0 : index
    %c0_97 = arith.constant 0 : index
    %222 = vector.load %arg11[%c0_95, %c0_96, %c0_97] : memref<2x1x128xf32, #tpu.memory_space<vmem>>, vector<1x1x128xf32>
    %223 = vector.shape_cast %222 : vector<1x1x128xf32> to vector<1x128xf32>
    %224 = vector.broadcast %223 : vector<1x128xf32> to vector<16x128xf32>
    %225 = arith.addf %221, %224 : vector<16x128xf32>
    %226 = arith.addf %126, %225 : vector<16x128xf32>
    %c0_98 = arith.constant 0 : index
    %c0_99 = arith.constant 0 : index
    %c0_100 = arith.constant 0 : index
    %227 = vector.load %arg12[%c0_98, %c0_99, %c0_100] : memref<2x1x128xf32, #tpu.memory_space<vmem>>, vector<1x1x128xf32>
    %228 = vector.shape_cast %227 : vector<1x1x128xf32> to vector<1x128xf32>
    %c0_101 = arith.constant 0 : index
    %c0_102 = arith.constant 0 : index
    %c0_103 = arith.constant 0 : index
    %229 = vector.load %arg13[%c0_101, %c0_102, %c0_103] : memref<2x1x128xf32, #tpu.memory_space<vmem>>, vector<1x1x128xf32>
    %230 = vector.shape_cast %229 : vector<1x1x128xf32> to vector<1x128xf32>
    %cst_104 = arith.constant dense<0.000000e+00> : vector<16xf32>
    %231 = vector.multi_reduction <add>, %226, %cst_104 [1] : vector<16x128xf32> to vector<16xf32>
    %232 = vector.shape_cast %231 : vector<16xf32> to vector<16x1xf32>
    %cst_105 = arith.constant 3.200000e+01 : f32
    %233 = vector.broadcast %cst_105 : f32 to vector<16x1xf32>
    %234 = arith.divf %232, %233 : vector<16x1xf32>
    %235 = vector.broadcast %234 : vector<16x1xf32> to vector<16x128xf32>
    %236 = arith.subf %226, %235 : vector<16x128xf32>
    %237 = vector.broadcast %4 : vector<1x128xf32> to vector<16x128xf32>
    %238 = arith.mulf %236, %237 : vector<16x128xf32>
    %239 = arith.mulf %238, %238 : vector<16x128xf32>
    %cst_106 = arith.constant dense<0.000000e+00> : vector<16xf32>
    %240 = vector.multi_reduction <add>, %239, %cst_106 [1] : vector<16x128xf32> to vector<16xf32>
    %241 = vector.shape_cast %240 : vector<16xf32> to vector<16x1xf32>
    %cst_107 = arith.constant 3.200000e+01 : f32
    %242 = vector.broadcast %cst_107 : f32 to vector<16x1xf32>
    %243 = arith.divf %241, %242 : vector<16x1xf32>
    %cst_108 = arith.constant 9.99999996E-13 : f32
    %244 = vector.broadcast %cst_108 : f32 to vector<16x1xf32>
    %245 = arith.addf %243, %244 : vector<16x1xf32>
    %246 = math.rsqrt %245 : vector<16x1xf32>
    %247 = vector.broadcast %246 : vector<16x1xf32> to vector<16x128xf32>
    %248 = arith.mulf %238, %247 : vector<16x128xf32>
    %249 = vector.broadcast %228 : vector<1x128xf32> to vector<16x128xf32>
    %250 = arith.mulf %248, %249 : vector<16x128xf32>
    %251 = vector.broadcast %230 : vector<1x128xf32> to vector<16x128xf32>
    %252 = arith.addf %250, %251 : vector<16x128xf32>
    %c0_109 = arith.constant 0 : index
    %c0_110 = arith.constant 0 : index
    %c0_111 = arith.constant 0 : index
    %253 = vector.load %arg14[%c0_109, %c0_110, %c0_111] : memref<2x128x128xf32, #tpu.memory_space<vmem>>, vector<1x128x128xf32>
    %254 = vector.shape_cast %253 : vector<1x128x128xf32> to vector<128x128xf32>
    %cst_112 = arith.constant dense<0.000000e+00> : vector<16x128xf32>
    %255 = tpu.matmul %252, %254, %cst_112 {dimension_numbers = #tpu.dot_dimension_numbers<[1], [0], [0], [1], [0, 0, 1, 1], [], []>} : vector<16x128xf32>, vector<128x128xf32>, vector<16x128xf32> -> vector<16x128xf32>
    %c0_113 = arith.constant 0 : index
    %c0_114 = arith.constant 0 : index
    %c0_115 = arith.constant 0 : index
    %256 = vector.load %arg15[%c0_113, %c0_114, %c0_115] : memref<2x1x128xf32, #tpu.memory_space<vmem>>, vector<1x1x128xf32>
    %257 = vector.shape_cast %256 : vector<1x1x128xf32> to vector<1x128xf32>
    %258 = vector.broadcast %257 : vector<1x128xf32> to vector<16x128xf32>
    %259 = arith.addf %255, %258 : vector<16x128xf32>
    %cst_116 = arith.constant 5.000000e-01 : f32
    %260 = vector.broadcast %cst_116 : f32 to vector<16x128xf32>
    %261 = arith.mulf %260, %259 : vector<16x128xf32>
    %cst_117 = arith.constant 4.471500e-02 : f32
    %262 = vector.broadcast %cst_117 : f32 to vector<16x128xf32>
    %263 = arith.mulf %262, %259 : vector<16x128xf32>
    %264 = arith.mulf %263, %259 : vector<16x128xf32>
    %265 = arith.mulf %264, %259 : vector<16x128xf32>
    %266 = arith.addf %259, %265 : vector<16x128xf32>
    %cst_118 = arith.constant 0.797884583 : f32
    %267 = vector.broadcast %cst_118 : f32 to vector<16x128xf32>
    %268 = arith.mulf %267, %266 : vector<16x128xf32>
    %269 = math.tanh %268 : vector<16x128xf32>
    %cst_119 = arith.constant 1.000000e+00 : f32
    %270 = vector.broadcast %cst_119 : f32 to vector<16x128xf32>
    %271 = arith.addf %270, %269 : vector<16x128xf32>
    %272 = arith.mulf %261, %271 : vector<16x128xf32>
    %c0_120 = arith.constant 0 : index
    %c0_121 = arith.constant 0 : index
    %c0_122 = arith.constant 0 : index
    %273 = vector.load %arg16[%c0_120, %c0_121, %c0_122] : memref<2x128x128xf32, #tpu.memory_space<vmem>>, vector<1x128x128xf32>
    %274 = vector.shape_cast %273 : vector<1x128x128xf32> to vector<128x128xf32>
    %cst_123 = arith.constant dense<0.000000e+00> : vector<16x128xf32>
    %275 = tpu.matmul %272, %274, %cst_123 {dimension_numbers = #tpu.dot_dimension_numbers<[1], [0], [0], [1], [0, 0, 1, 1], [], []>} : vector<16x128xf32>, vector<128x128xf32>, vector<16x128xf32> -> vector<16x128xf32>
    %c0_124 = arith.constant 0 : index
    %c0_125 = arith.constant 0 : index
    %c0_126 = arith.constant 0 : index
    %276 = vector.load %arg17[%c0_124, %c0_125, %c0_126] : memref<2x1x128xf32, #tpu.memory_space<vmem>>, vector<1x1x128xf32>
    %277 = vector.shape_cast %276 : vector<1x1x128xf32> to vector<1x128xf32>
    %278 = vector.broadcast %277 : vector<1x128xf32> to vector<16x128xf32>
    %279 = arith.addf %275, %278 : vector<16x128xf32>
    %280 = arith.addf %252, %279 : vector<16x128xf32>
    %c0_127 = arith.constant 0 : index
    %c0_128 = arith.constant 0 : index
    %c0_129 = arith.constant 0 : index
    %281 = vector.load %arg18[%c0_127, %c0_128, %c0_129] : memref<2x1x128xf32, #tpu.memory_space<vmem>>, vector<1x1x128xf32>
    %282 = vector.shape_cast %281 : vector<1x1x128xf32> to vector<1x128xf32>
    %c0_130 = arith.constant 0 : index
    %c0_131 = arith.constant 0 : index
    %c0_132 = arith.constant 0 : index
    %283 = vector.load %arg19[%c0_130, %c0_131, %c0_132] : memref<2x1x128xf32, #tpu.memory_space<vmem>>, vector<1x1x128xf32>
    %284 = vector.shape_cast %283 : vector<1x1x128xf32> to vector<1x128xf32>
    %cst_133 = arith.constant dense<0.000000e+00> : vector<16xf32>
    %285 = vector.multi_reduction <add>, %280, %cst_133 [1] : vector<16x128xf32> to vector<16xf32>
    %286 = vector.shape_cast %285 : vector<16xf32> to vector<16x1xf32>
    %cst_134 = arith.constant 3.200000e+01 : f32
    %287 = vector.broadcast %cst_134 : f32 to vector<16x1xf32>
    %288 = arith.divf %286, %287 : vector<16x1xf32>
    %289 = vector.broadcast %288 : vector<16x1xf32> to vector<16x128xf32>
    %290 = arith.subf %280, %289 : vector<16x128xf32>
    %291 = vector.broadcast %4 : vector<1x128xf32> to vector<16x128xf32>
    %292 = arith.mulf %290, %291 : vector<16x128xf32>
    %293 = arith.mulf %292, %292 : vector<16x128xf32>
    %cst_135 = arith.constant dense<0.000000e+00> : vector<16xf32>
    %294 = vector.multi_reduction <add>, %293, %cst_135 [1] : vector<16x128xf32> to vector<16xf32>
    %295 = vector.shape_cast %294 : vector<16xf32> to vector<16x1xf32>
    %cst_136 = arith.constant 3.200000e+01 : f32
    %296 = vector.broadcast %cst_136 : f32 to vector<16x1xf32>
    %297 = arith.divf %295, %296 : vector<16x1xf32>
    %cst_137 = arith.constant 9.99999996E-13 : f32
    %298 = vector.broadcast %cst_137 : f32 to vector<16x1xf32>
    %299 = arith.addf %297, %298 : vector<16x1xf32>
    %300 = math.rsqrt %299 : vector<16x1xf32>
    %301 = vector.broadcast %300 : vector<16x1xf32> to vector<16x128xf32>
    %302 = arith.mulf %292, %301 : vector<16x128xf32>
    %303 = vector.broadcast %282 : vector<1x128xf32> to vector<16x128xf32>
    %304 = arith.mulf %302, %303 : vector<16x128xf32>
    %305 = vector.broadcast %284 : vector<1x128xf32> to vector<16x128xf32>
    %306 = arith.addf %304, %305 : vector<16x128xf32>
    %c1_138 = arith.constant 1 : index
    %c0_139 = arith.constant 0 : index
    %c0_140 = arith.constant 0 : index
    %307 = vector.load %arg8[%c1_138, %c0_139, %c0_140] : memref<2x128x128xf32, #tpu.memory_space<vmem>>, vector<1x128x128xf32>
    %308 = vector.shape_cast %307 : vector<1x128x128xf32> to vector<128x128xf32>
    %cst_141 = arith.constant dense<0.000000e+00> : vector<16x128xf32>
    %309 = tpu.matmul %306, %308, %cst_141 {dimension_numbers = #tpu.dot_dimension_numbers<[1], [0], [0], [1], [0, 0, 1, 1], [], []>} : vector<16x128xf32>, vector<128x128xf32>, vector<16x128xf32> -> vector<16x128xf32>
    %c1_142 = arith.constant 1 : index
    %c0_143 = arith.constant 0 : index
    %c0_144 = arith.constant 0 : index
    %310 = vector.load %arg9[%c1_142, %c0_143, %c0_144] : memref<2x1x128xf32, #tpu.memory_space<vmem>>, vector<1x1x128xf32>
    %311 = vector.shape_cast %310 : vector<1x1x128xf32> to vector<1x128xf32>
    %312 = vector.broadcast %311 : vector<1x128xf32> to vector<16x128xf32>
    %313 = arith.addf %309, %312 : vector<16x128xf32>
    %c0_145 = arith.constant 0 : index
    %c0_146 = arith.constant 0 : index
    %314 = vector.load %arg2[%c0_145, %c0_146] : memref<2x128xf32, #tpu.memory_space<vmem>>, vector<1x128xf32>
    %315 = vector.extract_strided_slice %314 {offsets = [0, 0], sizes = [1, 8], strides = [1, 1]} : vector<1x128xf32> to vector<1x8xf32>
    %316 = vector.extract_strided_slice %313 {offsets = [0, 0], sizes = [8, 16], strides = [1, 1]} : vector<16x128xf32> to vector<8x16xf32>
    %317 = vector.extract_strided_slice %313 {offsets = [0, 32], sizes = [8, 16], strides = [1, 1]} : vector<16x128xf32> to vector<8x16xf32>
    %318 = vector.extract_strided_slice %313 {offsets = [0, 64], sizes = [8, 16], strides = [1, 1]} : vector<16x128xf32> to vector<8x16xf32>
    %cst_147 = arith.constant dense<0.000000e+00> : vector<8x8xf32>
    %319 = tpu.matmul %316, %317, %cst_147 {dimension_numbers = #tpu.dot_dimension_numbers<[1], [1], [0], [0], [0, 0, 1, 0], [], []>} : vector<8x16xf32>, vector<8x16xf32>, vector<8x8xf32> -> vector<8x8xf32>
    %cst_148 = arith.constant 2.500000e-01 : f32
    %320 = vector.broadcast %cst_148 : f32 to vector<8x8xf32>
    %321 = arith.mulf %319, %320 : vector<8x8xf32>
    %322 = vector.broadcast %315 : vector<1x8xf32> to vector<8x8xf32>
    %323 = arith.addf %321, %322 : vector<8x8xf32>
    %cst_149 = arith.constant dense<0xFF800000> : vector<8xf32>
    %324 = vector.multi_reduction <maximumf>, %323, %cst_149 [1] : vector<8x8xf32> to vector<8xf32>
    %325 = vector.shape_cast %324 : vector<8xf32> to vector<8x1xf32>
    %326 = vector.broadcast %325 : vector<8x1xf32> to vector<8x8xf32>
    %327 = arith.subf %323, %326 : vector<8x8xf32>
    %328 = math.exp %327 : vector<8x8xf32>
    %cst_150 = arith.constant dense<0.000000e+00> : vector<8xf32>
    %329 = vector.multi_reduction <add>, %328, %cst_150 [1] : vector<8x8xf32> to vector<8xf32>
    %330 = vector.shape_cast %329 : vector<8xf32> to vector<8x1xf32>
    %331 = tpu.reciprocal %330 : vector<8x1xf32> -> vector<8x1xf32>
    %332 = vector.broadcast %331 : vector<8x1xf32> to vector<8x8xf32>
    %333 = arith.mulf %328, %332 : vector<8x8xf32>
    %cst_151 = arith.constant dense<0.000000e+00> : vector<8x16xf32>
    %334 = tpu.matmul %333, %318, %cst_151 {dimension_numbers = #tpu.dot_dimension_numbers<[1], [0], [0], [1], [0, 0, 1, 1], [], []>} : vector<8x8xf32>, vector<8x16xf32>, vector<8x16xf32> -> vector<8x16xf32>
    %335 = vector.extract_strided_slice %313 {offsets = [0, 16], sizes = [8, 16], strides = [1, 1]} : vector<16x128xf32> to vector<8x16xf32>
    %336 = vector.extract_strided_slice %313 {offsets = [0, 48], sizes = [8, 16], strides = [1, 1]} : vector<16x128xf32> to vector<8x16xf32>
    %337 = vector.extract_strided_slice %313 {offsets = [0, 80], sizes = [8, 16], strides = [1, 1]} : vector<16x128xf32> to vector<8x16xf32>
    %cst_152 = arith.constant dense<0.000000e+00> : vector<8x8xf32>
    %338 = tpu.matmul %335, %336, %cst_152 {dimension_numbers = #tpu.dot_dimension_numbers<[1], [1], [0], [0], [0, 0, 1, 0], [], []>} : vector<8x16xf32>, vector<8x16xf32>, vector<8x8xf32> -> vector<8x8xf32>
    %cst_153 = arith.constant 2.500000e-01 : f32
    %339 = vector.broadcast %cst_153 : f32 to vector<8x8xf32>
    %340 = arith.mulf %338, %339 : vector<8x8xf32>
    %341 = vector.broadcast %315 : vector<1x8xf32> to vector<8x8xf32>
    %342 = arith.addf %340, %341 : vector<8x8xf32>
    %cst_154 = arith.constant dense<0xFF800000> : vector<8xf32>
    %343 = vector.multi_reduction <maximumf>, %342, %cst_154 [1] : vector<8x8xf32> to vector<8xf32>
    %344 = vector.shape_cast %343 : vector<8xf32> to vector<8x1xf32>
    %345 = vector.broadcast %344 : vector<8x1xf32> to vector<8x8xf32>
    %346 = arith.subf %342, %345 : vector<8x8xf32>
    %347 = math.exp %346 : vector<8x8xf32>
    %cst_155 = arith.constant dense<0.000000e+00> : vector<8xf32>
    %348 = vector.multi_reduction <add>, %347, %cst_155 [1] : vector<8x8xf32> to vector<8xf32>
    %349 = vector.shape_cast %348 : vector<8xf32> to vector<8x1xf32>
    %350 = tpu.reciprocal %349 : vector<8x1xf32> -> vector<8x1xf32>
    %351 = vector.broadcast %350 : vector<8x1xf32> to vector<8x8xf32>
    %352 = arith.mulf %347, %351 : vector<8x8xf32>
    %cst_156 = arith.constant dense<0.000000e+00> : vector<8x16xf32>
    %353 = tpu.matmul %352, %337, %cst_156 {dimension_numbers = #tpu.dot_dimension_numbers<[1], [0], [0], [1], [0, 0, 1, 1], [], []>} : vector<8x8xf32>, vector<8x16xf32>, vector<8x16xf32> -> vector<8x16xf32>
    %cst_157 = arith.constant 0.000000e+00 : f32
    %354 = vector.broadcast %cst_157 : f32 to vector<8x96xf32>
    %355 = tpu.concatenate %334, %353, %354 in 1 : vector<8x16xf32>, vector<8x16xf32>, vector<8x96xf32> -> vector<8x128xf32>
    %c1_158 = arith.constant 1 : index
    %c0_159 = arith.constant 0 : index
    %356 = vector.load %arg2[%c1_158, %c0_159] : memref<2x128xf32, #tpu.memory_space<vmem>>, vector<1x128xf32>
    %357 = vector.extract_strided_slice %356 {offsets = [0, 0], sizes = [1, 8], strides = [1, 1]} : vector<1x128xf32> to vector<1x8xf32>
    %358 = vector.extract_strided_slice %313 {offsets = [8, 0], sizes = [8, 16], strides = [1, 1]} : vector<16x128xf32> to vector<8x16xf32>
    %359 = vector.extract_strided_slice %313 {offsets = [8, 32], sizes = [8, 16], strides = [1, 1]} : vector<16x128xf32> to vector<8x16xf32>
    %360 = vector.extract_strided_slice %313 {offsets = [8, 64], sizes = [8, 16], strides = [1, 1]} : vector<16x128xf32> to vector<8x16xf32>
    %cst_160 = arith.constant dense<0.000000e+00> : vector<8x8xf32>
    %361 = tpu.matmul %358, %359, %cst_160 {dimension_numbers = #tpu.dot_dimension_numbers<[1], [1], [0], [0], [0, 0, 1, 0], [], []>} : vector<8x16xf32>, vector<8x16xf32>, vector<8x8xf32> -> vector<8x8xf32>
    %cst_161 = arith.constant 2.500000e-01 : f32
    %362 = vector.broadcast %cst_161 : f32 to vector<8x8xf32>
    %363 = arith.mulf %361, %362 : vector<8x8xf32>
    %364 = vector.broadcast %357 : vector<1x8xf32> to vector<8x8xf32>
    %365 = arith.addf %363, %364 : vector<8x8xf32>
    %cst_162 = arith.constant dense<0xFF800000> : vector<8xf32>
    %366 = vector.multi_reduction <maximumf>, %365, %cst_162 [1] : vector<8x8xf32> to vector<8xf32>
    %367 = vector.shape_cast %366 : vector<8xf32> to vector<8x1xf32>
    %368 = vector.broadcast %367 : vector<8x1xf32> to vector<8x8xf32>
    %369 = arith.subf %365, %368 : vector<8x8xf32>
    %370 = math.exp %369 : vector<8x8xf32>
    %cst_163 = arith.constant dense<0.000000e+00> : vector<8xf32>
    %371 = vector.multi_reduction <add>, %370, %cst_163 [1] : vector<8x8xf32> to vector<8xf32>
    %372 = vector.shape_cast %371 : vector<8xf32> to vector<8x1xf32>
    %373 = tpu.reciprocal %372 : vector<8x1xf32> -> vector<8x1xf32>
    %374 = vector.broadcast %373 : vector<8x1xf32> to vector<8x8xf32>
    %375 = arith.mulf %370, %374 : vector<8x8xf32>
    %cst_164 = arith.constant dense<0.000000e+00> : vector<8x16xf32>
    %376 = tpu.matmul %375, %360, %cst_164 {dimension_numbers = #tpu.dot_dimension_numbers<[1], [0], [0], [1], [0, 0, 1, 1], [], []>} : vector<8x8xf32>, vector<8x16xf32>, vector<8x16xf32> -> vector<8x16xf32>
    %377 = vector.extract_strided_slice %313 {offsets = [8, 16], sizes = [8, 16], strides = [1, 1]} : vector<16x128xf32> to vector<8x16xf32>
    %378 = vector.extract_strided_slice %313 {offsets = [8, 48], sizes = [8, 16], strides = [1, 1]} : vector<16x128xf32> to vector<8x16xf32>
    %379 = vector.extract_strided_slice %313 {offsets = [8, 80], sizes = [8, 16], strides = [1, 1]} : vector<16x128xf32> to vector<8x16xf32>
    %cst_165 = arith.constant dense<0.000000e+00> : vector<8x8xf32>
    %380 = tpu.matmul %377, %378, %cst_165 {dimension_numbers = #tpu.dot_dimension_numbers<[1], [1], [0], [0], [0, 0, 1, 0], [], []>} : vector<8x16xf32>, vector<8x16xf32>, vector<8x8xf32> -> vector<8x8xf32>
    %cst_166 = arith.constant 2.500000e-01 : f32
    %381 = vector.broadcast %cst_166 : f32 to vector<8x8xf32>
    %382 = arith.mulf %380, %381 : vector<8x8xf32>
    %383 = vector.broadcast %357 : vector<1x8xf32> to vector<8x8xf32>
    %384 = arith.addf %382, %383 : vector<8x8xf32>
    %cst_167 = arith.constant dense<0xFF800000> : vector<8xf32>
    %385 = vector.multi_reduction <maximumf>, %384, %cst_167 [1] : vector<8x8xf32> to vector<8xf32>
    %386 = vector.shape_cast %385 : vector<8xf32> to vector<8x1xf32>
    %387 = vector.broadcast %386 : vector<8x1xf32> to vector<8x8xf32>
    %388 = arith.subf %384, %387 : vector<8x8xf32>
    %389 = math.exp %388 : vector<8x8xf32>
    %cst_168 = arith.constant dense<0.000000e+00> : vector<8xf32>
    %390 = vector.multi_reduction <add>, %389, %cst_168 [1] : vector<8x8xf32> to vector<8xf32>
    %391 = vector.shape_cast %390 : vector<8xf32> to vector<8x1xf32>
    %392 = tpu.reciprocal %391 : vector<8x1xf32> -> vector<8x1xf32>
    %393 = vector.broadcast %392 : vector<8x1xf32> to vector<8x8xf32>
    %394 = arith.mulf %389, %393 : vector<8x8xf32>
    %cst_169 = arith.constant dense<0.000000e+00> : vector<8x16xf32>
    %395 = tpu.matmul %394, %379, %cst_169 {dimension_numbers = #tpu.dot_dimension_numbers<[1], [0], [0], [1], [0, 0, 1, 1], [], []>} : vector<8x8xf32>, vector<8x16xf32>, vector<8x16xf32> -> vector<8x16xf32>
    %cst_170 = arith.constant 0.000000e+00 : f32
    %396 = vector.broadcast %cst_170 : f32 to vector<8x96xf32>
    %397 = tpu.concatenate %376, %395, %396 in 1 : vector<8x16xf32>, vector<8x16xf32>, vector<8x96xf32> -> vector<8x128xf32>
    %398 = tpu.concatenate %355, %397 in 0 : vector<8x128xf32>, vector<8x128xf32> -> vector<16x128xf32>
    %c1_171 = arith.constant 1 : index
    %c0_172 = arith.constant 0 : index
    %c0_173 = arith.constant 0 : index
    %399 = vector.load %arg10[%c1_171, %c0_172, %c0_173] : memref<2x128x128xf32, #tpu.memory_space<vmem>>, vector<1x128x128xf32>
    %400 = vector.shape_cast %399 : vector<1x128x128xf32> to vector<128x128xf32>
    %cst_174 = arith.constant dense<0.000000e+00> : vector<16x128xf32>
    %401 = tpu.matmul %398, %400, %cst_174 {dimension_numbers = #tpu.dot_dimension_numbers<[1], [0], [0], [1], [0, 0, 1, 1], [], []>} : vector<16x128xf32>, vector<128x128xf32>, vector<16x128xf32> -> vector<16x128xf32>
    %c1_175 = arith.constant 1 : index
    %c0_176 = arith.constant 0 : index
    %c0_177 = arith.constant 0 : index
    %402 = vector.load %arg11[%c1_175, %c0_176, %c0_177] : memref<2x1x128xf32, #tpu.memory_space<vmem>>, vector<1x1x128xf32>
    %403 = vector.shape_cast %402 : vector<1x1x128xf32> to vector<1x128xf32>
    %404 = vector.broadcast %403 : vector<1x128xf32> to vector<16x128xf32>
    %405 = arith.addf %401, %404 : vector<16x128xf32>
    %406 = arith.addf %306, %405 : vector<16x128xf32>
    %c1_178 = arith.constant 1 : index
    %c0_179 = arith.constant 0 : index
    %c0_180 = arith.constant 0 : index
    %407 = vector.load %arg12[%c1_178, %c0_179, %c0_180] : memref<2x1x128xf32, #tpu.memory_space<vmem>>, vector<1x1x128xf32>
    %408 = vector.shape_cast %407 : vector<1x1x128xf32> to vector<1x128xf32>
    %c1_181 = arith.constant 1 : index
    %c0_182 = arith.constant 0 : index
    %c0_183 = arith.constant 0 : index
    %409 = vector.load %arg13[%c1_181, %c0_182, %c0_183] : memref<2x1x128xf32, #tpu.memory_space<vmem>>, vector<1x1x128xf32>
    %410 = vector.shape_cast %409 : vector<1x1x128xf32> to vector<1x128xf32>
    %cst_184 = arith.constant dense<0.000000e+00> : vector<16xf32>
    %411 = vector.multi_reduction <add>, %406, %cst_184 [1] : vector<16x128xf32> to vector<16xf32>
    %412 = vector.shape_cast %411 : vector<16xf32> to vector<16x1xf32>
    %cst_185 = arith.constant 3.200000e+01 : f32
    %413 = vector.broadcast %cst_185 : f32 to vector<16x1xf32>
    %414 = arith.divf %412, %413 : vector<16x1xf32>
    %415 = vector.broadcast %414 : vector<16x1xf32> to vector<16x128xf32>
    %416 = arith.subf %406, %415 : vector<16x128xf32>
    %417 = vector.broadcast %4 : vector<1x128xf32> to vector<16x128xf32>
    %418 = arith.mulf %416, %417 : vector<16x128xf32>
    %419 = arith.mulf %418, %418 : vector<16x128xf32>
    %cst_186 = arith.constant dense<0.000000e+00> : vector<16xf32>
    %420 = vector.multi_reduction <add>, %419, %cst_186 [1] : vector<16x128xf32> to vector<16xf32>
    %421 = vector.shape_cast %420 : vector<16xf32> to vector<16x1xf32>
    %cst_187 = arith.constant 3.200000e+01 : f32
    %422 = vector.broadcast %cst_187 : f32 to vector<16x1xf32>
    %423 = arith.divf %421, %422 : vector<16x1xf32>
    %cst_188 = arith.constant 9.99999996E-13 : f32
    %424 = vector.broadcast %cst_188 : f32 to vector<16x1xf32>
    %425 = arith.addf %423, %424 : vector<16x1xf32>
    %426 = math.rsqrt %425 : vector<16x1xf32>
    %427 = vector.broadcast %426 : vector<16x1xf32> to vector<16x128xf32>
    %428 = arith.mulf %418, %427 : vector<16x128xf32>
    %429 = vector.broadcast %408 : vector<1x128xf32> to vector<16x128xf32>
    %430 = arith.mulf %428, %429 : vector<16x128xf32>
    %431 = vector.broadcast %410 : vector<1x128xf32> to vector<16x128xf32>
    %432 = arith.addf %430, %431 : vector<16x128xf32>
    %c1_189 = arith.constant 1 : index
    %c0_190 = arith.constant 0 : index
    %c0_191 = arith.constant 0 : index
    %433 = vector.load %arg14[%c1_189, %c0_190, %c0_191] : memref<2x128x128xf32, #tpu.memory_space<vmem>>, vector<1x128x128xf32>
    %434 = vector.shape_cast %433 : vector<1x128x128xf32> to vector<128x128xf32>
    %cst_192 = arith.constant dense<0.000000e+00> : vector<16x128xf32>
    %435 = tpu.matmul %432, %434, %cst_192 {dimension_numbers = #tpu.dot_dimension_numbers<[1], [0], [0], [1], [0, 0, 1, 1], [], []>} : vector<16x128xf32>, vector<128x128xf32>, vector<16x128xf32> -> vector<16x128xf32>
    %c1_193 = arith.constant 1 : index
    %c0_194 = arith.constant 0 : index
    %c0_195 = arith.constant 0 : index
    %436 = vector.load %arg15[%c1_193, %c0_194, %c0_195] : memref<2x1x128xf32, #tpu.memory_space<vmem>>, vector<1x1x128xf32>
    %437 = vector.shape_cast %436 : vector<1x1x128xf32> to vector<1x128xf32>
    %438 = vector.broadcast %437 : vector<1x128xf32> to vector<16x128xf32>
    %439 = arith.addf %435, %438 : vector<16x128xf32>
    %cst_196 = arith.constant 5.000000e-01 : f32
    %440 = vector.broadcast %cst_196 : f32 to vector<16x128xf32>
    %441 = arith.mulf %440, %439 : vector<16x128xf32>
    %cst_197 = arith.constant 4.471500e-02 : f32
    %442 = vector.broadcast %cst_197 : f32 to vector<16x128xf32>
    %443 = arith.mulf %442, %439 : vector<16x128xf32>
    %444 = arith.mulf %443, %439 : vector<16x128xf32>
    %445 = arith.mulf %444, %439 : vector<16x128xf32>
    %446 = arith.addf %439, %445 : vector<16x128xf32>
    %cst_198 = arith.constant 0.797884583 : f32
    %447 = vector.broadcast %cst_198 : f32 to vector<16x128xf32>
    %448 = arith.mulf %447, %446 : vector<16x128xf32>
    %449 = math.tanh %448 : vector<16x128xf32>
    %cst_199 = arith.constant 1.000000e+00 : f32
    %450 = vector.broadcast %cst_199 : f32 to vector<16x128xf32>
    %451 = arith.addf %450, %449 : vector<16x128xf32>
    %452 = arith.mulf %441, %451 : vector<16x128xf32>
    %c1_200 = arith.constant 1 : index
    %c0_201 = arith.constant 0 : index
    %c0_202 = arith.constant 0 : index
    %453 = vector.load %arg16[%c1_200, %c0_201, %c0_202] : memref<2x128x128xf32, #tpu.memory_space<vmem>>, vector<1x128x128xf32>
    %454 = vector.shape_cast %453 : vector<1x128x128xf32> to vector<128x128xf32>
    %cst_203 = arith.constant dense<0.000000e+00> : vector<16x128xf32>
    %455 = tpu.matmul %452, %454, %cst_203 {dimension_numbers = #tpu.dot_dimension_numbers<[1], [0], [0], [1], [0, 0, 1, 1], [], []>} : vector<16x128xf32>, vector<128x128xf32>, vector<16x128xf32> -> vector<16x128xf32>
    %c1_204 = arith.constant 1 : index
    %c0_205 = arith.constant 0 : index
    %c0_206 = arith.constant 0 : index
    %456 = vector.load %arg17[%c1_204, %c0_205, %c0_206] : memref<2x1x128xf32, #tpu.memory_space<vmem>>, vector<1x1x128xf32>
    %457 = vector.shape_cast %456 : vector<1x1x128xf32> to vector<1x128xf32>
    %458 = vector.broadcast %457 : vector<1x128xf32> to vector<16x128xf32>
    %459 = arith.addf %455, %458 : vector<16x128xf32>
    %460 = arith.addf %432, %459 : vector<16x128xf32>
    %c1_207 = arith.constant 1 : index
    %c0_208 = arith.constant 0 : index
    %c0_209 = arith.constant 0 : index
    %461 = vector.load %arg18[%c1_207, %c0_208, %c0_209] : memref<2x1x128xf32, #tpu.memory_space<vmem>>, vector<1x1x128xf32>
    %462 = vector.shape_cast %461 : vector<1x1x128xf32> to vector<1x128xf32>
    %c1_210 = arith.constant 1 : index
    %c0_211 = arith.constant 0 : index
    %c0_212 = arith.constant 0 : index
    %463 = vector.load %arg19[%c1_210, %c0_211, %c0_212] : memref<2x1x128xf32, #tpu.memory_space<vmem>>, vector<1x1x128xf32>
    %464 = vector.shape_cast %463 : vector<1x1x128xf32> to vector<1x128xf32>
    %cst_213 = arith.constant dense<0.000000e+00> : vector<16xf32>
    %465 = vector.multi_reduction <add>, %460, %cst_213 [1] : vector<16x128xf32> to vector<16xf32>
    %466 = vector.shape_cast %465 : vector<16xf32> to vector<16x1xf32>
    %cst_214 = arith.constant 3.200000e+01 : f32
    %467 = vector.broadcast %cst_214 : f32 to vector<16x1xf32>
    %468 = arith.divf %466, %467 : vector<16x1xf32>
    %469 = vector.broadcast %468 : vector<16x1xf32> to vector<16x128xf32>
    %470 = arith.subf %460, %469 : vector<16x128xf32>
    %471 = vector.broadcast %4 : vector<1x128xf32> to vector<16x128xf32>
    %472 = arith.mulf %470, %471 : vector<16x128xf32>
    %473 = arith.mulf %472, %472 : vector<16x128xf32>
    %cst_215 = arith.constant dense<0.000000e+00> : vector<16xf32>
    %474 = vector.multi_reduction <add>, %473, %cst_215 [1] : vector<16x128xf32> to vector<16xf32>
    %475 = vector.shape_cast %474 : vector<16xf32> to vector<16x1xf32>
    %cst_216 = arith.constant 3.200000e+01 : f32
    %476 = vector.broadcast %cst_216 : f32 to vector<16x1xf32>
    %477 = arith.divf %475, %476 : vector<16x1xf32>
    %cst_217 = arith.constant 9.99999996E-13 : f32
    %478 = vector.broadcast %cst_217 : f32 to vector<16x1xf32>
    %479 = arith.addf %477, %478 : vector<16x1xf32>
    %480 = math.rsqrt %479 : vector<16x1xf32>
    %481 = vector.broadcast %480 : vector<16x1xf32> to vector<16x128xf32>
    %482 = arith.mulf %472, %481 : vector<16x128xf32>
    %483 = vector.broadcast %462 : vector<1x128xf32> to vector<16x128xf32>
    %484 = arith.mulf %482, %483 : vector<16x128xf32>
    %485 = vector.broadcast %464 : vector<1x128xf32> to vector<16x128xf32>
    %486 = arith.addf %484, %485 : vector<16x128xf32>
    %487 = vector.extract_strided_slice %486 {offsets = [0, 0], sizes = [1, 128], strides = [1, 1]} : vector<16x128xf32> to vector<1x128xf32>
    %488 = vector.extract_strided_slice %486 {offsets = [8, 0], sizes = [1, 128], strides = [1, 1]} : vector<16x128xf32> to vector<1x128xf32>
    %489 = tpu.concatenate %487, %488 in 0 : vector<1x128xf32>, vector<1x128xf32> -> vector<2x128xf32>
    %c0_218 = arith.constant 0 : index
    %c0_219 = arith.constant 0 : index
    %490 = vector.load %arg20[%c0_218, %c0_219] : memref<128x128xf32, #tpu.memory_space<vmem>>, vector<128x128xf32>
    %cst_220 = arith.constant dense<0.000000e+00> : vector<2x128xf32>
    %491 = tpu.matmul %489, %490, %cst_220 {dimension_numbers = #tpu.dot_dimension_numbers<[1], [0], [0], [1], [0, 0, 1, 1], [], []>} : vector<2x128xf32>, vector<128x128xf32>, vector<2x128xf32> -> vector<2x128xf32>
    %c0_221 = arith.constant 0 : index
    %c0_222 = arith.constant 0 : index
    %492 = vector.load %arg21[%c0_221, %c0_222] : memref<1x128xf32, #tpu.memory_space<vmem>>, vector<1x128xf32>
    %493 = vector.broadcast %492 : vector<1x128xf32> to vector<2x128xf32>
    %494 = arith.addf %491, %493 : vector<2x128xf32>
    %495 = math.tanh %494 : vector<2x128xf32>
    %c0_223 = arith.constant 0 : index
    %c0_224 = arith.constant 0 : index
    %496 = vector.load %arg22[%c0_223, %c0_224] : memref<128x512xf32, #tpu.memory_space<vmem>>, vector<128x512xf32>
    %cst_225 = arith.constant dense<0.000000e+00> : vector<2x512xf32>
    %497 = tpu.matmul %495, %496, %cst_225 {dimension_numbers = #tpu.dot_dimension_numbers<[1], [0], [0], [1], [0, 0, 1, 1], [], []>} : vector<2x128xf32>, vector<128x512xf32>, vector<2x512xf32> -> vector<2x512xf32>
    %c0_226 = arith.constant 0 : index
    %c0_227 = arith.constant 0 : index
    %498 = vector.load %arg23[%c0_226, %c0_227] : memref<1x512xf32, #tpu.memory_space<vmem>>, vector<1x512xf32>
    %499 = vector.broadcast %498 : vector<1x512xf32> to vector<2x512xf32>
    %500 = arith.addf %497, %499 : vector<2x512xf32>
    %cst_228 = arith.constant 0.000000e+00 : f32
    %501 = vector.broadcast %cst_228 : f32 to vector<2x512xf32>
    %502 = arith.maximumf %500, %501 : vector<2x512xf32>
    %c0_229 = arith.constant 0 : index
    %c0_230 = arith.constant 0 : index
    %503 = vector.load %arg24[%c0_229, %c0_230] : memref<512x128xf32, #tpu.memory_space<vmem>>, vector<512x128xf32>
    %cst_231 = arith.constant dense<0.000000e+00> : vector<2x128xf32>
    %504 = tpu.matmul %502, %503, %cst_231 {dimension_numbers = #tpu.dot_dimension_numbers<[1], [0], [0], [1], [0, 0, 1, 1], [], []>} : vector<2x512xf32>, vector<512x128xf32>, vector<2x128xf32> -> vector<2x128xf32>
    %c0_232 = arith.constant 0 : index
    %c0_233 = arith.constant 0 : index
    %505 = vector.load %arg25[%c0_232, %c0_233] : memref<1x128xf32, #tpu.memory_space<vmem>>, vector<1x128xf32>
    %506 = vector.broadcast %505 : vector<1x128xf32> to vector<2x128xf32>
    %507 = arith.addf %504, %506 : vector<2x128xf32>
    %508 = math.tanh %507 : vector<2x128xf32>
    %c0_234 = arith.constant 0 : index
    %c0_235 = arith.constant 0 : index
    %509 = vector.load %arg26[%c0_234, %c0_235] : memref<2x128xf32, #tpu.memory_space<vmem>>, vector<2x128xf32>
    tpu.vector_store %arg26[%c0_234, %c0_235], %508 {strides = array<i32>} : memref<2x128xf32, #tpu.memory_space<vmem>>, vector<2x128xf32>,
    return
  }
  func.func @transform_0(%arg0: i32, %arg1: memref<16xi32, #tpu.memory_space<smem>>) -> (i32, i32) {
    %c0_i32 = arith.constant 0 : i32
    %c0_i32_0 = arith.constant 0 : i32
    %c0_i32_1 = arith.constant 0 : i32
    return %c0_i32, %c0_i32_0 : i32, i32
  }
  func.func @transform_1(%arg0: i32, %arg1: memref<16xi32, #tpu.memory_space<smem>>) -> (i32, i32) {
    %c0_i32 = arith.constant 0 : i32
    %c0_i32_0 = arith.constant 0 : i32
    %c0_i32_1 = arith.constant 0 : i32
    return %c0_i32, %c0_i32_0 : i32, i32
  }
  func.func @transform_2(%arg0: i32, %arg1: memref<16xi32, #tpu.memory_space<smem>>) -> (i32, i32) {
    %c0_i32 = arith.constant 0 : i32
    %c0_i32_0 = arith.constant 0 : i32
    %c0_i32_1 = arith.constant 0 : i32
    return %c0_i32, %c0_i32_0 : i32, i32
  }
  func.func @transform_3(%arg0: i32, %arg1: memref<16xi32, #tpu.memory_space<smem>>) -> (i32, i32) {
    %c0_i32 = arith.constant 0 : i32
    %c0_i32_0 = arith.constant 0 : i32
    %c0_i32_1 = arith.constant 0 : i32
    return %c0_i32, %c0_i32_0 : i32, i32
  }
  func.func @transform_4(%arg0: i32, %arg1: memref<16xi32, #tpu.memory_space<smem>>) -> (i32, i32) {
    %c0_i32 = arith.constant 0 : i32
    %c0_i32_0 = arith.constant 0 : i32
    %c0_i32_1 = arith.constant 0 : i32
    return %c0_i32, %c0_i32_0 : i32, i32
  }
  func.func @transform_5(%arg0: i32, %arg1: memref<16xi32, #tpu.memory_space<smem>>) -> (i32, i32) {
    %c0_i32 = arith.constant 0 : i32
    %c0_i32_0 = arith.constant 0 : i32
    %c0_i32_1 = arith.constant 0 : i32
    return %c0_i32, %c0_i32_0 : i32, i32
  }
  func.func @transform_6(%arg0: i32, %arg1: memref<16xi32, #tpu.memory_space<smem>>) -> (i32, i32, i32) {
    %c0_i32 = arith.constant 0 : i32
    %c0_i32_0 = arith.constant 0 : i32
    %c0_i32_1 = arith.constant 0 : i32
    %c0_i32_2 = arith.constant 0 : i32
    return %c0_i32, %c0_i32_0, %c0_i32_1 : i32, i32, i32
  }
  func.func @transform_7(%arg0: i32, %arg1: memref<16xi32, #tpu.memory_space<smem>>) -> (i32, i32, i32) {
    %c0_i32 = arith.constant 0 : i32
    %c0_i32_0 = arith.constant 0 : i32
    %c0_i32_1 = arith.constant 0 : i32
    %c0_i32_2 = arith.constant 0 : i32
    return %c0_i32, %c0_i32_0, %c0_i32_1 : i32, i32, i32
  }
  func.func @transform_8(%arg0: i32, %arg1: memref<16xi32, #tpu.memory_space<smem>>) -> (i32, i32, i32) {
    %c0_i32 = arith.constant 0 : i32
    %c0_i32_0 = arith.constant 0 : i32
    %c0_i32_1 = arith.constant 0 : i32
    %c0_i32_2 = arith.constant 0 : i32
    return %c0_i32, %c0_i32_0, %c0_i32_1 : i32, i32, i32
  }
  func.func @transform_9(%arg0: i32, %arg1: memref<16xi32, #tpu.memory_space<smem>>) -> (i32, i32, i32) {
    %c0_i32 = arith.constant 0 : i32
    %c0_i32_0 = arith.constant 0 : i32
    %c0_i32_1 = arith.constant 0 : i32
    %c0_i32_2 = arith.constant 0 : i32
    return %c0_i32, %c0_i32_0, %c0_i32_1 : i32, i32, i32
  }
  func.func @transform_10(%arg0: i32, %arg1: memref<16xi32, #tpu.memory_space<smem>>) -> (i32, i32, i32) {
    %c0_i32 = arith.constant 0 : i32
    %c0_i32_0 = arith.constant 0 : i32
    %c0_i32_1 = arith.constant 0 : i32
    %c0_i32_2 = arith.constant 0 : i32
    return %c0_i32, %c0_i32_0, %c0_i32_1 : i32, i32, i32
  }
  func.func @transform_11(%arg0: i32, %arg1: memref<16xi32, #tpu.memory_space<smem>>) -> (i32, i32, i32) {
    %c0_i32 = arith.constant 0 : i32
    %c0_i32_0 = arith.constant 0 : i32
    %c0_i32_1 = arith.constant 0 : i32
    %c0_i32_2 = arith.constant 0 : i32
    return %c0_i32, %c0_i32_0, %c0_i32_1 : i32, i32, i32
  }
  func.func @transform_12(%arg0: i32, %arg1: memref<16xi32, #tpu.memory_space<smem>>) -> (i32, i32, i32) {
    %c0_i32 = arith.constant 0 : i32
    %c0_i32_0 = arith.constant 0 : i32
    %c0_i32_1 = arith.constant 0 : i32
    %c0_i32_2 = arith.constant 0 : i32
    return %c0_i32, %c0_i32_0, %c0_i32_1 : i32, i32, i32
  }
  func.func @transform_13(%arg0: i32, %arg1: memref<16xi32, #tpu.memory_space<smem>>) -> (i32, i32, i32) {
    %c0_i32 = arith.constant 0 : i32
    %c0_i32_0 = arith.constant 0 : i32
    %c0_i32_1 = arith.constant 0 : i32
    %c0_i32_2 = arith.constant 0 : i32
    return %c0_i32, %c0_i32_0, %c0_i32_1 : i32, i32, i32
  }
  func.func @transform_14(%arg0: i32, %arg1: memref<16xi32, #tpu.memory_space<smem>>) -> (i32, i32, i32) {
    %c0_i32 = arith.constant 0 : i32
    %c0_i32_0 = arith.constant 0 : i32
    %c0_i32_1 = arith.constant 0 : i32
    %c0_i32_2 = arith.constant 0 : i32
    return %c0_i32, %c0_i32_0, %c0_i32_1 : i32, i32, i32
  }
  func.func @transform_15(%arg0: i32, %arg1: memref<16xi32, #tpu.memory_space<smem>>) -> (i32, i32, i32) {
    %c0_i32 = arith.constant 0 : i32
    %c0_i32_0 = arith.constant 0 : i32
    %c0_i32_1 = arith.constant 0 : i32
    %c0_i32_2 = arith.constant 0 : i32
    return %c0_i32, %c0_i32_0, %c0_i32_1 : i32, i32, i32
  }
  func.func @transform_16(%arg0: i32, %arg1: memref<16xi32, #tpu.memory_space<smem>>) -> (i32, i32, i32) {
    %c0_i32 = arith.constant 0 : i32
    %c0_i32_0 = arith.constant 0 : i32
    %c0_i32_1 = arith.constant 0 : i32
    %c0_i32_2 = arith.constant 0 : i32
    return %c0_i32, %c0_i32_0, %c0_i32_1 : i32, i32, i32
  }
  func.func @transform_17(%arg0: i32, %arg1: memref<16xi32, #tpu.memory_space<smem>>) -> (i32, i32, i32) {
    %c0_i32 = arith.constant 0 : i32
    %c0_i32_0 = arith.constant 0 : i32
    %c0_i32_1 = arith.constant 0 : i32
    %c0_i32_2 = arith.constant 0 : i32
    return %c0_i32, %c0_i32_0, %c0_i32_1 : i32, i32, i32
  }
  func.func @transform_18(%arg0: i32, %arg1: memref<16xi32, #tpu.memory_space<smem>>) -> (i32, i32) {
    %c0_i32 = arith.constant 0 : i32
    %c0_i32_0 = arith.constant 0 : i32
    %c0_i32_1 = arith.constant 0 : i32
    return %c0_i32, %c0_i32_0 : i32, i32
  }
  func.func @transform_19(%arg0: i32, %arg1: memref<16xi32, #tpu.memory_space<smem>>) -> (i32, i32) {
    %c0_i32 = arith.constant 0 : i32
    %c0_i32_0 = arith.constant 0 : i32
    %c0_i32_1 = arith.constant 0 : i32
    return %c0_i32, %c0_i32_0 : i32, i32
  }
  func.func @transform_20(%arg0: i32, %arg1: memref<16xi32, #tpu.memory_space<smem>>) -> (i32, i32) {
    %c0_i32 = arith.constant 0 : i32
    %c0_i32_0 = arith.constant 0 : i32
    %c0_i32_1 = arith.constant 0 : i32
    return %c0_i32, %c0_i32_0 : i32, i32
  }
  func.func @transform_21(%arg0: i32, %arg1: memref<16xi32, #tpu.memory_space<smem>>) -> (i32, i32) {
    %c0_i32 = arith.constant 0 : i32
    %c0_i32_0 = arith.constant 0 : i32
    %c0_i32_1 = arith.constant 0 : i32
    return %c0_i32, %c0_i32_0 : i32, i32
  }
  func.func @transform_22(%arg0: i32, %arg1: memref<16xi32, #tpu.memory_space<smem>>) -> (i32, i32) {
    %c0_i32 = arith.constant 0 : i32
    %c0_i32_0 = arith.constant 0 : i32
    %c0_i32_1 = arith.constant 0 : i32
    return %c0_i32, %c0_i32_0 : i32, i32
  }
  func.func @transform_23(%arg0: i32, %arg1: memref<16xi32, #tpu.memory_space<smem>>) -> (i32, i32) {
    %c0_i32 = arith.constant 0 : i32
    %c0_i32_0 = arith.constant 0 : i32
    %c0_i32_1 = arith.constant 0 : i32
    return %c0_i32, %c0_i32_0 : i32, i32
  }
  func.func @transform_24(%arg0: i32, %arg1: memref<16xi32, #tpu.memory_space<smem>>) -> (i32, i32) {
    %c0_i32 = arith.constant 0 : i32
    %c0_i32_0 = arith.constant 0 : i32
    %c0_i32_1 = arith.constant 0 : i32
    return %c0_i32, %c0_i32_0 : i32, i32
  }
}

</mosaic_0001>

<bundles_post_ra>
// kernel: _lambda_.1
= control target key start
LH: loop header
LB: loop body
LE: loop exit
PB: predicated region body
PF: predicated region fallthrough
CT: control target
= control target key end

     0   :  { %s2712_s30 = smov [#allocation3]   ;;  %s3324_s0 = inlined_call_operand.vmem [shape: s32[16], index: 0, kind: input, shape index: {}]   ;;  %s3325_s1 = inlined_call_operand.vmem [shape: f32[2,128], index: 1, kind: input, shape index: {}]   ;;  %s3326_s2 = inlined_call_operand.hbm [shape: f32[128,128], index: 2, kind: input, shape index: {}]   ;;  %s3327_s3 = inlined_call_operand.hbm [shape: f32[32,128], index: 3, kind: input, shape index: {}]   ;;  %s3328_s4 = inlined_call_operand.vmem [shape: f32[2,128], index: 4, kind: input, shape index: {}]   ;;  %s3329_s5 = inlined_call_operand.hbm [shape: f32[1,128], index: 5, kind: input, shape index: {}]   ;;  %s3330_s6 = inlined_call_operand.hbm [shape: f32[1,128], index: 6, kind: input, shape index: {}]   ;;  %s3331_s7 = inlined_call_operand.hbm [shape: f32[2,128,128], index: 7, kind: input, shape index: {}]   ;;  %s3332_s8 = inlined_call_operand.vmem [shape: f32[2,1,128], index: 8, kind: input, shape index: {}]   ;;  %s3333_s9 = inlined_call_operand.hbm [shape: f32[2,128,128], index: 9, kind: input, shape index: {}]   ;;  %s3334_s10 = inlined_call_operand.vmem [shape: f32[2,1,128], index: 10, kind: input, shape index: {}]   ;;  %s3335_s11 = inlined_call_operand.vmem [shape: f32[2,1,128], index: 11, kind: input, shape index: {}]   ;;  %s3336_s12 = inlined_call_operand.vmem [shape: f32[2,1,128], index: 12, kind: input, shape index: {}]   ;;  %s3337_s13 = inlined_call_operand.hbm [shape: f32[2,128,128], index: 13, kind: input, shape index: {}]   ;;  %s3338_s14 = inlined_call_operand.hbm [shape: f32[2,1,128], index: 14, kind: input, shape index: {}]   ;;  %s3339_s15 = inlined_call_operand.hbm [shape: f32[2,128,128], index: 15, kind: input, shape index: {}]   ;;  %s3340_s16 = inlined_call_operand.hbm [shape: f32[2,1,128], index: 16, kind: input, shape index: {}]   ;;  %s3341_s17 = inlined_call_operand.vmem [shape: f32[2,1,128], index: 17, kind: input, shape index: {}]   ;;  %s3342_s18 = inlined_call_operand.vmem [shape: f32[2,1,128], index: 18, kind: input, shape index: {}]   ;;  %s3343_s19 = inlined_call_operand.hbm [shape: f32[128,128], index: 19, kind: input, shape index: {}]   ;;  %s3344_s20 = inlined_call_operand.vmem [shape: f32[1,128], index: 20, kind: input, shape index: {}]   ;;  %s3345_s21 = inlined_call_operand.hbm [shape: f32[128,512], index: 21, kind: input, shape index: {}]   ;;  %s3346_s22 = inlined_call_operand.vmem [shape: f32[1,512], index: 22, kind: input, shape index: {}]   ;;  %s3347_s23 = inlined_call_operand.hbm [shape: f32[512,128], index: 23, kind: input, shape index: {}]   ;;  %s3348_s24 = inlined_call_operand.hbm [shape: f32[1,128], index: 24, kind: input, shape index: {}]   ;;  %s3349_s25 = inlined_call_operand.vmem [shape: f32[2,128], index: 25, kind: output, shape index: {}]  }
   0x1   :  { %3357 = sst [smem:[#allocation35_spill]] %s3324_s0 }
   0x2   :  { %3358 = sst [smem:[#allocation36_spill]] %s3325_s1 }
   0x3   :  { %3359 = sst [smem:[#allocation37_spill]] %s3326_s2 }
   0x4   :  { %3360 = sst [smem:[#allocation38_spill]] %s3327_s3 }
   0x5   :  { %3361 = sst [smem:[#allocation39_spill]] %s3328_s4 }
   0x6   :  { %3362 = sst [smem:[#allocation40_spill]] %s3329_s5 }
   0x7   :  { %3363 = sst [smem:[#allocation41_spill]] %s3330_s6 }
   0x8   :  { %3364 = sst [smem:[#allocation42_spill]] %s3331_s7 }
   0x9   :  { %3365 = sst [smem:[#allocation43_spill]] %s3332_s8 }
   0xa   :  { %3366 = sst [smem:[#allocation44_spill]] %s3333_s9 }
   0xb   :  { %3367 = sst [smem:[#allocation45_spill]] %s3342_s18 }
   0xc   :  { %s3368_s6 = sld [smem:[#allocation35_spill]] }
  0x12   :  { %s31_s18 = sshll.u32 %s3368_s6, 4  ;;  %s32_s18 = int_to_ptr.vmem [resolvable:$true] %s31_s18 }
  0x13   :  { %34 = dma.vmem_to_smem %s32_s18, 16, %s2712_s30, [#allocation2] }
  0x14   :  { %2694 = dma.done.wait [#allocation2], 16 }
  0x15   :  { %2695 = vsyncadd [#allocation2], 4294967280 }
  0x16   :  { %37 = sfence }
  0x17   :  { %38 = vsyncpa [#allocation5], 0 }
  0x18   :  { %39 = vsyncpa [#allocation7], 0 }
  0x19   :  { %40 = vsyncpa [#allocation10], 0 }
  0x1a   :  { %41 = vsyncpa [#allocation13], 0 }
  0x1b   :  { %42 = vsyncpa [#allocation16], 0 }
  0x1c   :  { %43 = vsyncpa [#allocation19], 0 }
  0x1d   :  { %44 = vsyncpa [#allocation22], 0 }
  0x1e   :  { %45 = vsyncpa [#allocation25], 0  ;;  %s3369_s26 = sld [smem:[#allocation38_spill]]  ;;  %s2713_s8 = smov [#allocation6]  }
  0x1f   :  { %s67_s27 = sshll.u32 %s2713_s8, 4  ;;  %s3370_s28 = sld [smem:[#allocation41_spill]]  ;;  %s68_s27 = int_to_ptr.vmem [resolvable:$true] %s67_s27 }
  0x20   :  { %s3353_s5 = smov 128   ;;  %s3355_s0 = smov 8  }
  0x21   :  { %s2716_s29 = smov [#allocation9]   ;;  %s3371_s7 = sld [smem:[#allocation44_spill]] }
  0x22   :  { %s94_s2 = sshll.u32 %s2716_s29, 4  ;;  %s149_s18 = sshll.u32 %s3338_s14, 4  ;;  %s95_s2 = int_to_ptr.vmem [resolvable:$true] %s94_s2  ;;  %s150_s18 = int_to_ptr.hbm [resolvable:$true] %s149_s18 }
  0x23   :  { %s2717_s4 = smov [#allocation12]   ;;  %s2719_s29 = smov 16  }
  0x24   :  { %s65_s1 = sshll.u32 %s3369_s26, 4  ;;  %s2720_s6 = smov 1   ;;  %s66_s1 = int_to_ptr.hbm [resolvable:$true] %s65_s1 }
  0x25   :  { %s92_s9 = sshll.u32 %s3370_s28, 4  ;;  %s119_s28 = sshll.u32 %s2717_s4, 4  ;;  %s93_s9 = int_to_ptr.hbm [resolvable:$true] %s92_s9  ;;  %s120_s28 = int_to_ptr.vmem [resolvable:$true] %s119_s28 }
  0x26   :  { %73 = dma.hbm_to_vmem [thread:$0]  %s66_s1, 512, %s68_s27, [#allocation7], %s3353_s5, %s3353_s5, %s3355_s0  }
  0x27   :  { %s117_s3 = sshll.u32 %s3371_s7, 4  ;;  %s2718_s1 = smov [#allocation15]   ;;  %s118_s3 = int_to_ptr.hbm [resolvable:$true] %s117_s3 }
  0x28   :  { %97 = dma.hbm_to_vmem [thread:$0]  %s93_s9, 16, %s95_s2, [#allocation10]  }
  0x29   :  { %125 = dma.hbm_to_vmem [thread:$0]  %s118_s3, 4096, %s120_s28, [#allocation13], %s3353_s5, %s3353_s5, %s3355_s0  }
  0x2a   :  { %s151_s27 = sshll.u32 %s2718_s1, 4  ;;  %s175_s14 = sshll.u32 %s3340_s16, 4  ;;  %s152_s27 = int_to_ptr.vmem [resolvable:$true] %s151_s27  ;;  %s176_s14 = int_to_ptr.hbm [resolvable:$true] %s175_s14 }
  0x2b   :  { %157 = dma.hbm_to_vmem [thread:$0]  %s150_s18, 32, %s152_s27, [#allocation16], %s2719_s29, %s2719_s29, %s2720_s6  }
  0x2c   :  { %s2721_s30 = smov [#allocation18]   ;;  %s207_s3 = sshll.u32 %s3345_s21, 4  ;;  %s208_s3 = int_to_ptr.hbm [resolvable:$true] %s207_s3 }
  0x2d   :  { %s177_s7 = sshll.u32 %s2721_s30, 4  ;;  %s2722_s4 = smov [#allocation21]   ;;  %s178_s7 = int_to_ptr.vmem [resolvable:$true] %s177_s7 }
  0x2e   :  { %183 = dma.hbm_to_vmem [thread:$0]  %s176_s14, 32, %s178_s7, [#allocation19], %s2719_s29, %s2719_s29, %s2720_s6  }
  0x2f   :  { %s209_s28 = sshll.u32 %s2722_s4, 4  ;;  %s2723_s18 = smov 512   ;;  %s210_s28 = int_to_ptr.vmem [resolvable:$true] %s209_s28 }
  0x30   :  { %s2724_s1 = smov 32   ;;  %s3372_s9 = sld [smem:[#allocation37_spill]] }
  0x31   :  { %215 = dma.hbm_to_vmem [thread:$0]  %s208_s3, 8192, %s210_s28, [#allocation22], %s2723_s18, %s2723_s18, %s2724_s1  }
  0x32   :  { %s2725_s30 = smov [#allocation4]   ;;  %s3373_s8 = sld [smem:[#allocation40_spill]] }
  0x33   :  { %s54_s5 = sshll.u32 %s2725_s30, 4  ;;  %s3374_s6 = smov 8   ;;  %s55_s5 = int_to_ptr.vmem [resolvable:$true] %s54_s5 }
  0x34   :  { %s3375_s14 = smov 128   ;;  %s2726_s7 = smov [#allocation8]  }
  0x35   :  { %s83_s4 = sshll.u32 %s2726_s7, 4  ;;  %s3376_s18 = sld [smem:[#allocation42_spill]]  ;;  %s84_s4 = int_to_ptr.vmem [resolvable:$true] %s83_s4 }
  0x36   :  { %s52_s2 = sshll.u32 %s3372_s9, 4  ;;  %s136_s9 = sshll.u32 %s3337_s13, 4  ;;  %s53_s2 = int_to_ptr.hbm [resolvable:$true] %s52_s2  ;;  %s137_s9 = int_to_ptr.hbm [resolvable:$true] %s136_s9 }
  0x37   :  { %60 = dma.hbm_to_vmem [thread:$0]  %s53_s2, 2048, %s55_s5, [#allocation5], %s3375_s14, %s3375_s14, %s3374_s6  }
  0x38   :  { %s81_s0 = sshll.u32 %s3373_s8, 4  ;;  %s2727_s30 = smov [#allocation11]   ;;  %s82_s0 = int_to_ptr.hbm [resolvable:$true] %s81_s0 }
  0x39   :  { %86 = dma.hbm_to_vmem [thread:$0]  %s82_s0, 16, %s84_s4, [#allocation7]  }
  0x3a   :  { %s104_s26 = sshll.u32 %s2727_s30, 4  ;;  %s2728_s5 = smov [#allocation14]   ;;  %s105_s26 = int_to_ptr.vmem [resolvable:$true] %s104_s26 }
  0x3b   :  { %s102_s1 = sshll.u32 %s3376_s18, 4  ;;  %s138_s2 = sshll.u32 %s2728_s5, 4  ;;  %s103_s1 = int_to_ptr.hbm [resolvable:$true] %s102_s1  ;;  %s139_s2 = int_to_ptr.vmem [resolvable:$true] %s138_s2 }
  0x3c   :  { %110 = dma.hbm_to_vmem [thread:$0]  %s103_s1, 4096, %s105_s26, [#allocation10], %s3375_s14, %s3375_s14, %s3374_s6  }
  0x3d   :  { %s162_s7 = sshll.u32 %s3339_s15, 4  ;;  %s192_s4 = sshll.u32 %s3343_s19, 4  ;;  %s163_s7 = int_to_ptr.hbm [resolvable:$true] %s162_s7  ;;  %s193_s4 = int_to_ptr.hbm [resolvable:$true] %s192_s4 }
  0x3e   :  { %144 = dma.hbm_to_vmem [thread:$0]  %s137_s9, 4096, %s139_s2, [#allocation13], %s3375_s14, %s3375_s14, %s3374_s6  }
  0x3f   :  { %s2729_s3 = smov [#allocation17]   ;;  %s2730_s18 = smov [#allocation20]  }
  0x40   :  { %s164_s28 = sshll.u32 %s2729_s3, 4  ;;  %s194_s15 = sshll.u32 %s2730_s18, 4  ;;  %s165_s28 = int_to_ptr.vmem [resolvable:$true] %s164_s28  ;;  %s195_s15 = int_to_ptr.vmem [resolvable:$true] %s194_s15 }
  0x41   :  { %170 = dma.hbm_to_vmem [thread:$0]  %s163_s7, 4096, %s165_s28, [#allocation16], %s3375_s14, %s3375_s14, %s3374_s6  }
  0x42   :  { %s222_s16 = sshll.u32 %s3347_s23, 4  ;;  %s236_s30 = sshll.u32 %s3348_s24, 4  ;;  %s223_s16 = int_to_ptr.hbm [resolvable:$true] %s222_s16  ;;  %s237_s30 = int_to_ptr.hbm [resolvable:$true] %s236_s30 }
  0x43   :  { %200 = dma.hbm_to_vmem [thread:$0]  %s193_s4, 2048, %s195_s15, [#allocation19], %s3375_s14, %s3375_s14, %s3374_s6  }
  0x44   :  { %s2731_s26 = smov [#allocation23]   ;;  %s2732_s2 = smov [#allocation24]  }
  0x45   :  { %s224_s5 = sshll.u32 %s2731_s26, 4  ;;  %s238_s23 = sshll.u32 %s2732_s2, 4  ;;  %s225_s5 = int_to_ptr.vmem [resolvable:$true] %s224_s5  ;;  %s239_s23 = int_to_ptr.vmem [resolvable:$true] %s238_s23 }
  0x46   :  { %230 = dma.hbm_to_vmem [thread:$0]  %s223_s16, 8192, %s225_s5, [#allocation22], %s3375_s14, %s3375_s14, %s3374_s6  }
  0x47   :  { %241 = dma.hbm_to_vmem [thread:$0]  %s237_s30, 16, %s239_s23, [#allocation25]  }
  0x48   :  { %2696 = dma.done.wait [#allocation5], 2048  }
  0x49   :  { %2697 = vsyncadd [#allocation5], 4294965248 }
  0x4a   :  { %2698 = dma.done.wait [#allocation7], 528  }
  0x4b   :  { %2699 = vsyncadd [#allocation7], 4294966768 }
  0x4c   :  { %2700 = dma.done.wait [#allocation10], 4112  }
  0x4d   :  { %2701 = vsyncadd [#allocation10], 4294963184 }
  0x4e   :  { %2702 = dma.done.wait [#allocation13], 8192  }
  0x4f   :  { %2703 = vsyncadd [#allocation13], 4294959104 }
  0x50   :  { %2704 = dma.done.wait [#allocation16], 4128  }
  0x51   :  { %2705 = vsyncadd [#allocation16], 4294963168 }
  0x52   :  { %2706 = dma.done.wait [#allocation19], 2080  }
  0x53   :  { %2707 = vsyncadd [#allocation19], 4294965216 }
  0x54   :  { %2708 = dma.done.wait [#allocation22], 16384  }
  0x55   :  { %2709 = vsyncadd [#allocation22], 4294950912 }
  0x56   :  { %2710 = dma.done.wait [#allocation25], 16  }
  0x57   :  { %2711 = vsyncadd [#allocation25], 4294967280  ;;  %s304_s24 = sld [smem:[#allocation3]]  ;;  %v2948_v1 = vld [vmem:[#allocation6] sm:$0x1]  ;;  %vm434_vm0 = vcmask 1040384  }
  0x58   :  { %s2181_s6 = sld [smem:[#allocation3 + $0x1]]  ;;  %v2950_v3 = vld [vmem:[#allocation6 + $0x1] sm:$0x1]  ;;  %v2953_v6 = vld [vmem:[#allocation6 + $0x2] sm:$0x1]  ;;  %vm436_vm1 = vcmask 1041408  }
  0x59   :  { %s2182_s14 = sld [smem:[#allocation3 + $0x2]]  ;;  %v2956_v9 = vld [vmem:[#allocation6 + $0x3] sm:$0x1]  ;;  %v2959_v12 = vld [vmem:[#allocation6 + $0x4] sm:$0x1]  ;;  %vm438_vm2 = vcmask 1042432  }
  0x5a   :  { %s2183_s21 = sld [smem:[#allocation3 + $0x3]]  ;;  %v2964_v17 = vld [vmem:[#allocation6 + $0x5] sm:$0x1]  ;;  %v343_v27 = vld [vmem:[#allocation6 + $0x6] sm:$0x1]  ;;  %vm440_vm3 = vcmask 1043456  }
  0x5b   :  { %s2184_s8 = sld [smem:[#allocation3 + $0x4]]  ;;  %v349_v32 = vld [vmem:[#allocation6 + $0x7] sm:$0x1]  ;;  %vm442_vm4 = vcmask 1044480   ;;  %vm444_vm5 = vcmask 1045504   ;;  %vm446_vm6 = vcmask 1046528  }
  0x5c   :  { %s2185_s7 = sld [smem:[#allocation3 + $0x5]]  ;;  %vm563_vm15 = vcmask 130048  }
  0x5d   :  { %s3377_s4 = sld [smem:[#allocation39_spill]]  ;;  %s305_s3 = scalar_lea.vmem [#allocation4], %s304_s24 }
  0x5e   :  { %v306_v2 = vld [vmem:[%s305_s3] sm:$0x1]  ;;  %s311_s28 = scalar_lea.vmem [#allocation4], %s2181_s6  ;;  %s2186_s16 = sld [smem:[#allocation3 + $0x6]] }
  0x5f   :  { %v308_v4 = vadd.f32 %v2948_v1, %v306_v2  ;;  %v312_v5 = vld [vmem:[%s311_s28] sm:$0x1]  ;;  %s317_s18 = scalar_lea.vmem [#allocation4], %s2182_s14  ;;  %s2187_s19 = sld [smem:[#allocation3 + $0x7]] }
  0x60   :  { %v314_v7 = vadd.f32 %v2950_v3, %v312_v5  ;;  %v318_v8 = vld [vmem:[%s317_s18] sm:$0x1]  ;;  %s323_s15 = scalar_lea.vmem [#allocation4], %s2183_s21  ;;  %s2188_s9 = sld [smem:[#allocation3 + $0x8]] }
  0x61   :  { %v320_v10 = vadd.f32 %v2953_v6, %v318_v8  ;;  %v324_v11 = vld [vmem:[%s323_s15] sm:$0x1]  ;;  %s329_s1 = scalar_lea.vmem [#allocation4], %s2184_s8  ;;  %s2189_s30 = sld [smem:[#allocation3 + $0x9]] }
  0x62   :  { %v326_v15 = vadd.f32 %v2956_v9, %v324_v11  ;;  %v330_v16 = vld [vmem:[%s329_s1] sm:$0x1]  ;;  %s335_s27 = scalar_lea.vmem [#allocation4], %s2185_s7  ;;  %s2974_s26 = sld [smem:[#allocation3 + $0xa]] }
  0x63   :  { %v2946_v0 = vld [vmem:[%s3377_s4] sm:$0x1]  ;;  %v332_v19 = vadd.f32 %v2959_v12, %v330_v16  ;;  %s2977_s5 = sld [smem:[#allocation3 + $0xb]] }
  0x64   :  { %v309_v13 = vadd.f32 %v308_v4, %v2946_v0  ;;  %v315_v14 = vadd.f32 %v314_v7, %v2946_v0  ;;  %v321_v18 = vadd.f32 %v320_v10, %v2946_v0  ;;  %v336_v20 = vld [vmem:[%s335_s27] sm:$0x1]  ;;  %v327_v21 = vadd.f32 %v326_v15, %v2946_v0  ;;  %s2979_s2 = sld [smem:[#allocation3 + $0xc]]  ;;  %s341_s23 = scalar_lea.vmem [#allocation4], %s2186_s16 }
  0x65   :  { %v338_v22 = vadd.f32 %v2964_v17, %v336_v20  ;;  %v333_v24 = vadd.f32 %v332_v19, %v2946_v0  ;;  %v342_v34 = vld [vmem:[%s341_s23] sm:$0x1]  ;;  %s2981_s24 = sld [smem:[#allocation3 + $0xd]]  ;;  %s347_s6 = scalar_lea.vmem [#allocation4], %s2187_s19 }
  0x66   :  { %v393_v23 = vrot.slane %v315_v14, 7  ;;  %v396_v25 = vrot.slane %v321_v18, 6  ;;  %v399_v28 = vrot.slane %v327_v21, 5  ;;  %v344_v36 = vadd.f32 %v343_v27, %v342_v34  ;;  %v348_v37 = vld [vmem:[%s347_s6] sm:$0x1]  ;;  %s2984_s14 = sld [smem:[#allocation3 + $0xe]] }
  0x67   :  { %v339_v26 = vadd.f32 %v338_v22, %v2946_v0  ;;  %v402_v30 = vrot.slane %v333_v24, 4  ;;  %v350_v39 = vadd.f32 %v349_v32, %v348_v37  ;;  %s353_s21 = scalar_lea.vmem [#allocation4], %s2188_s9  ;;  %s2986_s8 = sld [smem:[#allocation3 + $0xf]]  ;;  %v2733_v22 = vmov 32.0  }
  0x68   :  { %v435_v29 = vsel %vm434_vm0, %v309_v13, %v393_v23  ;;  %v354_v40 = vld [vmem:[%s353_s21] sm:$0x1]  ;;  %v345_v41 = vadd.f32 %v344_v36, %v2946_v0  ;;  %s358_s7 = scalar_lea.vmem [#allocation4], %s2189_s30  ;;  %s363_s13 = scalar_lea.vmem [#allocation4], %s2974_s26  ;;  %2280 = vrcp.f32 %v2733_v22  ;;  %v2734_v34 = vmov 0.0  }
  0x69   :  { %v437_v31 = vsel %vm436_vm1, %v435_v29, %v396_v25  ;;  %v405_v35 = vrot.slane %v339_v26, 3  ;;  %v355_v42 = vadd.f32 %v354_v40, %v2948_v1  ;;  %v359_v43 = vld [vmem:[%s358_s7] sm:$0x1]  ;;  %v351_v44 = vadd.f32 %v350_v39, %v2946_v0  ;;  %s368_s0 = scalar_lea.vmem [#allocation4], %s2977_s5  ;;  %s3378_s27 = sld [smem:[#allocation43_spill]] }
  0x6a   :  { %v439_v33 = vsel %vm438_vm2, %v437_v31, %v399_v28  ;;  %v360_v46 = vadd.f32 %v359_v43, %v2950_v3  ;;  %v364_v47 = vld [vmem:[%s363_s13] sm:$0x1]  ;;  %v408_v48 = vrot.slane %v345_v41, 2  ;;  %s373_s4 = scalar_lea.vmem [#allocation4], %s2979_s2  ;;  %v298_v28 = vlaneseq  ;;  %s2735_s16 = smov 112  }
  0x6b   :  { %v441_v38 = vsel %vm440_vm3, %v439_v33, %v402_v30  ;;  %v365_v49 = vadd.f32 %v364_v47, %v2953_v6  ;;  %v369_v50 = vld [vmem:[%s368_s0] sm:$0x1]  ;;  %v411_v51 = vrot.slane %v351_v44, 1  ;;  %v356_v52 = vadd.f32 %v355_v42, %v2946_v0  ;;  %s378_s3 = scalar_lea.vmem [#allocation4], %s2981_s24  ;;  %v529_v44 = vld [vmem:[#allocation11 + $0x68] sm:$0xff]  ;;  %v526_v47 = vld [vmem:[#allocation11 + $0x50] sm:$0xff] }
  0x6c   :  { %v443_v45 = vsel %vm442_vm4, %v441_v38, %v405_v35  ;;  %v361_v53 = vadd.f32 %v360_v46, %v2946_v0  ;;  %v370_v54 = vadd.f32 %v369_v50, %v2956_v9  ;;  %v374_v55 = vld [vmem:[%s373_s4] sm:$0x1]  ;;  %s383_s28 = scalar_lea.vmem [#allocation4], %s2984_s14  ;;  %v299_v30 = vand.u32 127, %v298_v28  ;;  %s2736_s19 = smov 96  }
  0x6d   :  { %v445_v56 = vsel %vm444_vm5, %v443_v45, %v408_v48  ;;  %v366_v57 = vadd.f32 %v365_v49, %v2946_v0  ;;  %v375_v58 = vadd.f32 %v374_v55, %v2959_v12  ;;  %v379_v59 = vld [vmem:[%s378_s3] sm:$0x1]  ;;  %s388_s18 = scalar_lea.vmem [#allocation4], %s2986_s8  ;;  %v528_v45 = vld [vmem:[#allocation11 + $0x60] sm:$0xff]  ;;  %v525_v48 = vld [vmem:[#allocation11 + $0x48] sm:$0xff]  ;;  %s2737_s9 = smov 80  }
  0x6e   :  { %v447_v60 = vsel %vm446_vm6, %v445_v56, %v411_v51  ;;  %v371_v61 = vadd.f32 %v370_v54, %v2946_v0  ;;  %v380_v62 = vadd.f32 %v379_v59, %v2964_v17  ;;  %v384_v63 = vld [vmem:[%s383_s28] sm:$0x1]  ;;  %v414_v1 = vrot.slane %v361_v53, 7  ;;  %v2281_v23 = vpop.eup %2280  ;;  %v524_v49 = vld [vmem:[#allocation11 + $0x40] sm:$0xff]  ;;  %v522_v51 = vld [vmem:[#allocation11 + $0x30] sm:$0xff]  ;;  %s3379_s5 = sld [smem:[#allocation36_spill]] }
  0x6f   :  { %457 = vadd.xlane.f32.xlu0 %v447_v60  ;;  %v376_v2 = vadd.f32 %v375_v58, %v2946_v0  ;;  %v385_v3 = vadd.f32 %v384_v63, %v343_v27  ;;  %v389_v4 = vld [vmem:[%s388_s18] sm:$0x1]  ;;  %v417_v5 = vrot.slane %v366_v57, 6  ;;  %v462_v24 = vmul.f32 32.0, %v2281_v23  ;;  %v520_v53 = vld [vmem:[#allocation11 + $0x20] sm:$0xff]  ;;  %v518_v55 = vld [vmem:[#allocation11 + $0x10] sm:$0xff] }
  0x70   :  { %v381_v6 = vadd.f32 %v380_v62, %v2946_v0  ;;  %v390_v7 = vadd.f32 %v389_v4, %v349_v32  ;;  %v420_v8 = vrot.slane %v371_v61, 5  ;;  %v448_v9 = vsel %vm434_vm0, %v356_v52, %v414_v1  ;;  %v531_v25 = vld [vmem:[#allocation11 + $0x78] sm:$0xff]  ;;  %v521_v52 = vld [vmem:[#allocation11 + $0x28] sm:$0xff]  ;;  %v516_v57 = vld [vmem:[#allocation11] sm:$0xff]  ;;  %s2738_s2 = smov 64   ;;  %s2739_s23 = smov 48  }
  0x71   :  { %v386_v10 = vadd.f32 %v385_v3, %v2946_v0  ;;  %v423_v11 = vrot.slane %v376_v2, 4  ;;  %v449_v12 = vsel %vm436_vm1, %v448_v9, %v417_v5  ;;  %v463_v26 = vsub.f32 1.0, %v462_v24  ;;  %536 = vmatpush.msra.mxu0 %v531_v25  ;;  %v527_v46 = vld [vmem:[#allocation11 + $0x58] sm:$0xff]  ;;  %v517_v56 = vld [vmem:[#allocation11 + $0x8] sm:$0xff]  ;;  %s3380_s15 = sld [smem:[#allocation45_spill]] }
  0x72   :  { %v391_v13 = vadd.f32 %v390_v7, %v2946_v0  ;;  %v426_v14 = vrot.slane %v381_v6, 3  ;;  %v450_v15 = vsel %vm438_vm2, %v449_v12, %v420_v8  ;;  %v530_v0 = vld [vmem:[#allocation11 + $0x70] sm:$0xff]  ;;  %vm466_vm7 = vweird.f32 %v2281_v23  ;;  %v523_v50 = vld [vmem:[#allocation11 + $0x38] sm:$0xff] }
  0x73   :  { %v429_v16 = vrot.slane %v386_v10, 2  ;;  %v451_v17 = vsel %vm440_vm3, %v450_v15, %v423_v11  ;;  %537 = vmatpush.msra.mxu0 %v530_v0  ;;  %v464_v27 = vmul.f32 %v2281_v23, %v463_v26  ;;  %vm300_vm8 = vcmp.lt.s32.totalorder %v299_v30, 32  ;;  %v519_v54 = vld [vmem:[#allocation11 + $0x18] sm:$0xff] }
  0x74   :  { %v432_v18 = vrot.slane %v391_v13, 1  ;;  %v452_v19 = vsel %vm442_vm4, %v451_v17, %v426_v14  ;;  %v3023_v35 = vsel %vm300_vm8, 1.0, %v2734_v34  ;;  %v2258_v9 = vld [vmem:[#allocation8] ss:$0 sm:$0xff]  ;;  %v2259_v13 = vld [vmem:[#allocation9] ss:$0 sm:$0xff] }
  0x75   :  { %v453_v20 = vsel %vm444_vm5, %v452_v19, %v429_v16  ;;  %v465_v29 = vadd.f32 %v2281_v23, %v464_v27  ;;  %538 = vmatpush.msra.mxu0 %v529_v44  ;;  %vm591_vm1 = vcmask 64512  }
  0x76   :  { %v454_v21 = vsel %vm446_vm6, %v453_v20, %v432_v18 }
  0x77   :  { %459 = vadd.xlane.f32.xlu1 %v454_v21  ;;  %v3020_v31 = vsel %vm466_vm7, %v2281_v23, %v465_v29  ;;  %539 = vmatpush.msra.mxu0 %v528_v45  ;;  %v2260_v23 = vld [vmem:[%s3378_s27] ss:$0 sm:$0xff] }
  0x79   :  { %540 = vmatpush.msra.mxu0 %v527_v46 }
  0x7b   :  { %541 = vmatpush.msra.mxu0 %v526_v47 }
  0x7d   :  { %542 = vmatpush.msra.mxu0 %v525_v48 }
  0x7f   :  { %543 = vmatpush.msra.mxu0 %v524_v49 }
  0x81   :  { %544 = vmatpush.msra.mxu0 %v523_v50 }
  0x83   :  { %545 = vmatpush.msra.mxu0 %v522_v51 }
  0x85   :  { %546 = vmatpush.msra.mxu0 %v521_v52 }
  0x87   :  { %547 = vmatpush.msra.mxu0 %v520_v53 }
  0x89   :  { %548 = vmatpush.msra.mxu0 %v519_v54 }
  0x8b   :  { %549 = vmatpush.msra.mxu0 %v518_v55 }
  0x8d   :  { %550 = vmatpush.msra.mxu0 %v517_v56  ;;  %v3080_v56 = vld [vmem:[%s3379_s5 + $0x1] ss:$0 sm:$0xff] }
  0x8f   :  { %551 = vmatpush.msra.mxu0 %v516_v57 }
  0xe2   :  { %v458_v32 = vpop.xlane.xlu0 %457 }
  0xe3   :  { %v468_v33 = vmul.f32 %v3020_v31, %v458_v32  ;;  %v3061_v32 = vld [vmem:[%s3379_s5] ss:$0 sm:$0xff] }
  0xe5   :  { %v470_v36 = vsub.f32 %v447_v60, %v468_v33 }
  0xe7   :  { %v472_v37 = vmul.f32 %v3023_v35, %v470_v36 }
  0xe9   :  { %v474_v38 = vmul.f32 %v472_v37, %v472_v37 }
  0xea   :  { %v460_v39 = vpop.xlane.xlu1 %459 }
  0xeb   :  { %v469_v40 = vmul.f32 %v3020_v31, %v460_v39  ;;  %476 = vadd.xlane.f32.xlu0 %v474_v38 }
  0xed   :  { %v471_v41 = vsub.f32 %v454_v21, %v469_v40 }
  0xef   :  { %v3028_v42 = vmul.f32 %v3023_v35, %v471_v41 }
  0xf1   :  { %v475_v43 = vmul.f32 %v3028_v42, %v3028_v42 }
  0xf3   :  { %478 = vadd.xlane.f32.xlu1 %v475_v43 }
 0x15e   :  { %v477_v58 = vpop.xlane.xlu0 %476 }
 0x15f   :  { %v480_v59 = vmul.f32 %v477_v58, %v3020_v31 }
 0x161   :  { %v482_v60 = vadd.f32 1e-12, %v480_v59 }
 0x163   :  { %2282 = vrsqrt.f32 %v482_v60  ;;  %vm490_vm10 = vweird.f32 %v482_v60 }
 0x166   :  { %v479_v61 = vpop.xlane.xlu1 %478 }
 0x167   :  { %v481_v62 = vmul.f32 %v479_v61, %v3020_v31 }
 0x169   :  { %v2283_v63 = vpop.eup %2282  ;;  %v483_v1 = vadd.f32 1e-12, %v481_v62 }
 0x16a   :  { %v485_v2 = vmul.f32 %v2283_v63, %v482_v60  ;;  %vm491_vm9 = vweird.f32 %v2283_v63 }
 0x16b   :  { %2284 = vrsqrt.f32 %v483_v1  ;;  %vm492_vm11 = vmor %vm490_vm10, %vm491_vm9  ;;  %vm500_vm12 = vweird.f32 %v483_v1 }
 0x16c   :  { %v486_v3 = vmul.f32 %v2283_v63, %v485_v2 }
 0x16e   :  { %v487_v4 = vmul.f32 0.5, %v486_v3 }
 0x170   :  { %v488_v5 = vsub.f32 1.5, %v487_v4 }
 0x171   :  { %v2285_v6 = vpop.eup %2284 }
 0x172   :  { %v489_v7 = vmul.f32 %v2283_v63, %v488_v5  ;;  %v495_v8 = vmul.f32 %v2285_v6, %v483_v1  ;;  %vm501_vm13 = vweird.f32 %v2285_v6 }
 0x173   :  { %vm502_vm14 = vmor %vm500_vm12, %vm501_vm13 }
 0x174   :  { %v496_v10 = vmul.f32 %v2285_v6, %v495_v8  ;;  %v493_v11 = vsel %vm492_vm11, %v2283_v63, %v489_v7 }
 0x175   :  { %v504_v12 = vmul.f32 %v493_v11, %v472_v37 }
 0x176   :  { %v497_v14 = vmul.f32 0.5, %v496_v10 }
 0x177   :  { %v509_v15 = vmul.f32 %v2258_v9, %v504_v12 }
 0x178   :  { %v498_v16 = vsub.f32 1.5, %v497_v14 }
 0x179   :  { %v3034_v17 = vadd.f32 %v2259_v13, %v509_v15 }
 0x17a   :  { %v499_v18 = vmul.f32 %v2285_v6, %v498_v16 }
 0x17b   :  { %552 = vmatmul.f32.vlgmr.msra.gmra.mxu0 %v3034_v17 }
 0x17c   :  { %v503_v19 = vsel %vm502_vm14, %v2285_v6, %v499_v18  ;;  %vm727_vm14 = vcmask 261120  }
 0x17d   :  { %v505_v20 = vmul.f32 %v503_v19, %v3028_v42 }
 0x17f   :  { %v510_v21 = vmul.f32 %v2258_v9, %v505_v20 }
 0x181   :  { %v3038_v22 = vadd.f32 %v2259_v13, %v510_v21 }
 0x183   :  { %555 = vmatmul.f32.gmra.mxu0 %v3038_v22 }
 0x1f8   :  { %v553_v24 = vpop.f32.mrf.mxu0 }
 0x1f9   :  { %v554_v25 = vadd.f32 %v2260_v23, %v553_v24 }
 0x1fb   :  { %642 = vrot.lane.b32.xlu0 %v554_v25, %s2735_s16  ;;  %561 = vrot.lane.b32.xlu2 %v554_v25, %s2736_s19 }
 0x200   :  { %v556_v0 = vpop.f32.mrf.mxu0 }
 0x201   :  { %v3046_v26 = vadd.f32 %v2260_v23, %v556_v0 }
 0x203   :  { %731 = vrot.lane.b32.xlu1 %v3046_v26, %s2736_s19  ;;  %644 = vrot.lane.b32.xlu2 %v554_v25, %s2737_s9 }
 0x255   :  { %v562_v27 = vpop.permute.xlu2 %561 }
 0x256   :  { %2196 = vmatpush.xpose.msk.msra.mxu1 %vm563_vm15, %v562_v27 }
 0x259   :  { %2197 = vmatmul.msk.f32.vlgmr.msra.gmra.mxu1 %vm563_vm15, %v554_v25 }
 0x25d   :  { %v645_v28 = vpop.permute.xlu2 %644 }
 0x25e   :  { %2199 = vmatpush.xpose.msk.msra.mxu3 %vm563_vm15, %v645_v28 }
 0x26d   :  { %v643_v29 = vpop.permute.xlu0 %642 }
 0x26e   :  { %2200 = vmatmul.msk.f32.vlgmr.msra.gmra.mxu3 %vm563_vm15, %v643_v29 }
 0x275   :  { %v732_v30 = vpop.permute.xlu1 %731 }
 0x276   :  { %2202 = vmatpush.xpose.msk.msrb.mxu1 %vm563_vm15, %v732_v30 }
 0x279   :  { %2203 = vmatmul.msk.f32.vlgmr.msrb.gmra.mxu1 %vm563_vm15, %v3046_v26 }
 0x2d6   :  { %v585_v33 = vpop.f32.mrf.mxu1 }
 0x2d7   :  { %v588_v34 = vmul.f32 0.25, %v585_v33 }
 0x2d9   :  { %v590_v36 = vadd.f32 %v3061_v32, %v588_v34  ;;  %v911_v34 = vld [vmem:[#allocation12 + $0x78] sm:$0xff] }
 0x2db   :  { %v592_v37 = vsel %vm591_vm1, %v590_v36, -inf }
 0x2dc   :  { %593 = vmax.xlane.f32.xlu2 %v592_v37 }
 0x2f1   :  { %v667_v38 = vpop.f32.mrf.mxu3 }
 0x2f2   :  { %v670_v39 = vmul.f32 0.25, %v667_v38  ;;  %v909_v38 = vld [vmem:[#allocation12 + $0x68] sm:$0xff] }
 0x2f4   :  { %616 = vrot.lane.b32.xlu2 %v554_v25, %s2738_s2  ;;  %v671_v40 = vadd.f32 %v3061_v32, %v670_v39 }
 0x2f6   :  { %v672_v41 = vsel %vm591_vm1, %v671_v40, -inf  ;;  %v754_v54 = vpop.f32.mrf.mxu1 }
 0x2f7   :  { %673 = vmax.xlane.f32.xlu0 %v672_v41  ;;  %v757_v55 = vmul.f32 0.25, %v754_v54  ;;  %v907_v41 = vld [vmem:[#allocation12 + $0x58] sm:$0xff] }
 0x2f8   :  { %v899_v54 = vld [vmem:[#allocation12 + $0x18] sm:$0xff] }
 0x2f9   :  { %v759_v57 = vadd.f32 %v3080_v56, %v757_v55 }
 0x2fb   :  { %v760_v58 = vsel %vm591_vm1, %v759_v57, -inf }
 0x30b   :  { %696 = vrot.lane.b32.xlu0 %v554_v25, %s2739_s23 }
 0x34f   :  { %v594_v42 = vpop.xlane.xlu2 %593 }
 0x350   :  { %v595_v43 = vsub.f32 %v590_v36, %v594_v42  ;;  %v910_v36 = vld [vmem:[#allocation12 + $0x70] sm:$0xff] }
 0x352   :  { %v596_v44 = vmul.f32 1.442695, %v595_v43  ;;  %v906_v43 = vld [vmem:[#allocation12 + $0x50] sm:$0xff] }
 0x354   :  { %2286 = vpow2.f32 %v596_v44 }
 0x357   :  { %v617_v45 = vpop.permute.xlu2 %616 }
 0x358   :  { %637 = vmatpush.msra.mxu2 %v617_v45 }
 0x35a   :  { %v2287_v46 = vpop.eup %2286 }
 0x35b   :  { %v598_v47 = vsel %vm591_vm1, %v2287_v46, 0.0 }
 0x35c   :  { %599 = vadd.xlane.f32.xlu1 %v598_v47  ;;  %v903_v47 = vld [vmem:[#allocation12 + $0x38] sm:$0xff] }
 0x36a   :  { %v674_v48 = vpop.xlane.xlu0 %673 }
 0x36b   :  { %v675_v49 = vsub.f32 %v671_v40, %v674_v48  ;;  %v908_v40 = vld [vmem:[#allocation12 + $0x60] sm:$0xff]  ;;  %v902_v48 = vld [vmem:[#allocation12 + $0x30] sm:$0xff] }
 0x36d   :  { %v676_v50 = vmul.f32 1.442695, %v675_v49  ;;  %v901_v49 = vld [vmem:[#allocation12 + $0x28] sm:$0xff] }
 0x36f   :  { %2288 = vpow2.f32 %v676_v50 }
 0x375   :  { %v2289_v51 = vpop.eup %2288  ;;  %812 = vrot.lane.b32.xlu1 %v3046_v26, %s2737_s9 }
 0x376   :  { %v678_v52 = vsel %vm591_vm1, %v2289_v51, 0.0 }
 0x377   :  { %679 = vadd.xlane.f32.xlu2 %v678_v52  ;;  %v900_v52 = vld [vmem:[#allocation12 + $0x20] sm:$0xff] }
 0x37d   :  { %v697_v53 = vpop.permute.xlu0 %696  ;;  %784 = vrot.lane.b32.xlu1 %v3046_v26, %s2738_s2 }
 0x37e   :  { %717 = vmatpush.msrb.mxu2 %v697_v53 }
 0x38f   :  { %810 = vrot.lane.b32.xlu2 %v3046_v26, %s2735_s16 }
 0x3b8   :  { %761 = vmax.xlane.f32.xlu2 %v760_v58 }
 0x3cf   :  { %v600_v59 = vpop.xlane.xlu1 %599 }
 0x3d0   :  { %2290 = vrcp.f32 %v600_v59  ;;  %v612_v63 = vand.u32 2147483648, %v600_v59  ;;  %v610_v2 = vand.u32 2147483647, %v600_v59  ;;  %vm606_vm3 = vweird.f32 %v600_v59 }
 0x3d2   :  { %v613_v4 = vor.u32 1.1754944e-38, %v612_v63  ;;  %vm611_vm5 = vcmp.eq.f32.partialorder %v610_v2, 8.507059e+37 }
 0x3d6   :  { %v2291_v60 = vpop.eup %2290 }
 0x3d7   :  { %v602_v61 = vmul.f32 %v2291_v60, %v600_v59  ;;  %vm607_vm2 = vweird.f32 %v2291_v60  ;;  %v898_v59 = vld [vmem:[#allocation12 + $0x10] sm:$0xff] }
 0x3d8   :  { %vm608_vm4 = vmor %vm606_vm3, %vm607_vm2 }
 0x3d9   :  { %v603_v62 = vsub.f32 1.0, %v602_v61  ;;  %v897_v61 = vld [vmem:[#allocation12 + $0x8] sm:$0xff] }
 0x3db   :  { %v604_v1 = vmul.f32 %v2291_v60, %v603_v62 }
 0x3dd   :  { %v605_v3 = vadd.f32 %v2291_v60, %v604_v1 }
 0x3df   :  { %v609_v5 = vsel %vm608_vm4, %v2291_v60, %v605_v3 }
 0x3e0   :  { %v614_v6 = vsel %vm611_vm5, %v613_v4, %v609_v5  ;;  %v896_v4 = vld [vmem:[#allocation12] sm:$0xff] }
 0x3e1   :  { %v615_v7 = vmul.f32 %v2287_v46, %v614_v6  ;;  %v904_v46 = vld [vmem:[#allocation12 + $0x40] sm:$0xff] }
 0x3e3   :  { %2198 = vmatmul.msk.f32.vlgmr.msra.gmra.mxu2 %vm591_vm1, %v615_v7 }
 0x3e7   :  { %v813_v8 = vpop.permute.xlu1 %812 }
 0x3e8   :  { %2205 = vmatpush.xpose.msk.msra.mxu2 %vm563_vm15, %v813_v8 }
 0x3ea   :  { %v680_v9 = vpop.xlane.xlu2 %679 }
 0x3eb   :  { %2292 = vrcp.f32 %v680_v9  ;;  %v692_v14 = vand.u32 2147483648, %v680_v9  ;;  %v690_v16 = vand.u32 2147483647, %v680_v9  ;;  %vm686_vm7 = vweird.f32 %v680_v9 }
 0x3ed   :  { %v693_v19 = vor.u32 1.1754944e-38, %v692_v14  ;;  %vm691_vm9 = vcmp.eq.f32.partialorder %v690_v16, 8.507059e+37 }
 0x3ef   :  { %v785_v10 = vpop.permute.xlu1 %784 }
 0x3f0   :  { %805 = vmatpush.msrb.mxu3 %v785_v10 }
 0x3f1   :  { %v2293_v11 = vpop.eup %2292 }
 0x3f2   :  { %v682_v12 = vmul.f32 %v2293_v11, %v680_v9  ;;  %vm687_vm6 = vweird.f32 %v2293_v11  ;;  %v811_v24 = vpop.permute.xlu2 %810  ;;  %916 = vmatpush.msra.mxu3 %v911_v34 }
 0x3f3   :  { %vm688_vm8 = vmor %vm686_vm7, %vm687_vm6 }
 0x3f4   :  { %v683_v13 = vsub.f32 1.0, %v682_v12  ;;  %917 = vmatpush.msra.mxu3 %v910_v36 }
 0x3f6   :  { %v684_v15 = vmul.f32 %v2293_v11, %v683_v13  ;;  %918 = vmatpush.msra.mxu3 %v909_v38  ;;  %v3106_v13 = vld [vmem:[%s3334_s10] ss:$0 sm:$0xff] }
 0x3f7   :  { %v1010_v38 = vld [vmem:[#allocation14 + $0x78] sm:$0xff] }
 0x3f8   :  { %v685_v18 = vadd.f32 %v2293_v11, %v684_v15  ;;  %919 = vmatpush.msra.mxu3 %v908_v40 }
 0x3fa   :  { %v689_v20 = vsel %vm688_vm8, %v2293_v11, %v685_v18  ;;  %920 = vmatpush.msra.mxu3 %v907_v41  ;;  %v1008_v41 = vld [vmem:[#allocation14 + $0x68] sm:$0xff] }
 0x3fb   :  { %v694_v21 = vsel %vm691_vm9, %v693_v19, %v689_v20 }
 0x3fc   :  { %v695_v23 = vmul.f32 %v2289_v51, %v694_v21  ;;  %921 = vmatpush.msra.mxu3 %v906_v43  ;;  %v1006_v43 = vld [vmem:[#allocation14 + $0x58] sm:$0xff] }
 0x3fe   :  { %2201 = vmatmul.msk.f32.vlgmr.msrb.gmra.mxu2 %vm591_vm1, %v695_v23 }
 0x3ff   :  { %1015 = vmatpush.msrb.mxu2 %v1010_v38 }
 0x406   :  { %2206 = vmatmul.msk.f32.vlgmr.msra.gmra.mxu2 %vm563_vm15, %v811_v24 }
 0x42b   :  { %v762_v25 = vpop.xlane.xlu2 %761 }
 0x42c   :  { %v763_v0 = vsub.f32 %v759_v57, %v762_v25 }
 0x42e   :  { %v764_v27 = vmul.f32 1.442695, %v763_v0 }
 0x430   :  { %2294 = vpow2.f32 %v764_v27 }
 0x436   :  { %v2295_v28 = vpop.eup %2294 }
 0x437   :  { %v766_v29 = vsel %vm591_vm1, %v2295_v28, 0.0 }
 0x438   :  { %767 = vadd.xlane.f32.xlu0 %v766_v29 }
 0x44c   :  { %864 = vrot.lane.b32.xlu0 %v3046_v26, %s2739_s23  ;;  %v905_v26 = vld [vmem:[#allocation12 + $0x48] sm:$0xff] }
 0x44d   :  { %922 = vmatpush.msra.mxu3 %v905_v26  ;;  %v1005_v26 = vld [vmem:[#allocation14 + $0x50] sm:$0xff] }
 0x44f   :  { %923 = vmatpush.msra.mxu3 %v904_v46  ;;  %v1002_v46 = vld [vmem:[#allocation14 + $0x38] sm:$0xff] }
 0x451   :  { %924 = vmatpush.msra.mxu3 %v903_v47  ;;  %v1001_v47 = vld [vmem:[#allocation14 + $0x30] sm:$0xff] }
 0x453   :  { %925 = vmatpush.msra.mxu3 %v902_v48  ;;  %v1000_v48 = vld [vmem:[#allocation14 + $0x28] sm:$0xff] }
 0x455   :  { %926 = vmatpush.msra.mxu3 %v901_v49  ;;  %v999_v49 = vld [vmem:[#allocation14 + $0x20] sm:$0xff] }
 0x457   :  { %927 = vmatpush.msra.mxu3 %v900_v52  ;;  %v996_v52 = vld [vmem:[#allocation14 + $0x8] sm:$0xff] }
 0x459   :  { %928 = vmatpush.msra.mxu3 %v899_v54 }
 0x45b   :  { %929 = vmatpush.msra.mxu3 %v898_v59 }
 0x45d   :  { %930 = vmatpush.msra.mxu3 %v897_v61 }
 0x45f   :  { %931 = vmatpush.msra.mxu3 %v896_v4  ;;  %v3123_v4 = vld [vmem:[%s3336_s12] ss:$0 sm:$0xff] }
 0x466   :  { %v3091_v30 = vpop.f32.mrf.mxu2 }
 0x481   :  { %v719_v33 = vpop.f32.mrf.mxu2 }
 0x482   :  { %723 = vrot.lane.b32.xlu1 %v719_v33, %s2719_s29 }
 0x489   :  { %v835_v37 = vpop.f32.mrf.mxu2 }
 0x48a   :  { %v838_v39 = vmul.f32 0.25, %v835_v37 }
 0x48c   :  { %v839_v42 = vadd.f32 %v3080_v56, %v838_v39  ;;  %v1009_v39 = vld [vmem:[#allocation14 + $0x70] sm:$0xff] }
 0x48d   :  { %1016 = vmatpush.msrb.mxu2 %v1009_v39 }
 0x48e   :  { %v840_v45 = vsel %vm591_vm1, %v839_v42, -inf }
 0x48f   :  { %1017 = vmatpush.msrb.mxu2 %v1008_v41 }
 0x4ab   :  { %v768_v44 = vpop.xlane.xlu0 %767 }
 0x4ac   :  { %2296 = vrcp.f32 %v768_v44  ;;  %841 = vmax.xlane.f32.xlu1 %v840_v45  ;;  %v780_v55 = vand.u32 2147483648, %v768_v44  ;;  %v778_v58 = vand.u32 2147483647, %v768_v44  ;;  %vm774_vm11 = vweird.f32 %v768_v44  ;;  %v1003_v45 = vld [vmem:[#allocation14 + $0x40] sm:$0xff] }
 0x4ae   :  { %v781_v62 = vor.u32 1.1754944e-38, %v780_v55  ;;  %vm779_vm13 = vcmp.eq.f32.partialorder %v778_v58, 8.507059e+37 }
 0x4b2   :  { %v2297_v50 = vpop.eup %2296 }
 0x4b3   :  { %v770_v51 = vmul.f32 %v2297_v50, %v768_v44  ;;  %vm775_vm10 = vweird.f32 %v2297_v50  ;;  %v1004_v44 = vld [vmem:[#allocation14 + $0x48] sm:$0xff] }
 0x4b4   :  { %vm776_vm12 = vmor %vm774_vm11, %vm775_vm10 }
 0x4b5   :  { %v771_v53 = vsub.f32 1.0, %v770_v51  ;;  %v997_v51 = vld [vmem:[#allocation14 + $0x10] sm:$0xff] }
 0x4b7   :  { %v772_v57 = vmul.f32 %v2297_v50, %v771_v53  ;;  %v995_v53 = vld [vmem:[#allocation14] sm:$0xff] }
 0x4b9   :  { %v773_v60 = vadd.f32 %v2297_v50, %v772_v57 }
 0x4bb   :  { %v777_v63 = vsel %vm776_vm12, %v2297_v50, %v773_v60  ;;  %v998_v50 = vld [vmem:[#allocation14 + $0x18] sm:$0xff] }
 0x4bc   :  { %v782_v1 = vsel %vm779_vm13, %v781_v62, %v777_v63 }
 0x4bd   :  { %v783_v2 = vmul.f32 %v2295_v28, %v782_v1  ;;  %v3118_v1 = vld [vmem:[%s3335_s11] ss:$0 sm:$0xff] }
 0x4be   :  { %v865_v3 = vpop.permute.xlu0 %864 }
 0x4bf   :  { %2204 = vmatmul.msk.f32.vlgmr.msrb.gmra.mxu3 %vm591_vm1, %v783_v2  ;;  %885 = vmatpush.msra.mxu1 %v865_v3 }
 0x4f4   :  { %v724_v5 = vpop.permute.xlu1 %723 }
 0x4f5   :  { %v726_v6 = vsel %vm563_vm15, %v3091_v30, %v724_v5  ;;  %v1071_v5 = vld [vmem:[#allocation17 + $0x78] sm:$0xff] }
 0x4f6   :  { %2208 = vmatmul.msk.f32.vlgmr.msra.gmra.mxu3 %vm727_vm14, %v726_v6  ;;  %v1070_v6 = vld [vmem:[#allocation17 + $0x70] sm:$0xff]  ;;  %1076 = vmatpush.msrb.mxu1 %v1071_v5 }
 0x4f8   :  { %1077 = vmatpush.msrb.mxu1 %v1070_v6 }
 0x51f   :  { %v842_v7 = vpop.xlane.xlu1 %841 }
 0x520   :  { %v843_v8 = vsub.f32 %v839_v42, %v842_v7  ;;  %v1007_v42 = vld [vmem:[#allocation14 + $0x60] sm:$0xff] }
 0x521   :  { %1018 = vmatpush.msrb.mxu2 %v1007_v42 }
 0x522   :  { %v844_v9 = vmul.f32 1.442695, %v843_v8  ;;  %v1069_v8 = vld [vmem:[#allocation17 + $0x68] sm:$0xff] }
 0x523   :  { %1019 = vmatpush.msrb.mxu2 %v1006_v43  ;;  %1078 = vmatpush.msrb.mxu1 %v1069_v8 }
 0x524   :  { %2298 = vpow2.f32 %v844_v9 }
 0x525   :  { %1020 = vmatpush.msrb.mxu2 %v1005_v26 }
 0x527   :  { %1021 = vmatpush.msrb.mxu2 %v1004_v44  ;;  %v3135_v44 = vld [vmem:[#allocation18] ss:$0 sm:$0xff] }
 0x529   :  { %1022 = vmatpush.msrb.mxu2 %v1003_v45 }
 0x52a   :  { %v2299_v10 = vpop.eup %2298 }
 0x52b   :  { %v846_v11 = vsel %vm591_vm1, %v2299_v10, 0.0  ;;  %1023 = vmatpush.msrb.mxu2 %v1002_v46 }
 0x52c   :  { %847 = vadd.xlane.f32.xlu2 %v846_v11 }
 0x52d   :  { %1024 = vmatpush.msrb.mxu2 %v1001_v47 }
 0x52f   :  { %1025 = vmatpush.msrb.mxu2 %v1000_v48 }
 0x531   :  { %1026 = vmatpush.msrb.mxu2 %v999_v49 }
 0x533   :  { %1027 = vmatpush.msrb.mxu2 %v998_v50 }
 0x535   :  { %1028 = vmatpush.msrb.mxu2 %v997_v51 }
 0x537   :  { %1029 = vmatpush.msrb.mxu2 %v996_v52 }
 0x539   :  { %1030 = vmatpush.msrb.mxu2 %v995_v53  ;;  %v1171_v53 = vld [vmem:[#allocation11 + $0xf8] sm:$0xff] }
 0x53a   :  { %1177 = vmatpush.msrb.mxu0 %v1171_v53 }
 0x542   :  { %v3101_v12 = vpop.f32.mrf.mxu3 }
 0x579   :  { %v933_v14 = vpop.f32.mrf.mxu3 }
 0x57a   :  { %v934_v15 = vadd.f32 %v3106_v13, %v933_v14 }
 0x57c   :  { %v939_v16 = vadd.f32 %v934_v15, %v3034_v17  ;;  %v1067_v15 = vld [vmem:[#allocation17 + $0x58] sm:$0xff] }
 0x57e   :  { %943 = vadd.xlane.f32.xlu2 %v939_v16 }
 0x59f   :  { %v848_v18 = vpop.xlane.xlu2 %847 }
 0x5a0   :  { %2300 = vrcp.f32 %v848_v18  ;;  %v860_v23 = vand.u32 2147483648, %v848_v18  ;;  %v858_v25 = vand.u32 2147483647, %v848_v18  ;;  %vm854_vm3 = vweird.f32 %v848_v18 }
 0x5a2   :  { %v861_v27 = vor.u32 1.1754944e-38, %v860_v23  ;;  %vm859_vm5 = vcmp.eq.f32.partialorder %v858_v25, 8.507059e+37  ;;  %v1061_v23 = vld [vmem:[#allocation17 + $0x28] sm:$0xff]  ;;  %v1059_v25 = vld [vmem:[#allocation17 + $0x18] sm:$0xff] }
 0x5a6   :  { %v2301_v19 = vpop.eup %2300 }
 0x5a7   :  { %v850_v20 = vmul.f32 %v2301_v19, %v848_v18  ;;  %vm855_vm2 = vweird.f32 %v2301_v19  ;;  %v1065_v18 = vld [vmem:[#allocation17 + $0x48] sm:$0xff] }
 0x5a8   :  { %vm856_vm4 = vmor %vm854_vm3, %vm855_vm2 }
 0x5a9   :  { %v851_v21 = vsub.f32 1.0, %v850_v20  ;;  %v1063_v20 = vld [vmem:[#allocation17 + $0x38] sm:$0xff] }
 0x5ab   :  { %v852_v24 = vmul.f32 %v2301_v19, %v851_v21  ;;  %v1062_v21 = vld [vmem:[#allocation17 + $0x30] sm:$0xff] }
 0x5ad   :  { %v853_v0 = vadd.f32 %v2301_v19, %v852_v24  ;;  %v1060_v24 = vld [vmem:[#allocation17 + $0x20] sm:$0xff] }
 0x5af   :  { %v857_v28 = vsel %vm856_vm4, %v2301_v19, %v853_v0  ;;  %v1064_v19 = vld [vmem:[#allocation17 + $0x40] sm:$0xff]  ;;  %v1057_v0 = vld [vmem:[#allocation17 + $0x8] sm:$0xff] }
 0x5b0   :  { %v862_v29 = vsel %vm859_vm5, %v861_v27, %v857_v28  ;;  %v1056_v27 = vld [vmem:[#allocation17] sm:$0xff]  ;;  %v3130_v28 = vld [vmem:[#allocation15] ss:$0 sm:$0xff] }
 0x5b1   :  { %v863_v30 = vmul.f32 %v2299_v10, %v862_v29  ;;  %v1068_v10 = vld [vmem:[#allocation17 + $0x60] sm:$0xff] }
 0x5b2   :  { %1079 = vmatpush.msrb.mxu1 %v1068_v10 }
 0x5b3   :  { %2207 = vmatmul.msk.f32.vlgmr.msra.gmra.mxu1 %vm591_vm1, %v863_v30 }
 0x5b4   :  { %1080 = vmatpush.msrb.mxu1 %v1067_v15  ;;  %v1167_v15 = vld [vmem:[#allocation11 + $0xd8] sm:$0xff] }
 0x5f1   :  { %v944_v17 = vpop.xlane.xlu2 %943 }
 0x5f2   :  { %v947_v33 = vmul.f32 %v944_v17, %v3020_v31 }
 0x5f4   :  { %v949_v34 = vsub.f32 %v939_v16, %v947_v33  ;;  %v1066_v16 = vld [vmem:[#allocation17 + $0x50] sm:$0xff] }
 0x5f5   :  { %1081 = vmatpush.msrb.mxu1 %v1066_v16  ;;  %v1166_v16 = vld [vmem:[#allocation11 + $0xd0] sm:$0xff] }
 0x5f6   :  { %v951_v36 = vmul.f32 %v3023_v35, %v949_v34 }
 0x5f7   :  { %1082 = vmatpush.msrb.mxu1 %v1065_v18  ;;  %v1165_v18 = vld [vmem:[#allocation11 + $0xc8] sm:$0xff] }
 0x5f8   :  { %v953_v37 = vmul.f32 %v951_v36, %v951_v36 }
 0x5f9   :  { %1083 = vmatpush.msrb.mxu1 %v1064_v19  ;;  %v1164_v19 = vld [vmem:[#allocation11 + $0xc0] sm:$0xff] }
 0x5fa   :  { %955 = vadd.xlane.f32.xlu2 %v953_v37 }
 0x5fb   :  { %1084 = vmatpush.msrb.mxu1 %v1063_v20  ;;  %v1163_v20 = vld [vmem:[#allocation11 + $0xb8] sm:$0xff] }
 0x5fd   :  { %1085 = vmatpush.msrb.mxu1 %v1062_v21  ;;  %v1160_v21 = vld [vmem:[#allocation11 + $0xa0] sm:$0xff] }
 0x5ff   :  { %1086 = vmatpush.msrb.mxu1 %v1061_v23  ;;  %v1159_v23 = vld [vmem:[#allocation11 + $0x98] sm:$0xff] }
 0x601   :  { %1087 = vmatpush.msrb.mxu1 %v1060_v24  ;;  %v1158_v24 = vld [vmem:[#allocation11 + $0x90] sm:$0xff] }
 0x603   :  { %1088 = vmatpush.msrb.mxu1 %v1059_v25  ;;  %v1157_v25 = vld [vmem:[#allocation11 + $0x88] sm:$0xff] }
 0x630   :  { %v887_v40 = vpop.f32.mrf.mxu1 }
 0x631   :  { %891 = vrot.lane.b32.xlu0 %v887_v40, %s2719_s29 }
 0x66d   :  { %v956_v54 = vpop.xlane.xlu2 %955 }
 0x66e   :  { %v959_v55 = vmul.f32 %v956_v54, %v3020_v31 }
 0x670   :  { %v961_v57 = vadd.f32 1e-12, %v959_v55 }
 0x672   :  { %2302 = vrsqrt.f32 %v961_v57  ;;  %vm969_vm7 = vweird.f32 %v961_v57 }
 0x678   :  { %v2303_v58 = vpop.eup %2302 }
 0x679   :  { %v964_v59 = vmul.f32 %v2303_v58, %v961_v57  ;;  %vm970_vm6 = vweird.f32 %v2303_v58 }
 0x67a   :  { %vm971_vm8 = vmor %vm969_vm7, %vm970_vm6 }
 0x67b   :  { %v965_v60 = vmul.f32 %v2303_v58, %v964_v59 }
 0x67d   :  { %v966_v61 = vmul.f32 0.5, %v965_v60 }
 0x67f   :  { %v967_v62 = vsub.f32 1.5, %v966_v61 }
 0x681   :  { %v968_v63 = vmul.f32 %v2303_v58, %v967_v62 }
 0x683   :  { %v972_v2 = vsel %vm971_vm8, %v2303_v58, %v968_v63 }
 0x684   :  { %v983_v3 = vmul.f32 %v972_v2, %v951_v36 }
 0x686   :  { %v988_v7 = vmul.f32 %v3118_v1, %v983_v3 }
 0x688   :  { %v993_v9 = vadd.f32 %v3123_v4, %v988_v7 }
 0x68a   :  { %1031 = vmatmul.f32.vlgmr.msrb.gmra.mxu2 %v993_v9 }
 0x6a3   :  { %v892_v11 = vpop.permute.xlu0 %891 }
 0x6a4   :  { %v894_v14 = vsel %vm563_vm15, %v3101_v12, %v892_v11  ;;  %v1058_v12 = vld [vmem:[#allocation17 + $0x10] sm:$0xff]  ;;  %v1169_v11 = vld [vmem:[#allocation11 + $0xe8] sm:$0xff] }
 0x6a5   :  { %2209 = vmatmul.msk.f32.gmra.mxu3 %vm727_vm14, %v894_v14  ;;  %1089 = vmatpush.msrb.mxu1 %v1058_v12  ;;  %v1168_v14 = vld [vmem:[#allocation11 + $0xe0] sm:$0xff] }
 0x6a6   :  { %v1156_v12 = vld [vmem:[#allocation11 + $0x80] sm:$0xff] }
 0x6a7   :  { %1090 = vmatpush.msrb.mxu1 %v1057_v0 }
 0x6a9   :  { %1091 = vmatpush.msrb.mxu1 %v1056_v27 }
 0x70d   :  { %v1032_v29 = vpop.f32.mrf.mxu2 }
 0x70e   :  { %v1033_v30 = vadd.f32 %v3130_v28, %v1032_v29 }
 0x710   :  { %v1040_v17 = vmul.f32 0.044715, %v1033_v30  ;;  %v1038_v39 = vmul.f32 0.5, %v1033_v30 }
 0x712   :  { %v1042_v33 = vmul.f32 %v1040_v17, %v1033_v30 }
 0x714   :  { %v1044_v34 = vmul.f32 %v1042_v33, %v1033_v30 }
 0x716   :  { %v1046_v36 = vadd.f32 %v1044_v34, %v1033_v30 }
 0x718   :  { %v1048_v37 = vmul.f32 0.7978846, %v1046_v36 }
 0x71a   :  { %2304 = vtanh.f32 %v1048_v37 }
 0x720   :  { %v2305_v38 = vpop.eup %2304 }
 0x721   :  { %v1052_v40 = vadd.f32 1.0, %v2305_v38  ;;  %v3152_v38 = vld [vmem:[%s3341_s17] ss:$0 sm:$0xff] }
 0x723   :  { %v1054_v41 = vmul.f32 %v1052_v40, %v1038_v39 }
 0x725   :  { %1092 = vmatmul.f32.vlgmr.msrb.gmra.mxu1 %v1054_v41  ;;  %v3157_v41 = vld [vmem:[%s3380_s15] ss:$0 sm:$0xff] }
 0x728   :  { %v936_v42 = vpop.f32.mrf.mxu3 }
 0x729   :  { %v937_v43 = vadd.f32 %v3106_v13, %v936_v42  ;;  %v1170_v13 = vld [vmem:[#allocation11 + $0xf0] sm:$0xff] }
 0x72a   :  { %1178 = vmatpush.msrb.mxu0 %v1170_v13 }
 0x72b   :  { %v940_v26 = vadd.f32 %v937_v43, %v3038_v22 }
 0x72c   :  { %1179 = vmatpush.msrb.mxu0 %v1169_v11 }
 0x72d   :  { %945 = vadd.xlane.f32.xlu2 %v940_v26 }
 0x72e   :  { %1180 = vmatpush.msrb.mxu0 %v1168_v14 }
 0x730   :  { %1181 = vmatpush.msrb.mxu0 %v1167_v15 }
 0x732   :  { %1182 = vmatpush.msrb.mxu0 %v1166_v16 }
 0x734   :  { %1183 = vmatpush.msrb.mxu0 %v1165_v18 }
 0x736   :  { %1184 = vmatpush.msrb.mxu0 %v1164_v19 }
 0x738   :  { %1185 = vmatpush.msrb.mxu0 %v1163_v20 }
 0x7a0   :  { %v946_v45 = vpop.xlane.xlu2 %945 }
 0x7a1   :  { %v948_v46 = vmul.f32 %v946_v45, %v3020_v31 }
 0x7a2   :  { %v1093_v47 = vpop.f32.mrf.mxu1 }
 0x7a3   :  { %v950_v48 = vsub.f32 %v940_v26, %v948_v46  ;;  %v1094_v49 = vadd.f32 %v3135_v44, %v1093_v47 }
 0x7a5   :  { %v1099_v50 = vadd.f32 %v1094_v49, %v993_v9  ;;  %v952_v51 = vmul.f32 %v3023_v35, %v950_v48 }
 0x7a7   :  { %1103 = vadd.xlane.f32.xlu0 %v1099_v50  ;;  %v954_v52 = vmul.f32 %v952_v51, %v952_v51 }
 0x7a9   :  { %957 = vadd.xlane.f32.xlu1 %v954_v52 }
 0x81a   :  { %v1104_v54 = vpop.xlane.xlu0 %1103 }
 0x81b   :  { %v1107_v22 = vmul.f32 %v1104_v54, %v3020_v31  ;;  %v3168_v54 = vld [vmem:[%s3378_s27 + $0x1] ss:$0 sm:$0xff] }
 0x81c   :  { %v958_v55 = vpop.xlane.xlu1 %957 }
 0x81d   :  { %v1109_v57 = vsub.f32 %v1099_v50, %v1107_v22  ;;  %v960_v58 = vmul.f32 %v958_v55, %v3020_v31 }
 0x81f   :  { %v962_v59 = vadd.f32 1e-12, %v960_v58  ;;  %v1111_v60 = vmul.f32 %v3023_v35, %v1109_v57 }
 0x821   :  { %2306 = vrsqrt.f32 %v962_v59  ;;  %v1113_v61 = vmul.f32 %v1111_v60, %v1111_v60  ;;  %vm979_vm10 = vweird.f32 %v962_v59 }
 0x823   :  { %1115 = vadd.xlane.f32.xlu2 %v1113_v61 }
 0x827   :  { %v2307_v62 = vpop.eup %2306 }
 0x828   :  { %v974_v63 = vmul.f32 %v2307_v62, %v962_v59  ;;  %vm980_vm9 = vweird.f32 %v2307_v62 }
 0x829   :  { %vm981_vm11 = vmor %vm979_vm10, %vm980_vm9 }
 0x82a   :  { %v975_v2 = vmul.f32 %v2307_v62, %v974_v63 }
 0x82c   :  { %v976_v3 = vmul.f32 0.5, %v975_v2 }
 0x82e   :  { %v977_v5 = vsub.f32 1.5, %v976_v3 }
 0x830   :  { %v978_v6 = vmul.f32 %v2307_v62, %v977_v5 }
 0x832   :  { %v982_v7 = vsel %vm981_vm11, %v2307_v62, %v978_v6 }
 0x833   :  { %v984_v8 = vmul.f32 %v982_v7, %v952_v51 }
 0x835   :  { %v989_v9 = vmul.f32 %v3118_v1, %v984_v8  ;;  %v1162_v1 = vld [vmem:[#allocation11 + $0xb0] sm:$0xff] }
 0x836   :  { %1186 = vmatpush.msrb.mxu0 %v1162_v1 }
 0x837   :  { %v3145_v10 = vadd.f32 %v3123_v4, %v989_v9  ;;  %v1161_v4 = vld [vmem:[#allocation11 + $0xa8] sm:$0xff] }
 0x838   :  { %1187 = vmatpush.msrb.mxu0 %v1161_v4 }
 0x839   :  { %1034 = vmatmul.f32.gmra.mxu2 %v3145_v10 }
 0x83a   :  { %1188 = vmatpush.msrb.mxu0 %v1160_v21 }
 0x83c   :  { %1189 = vmatpush.msrb.mxu0 %v1159_v23 }
 0x83e   :  { %1190 = vmatpush.msrb.mxu0 %v1158_v24 }
 0x840   :  { %1191 = vmatpush.msrb.mxu0 %v1157_v25 }
 0x842   :  { %1192 = vmatpush.msrb.mxu0 %v1156_v12 }
 0x896   :  { %v1116_v0 = vpop.xlane.xlu2 %1115 }
 0x897   :  { %v1119_v27 = vmul.f32 %v1116_v0, %v3020_v31 }
 0x899   :  { %v1121_v29 = vadd.f32 1e-12, %v1119_v27 }
 0x89b   :  { %2308 = vrsqrt.f32 %v1121_v29  ;;  %vm1129_vm13 = vweird.f32 %v1121_v29 }
 0x8a1   :  { %v2309_v30 = vpop.eup %2308 }
 0x8a2   :  { %v1124_v17 = vmul.f32 %v2309_v30, %v1121_v29  ;;  %vm1130_vm12 = vweird.f32 %v2309_v30 }
 0x8a3   :  { %vm1131_vm2 = vmor %vm1129_vm13, %vm1130_vm12 }
 0x8a4   :  { %v1125_v33 = vmul.f32 %v2309_v30, %v1124_v17 }
 0x8a6   :  { %v1126_v34 = vmul.f32 0.5, %v1125_v33 }
 0x8a8   :  { %v1127_v36 = vsub.f32 1.5, %v1126_v34 }
 0x8aa   :  { %v1128_v37 = vmul.f32 %v2309_v30, %v1127_v36 }
 0x8ac   :  { %v1132_v39 = vsel %vm1131_vm2, %v2309_v30, %v1128_v37 }
 0x8ad   :  { %v1143_v40 = vmul.f32 %v1132_v39, %v1111_v60 }
 0x8af   :  { %v1148_v42 = vmul.f32 %v3152_v38, %v1143_v40 }
 0x8b1   :  { %v3161_v43 = vadd.f32 %v3157_v41, %v1148_v42 }
 0x8b3   :  { %1193 = vmatmul.f32.vlgmr.msrb.gmra.mxu0 %v3161_v43 }
 0x8bc   :  { %v1035_v26 = vpop.f32.mrf.mxu2 }
 0x8bd   :  { %v1036_v45 = vadd.f32 %v3130_v28, %v1035_v26 }
 0x8bf   :  { %v1041_v46 = vmul.f32 0.044715, %v1036_v45  ;;  %v1039_v52 = vmul.f32 0.5, %v1036_v45 }
 0x8c1   :  { %v1043_v47 = vmul.f32 %v1041_v46, %v1036_v45 }
 0x8c3   :  { %v1045_v48 = vmul.f32 %v1043_v47, %v1036_v45 }
 0x8c5   :  { %v1047_v49 = vadd.f32 %v1045_v48, %v1036_v45 }
 0x8c7   :  { %v1049_v50 = vmul.f32 0.7978846, %v1047_v49 }
 0x8c9   :  { %2310 = vtanh.f32 %v1049_v50 }
 0x8cf   :  { %v2311_v51 = vpop.eup %2310 }
 0x8d0   :  { %v1053_v53 = vadd.f32 1.0, %v2311_v51 }
 0x8d2   :  { %v1055_v13 = vmul.f32 %v1053_v53, %v1039_v52 }
 0x8d4   :  { %1095 = vmatmul.f32.gmra.mxu1 %v1055_v13 }
 0x930   :  { %v1194_v22 = vpop.f32.mrf.mxu0 }
 0x931   :  { %v3171_v55 = vadd.f32 %v3168_v54, %v1194_v22 }
 0x933   :  { %1279 = vrot.lane.b32.xlu2 %v3171_v55, %s2735_s16  ;;  %1281 = vrot.lane.b32.xlu1 %v3171_v55, %s2737_s9 }
 0x93b   :  { %1201 = vrot.lane.b32.xlu2 %v3171_v55, %s2736_s19 }
 0x951   :  { %v1096_v28 = vpop.f32.mrf.mxu1 }
 0x952   :  { %v1097_v57 = vadd.f32 %v3135_v44, %v1096_v28 }
 0x954   :  { %v1100_v58 = vadd.f32 %v1097_v57, %v3145_v10 }
 0x95d   :  { %1105 = vadd.xlane.f32.xlu1 %v1100_v58 }
 0x98d   :  { %v1280_v59 = vpop.permute.xlu2 %1279 }
 0x995   :  { %v1202_v60 = vpop.permute.xlu2 %1201 }
 0x996   :  { %2211 = vmatpush.xpose.msk.msrb.mxu3 %vm563_vm15, %v1202_v60 }
 0x999   :  { %2212 = vmatmul.msk.f32.vlgmr.msrb.gmra.mxu3 %vm563_vm15, %v3171_v55 }
 0x9a5   :  { %v1282_v61 = vpop.permute.xlu1 %1281 }
 0x9a6   :  { %2214 = vmatpush.xpose.msk.msra.mxu1 %vm563_vm15, %v1282_v61 }
 0x9a9   :  { %2215 = vmatmul.msk.f32.vlgmr.msra.gmra.mxu1 %vm563_vm15, %v1280_v59 }
 0x9d0   :  { %v1106_v62 = vpop.xlane.xlu1 %1105 }
 0x9d1   :  { %v1108_v63 = vmul.f32 %v1106_v62, %v3020_v31 }
 0x9d3   :  { %v1110_v2 = vsub.f32 %v1100_v58, %v1108_v63 }
 0x9d5   :  { %v1112_v44 = vmul.f32 %v3023_v35, %v1110_v2 }
 0x9d7   :  { %v1114_v3 = vmul.f32 %v1112_v44, %v1112_v44 }
 0x9d9   :  { %1117 = vadd.xlane.f32.xlu0 %v1114_v3 }
 0xa1c   :  { %v1224_v5 = vpop.f32.mrf.mxu3 }
 0xa1d   :  { %v1227_v6 = vmul.f32 0.25, %v1224_v5 }
 0xa1f   :  { %v1228_v7 = vadd.f32 %v3061_v32, %v1227_v6 }
 0xa21   :  { %v1229_v8 = vsel %vm591_vm1, %v1228_v7, -inf }
 0xa22   :  { %1230 = vmax.xlane.f32.xlu0 %v1229_v8 }
 0xa26   :  { %v1304_v9 = vpop.f32.mrf.mxu1 }
 0xa27   :  { %v1307_v10 = vmul.f32 0.25, %v1304_v9 }
 0xa29   :  { %v1308_v11 = vadd.f32 %v3061_v32, %v1307_v10 }
 0xa2b   :  { %v1309_v14 = vsel %vm591_vm1, %v1308_v11, -inf }
 0xa2c   :  { %1310 = vmax.xlane.f32.xlu2 %v1309_v14 }
 0xa4c   :  { %v1118_v15 = vpop.xlane.xlu0 %1117 }
 0xa4d   :  { %v1120_v16 = vmul.f32 %v1118_v15, %v3020_v31 }
 0xa4f   :  { %v1122_v18 = vadd.f32 1e-12, %v1120_v16 }
 0xa51   :  { %2312 = vrsqrt.f32 %v1122_v18  ;;  %vm1139_vm4 = vweird.f32 %v1122_v18 }
 0xa57   :  { %v2313_v19 = vpop.eup %2312 }
 0xa58   :  { %v1134_v20 = vmul.f32 %v2313_v19, %v1122_v18  ;;  %vm1140_vm3 = vweird.f32 %v2313_v19 }
 0xa59   :  { %vm1141_vm5 = vmor %vm1139_vm4, %vm1140_vm3 }
 0xa5a   :  { %v1135_v1 = vmul.f32 %v2313_v19, %v1134_v20  ;;  %v1546_v20 = vld [vmem:[#allocation12 + $0xf8] sm:$0xff] }
 0xa5c   :  { %v1136_v4 = vmul.f32 0.5, %v1135_v1  ;;  %v1545_v1 = vld [vmem:[#allocation12 + $0xf0] sm:$0xff] }
 0xa5e   :  { %v1137_v21 = vsub.f32 1.5, %v1136_v4  ;;  %v1544_v4 = vld [vmem:[#allocation12 + $0xe8] sm:$0xff] }
 0xa60   :  { %v1138_v23 = vmul.f32 %v2313_v19, %v1137_v21  ;;  %v1543_v21 = vld [vmem:[#allocation12 + $0xe0] sm:$0xff] }
 0xa62   :  { %v1142_v24 = vsel %vm1141_vm5, %v2313_v19, %v1138_v23  ;;  %v1542_v23 = vld [vmem:[#allocation12 + $0xd8] sm:$0xff] }
 0xa63   :  { %v1144_v25 = vmul.f32 %v1142_v24, %v1112_v44  ;;  %v1541_v24 = vld [vmem:[#allocation12 + $0xd0] sm:$0xff] }
 0xa65   :  { %v1149_v32 = vmul.f32 %v3152_v38, %v1144_v25 }
 0xa67   :  { %v3195_v12 = vadd.f32 %v3157_v41, %v1149_v32  ;;  %v1540_v32 = vld [vmem:[#allocation12 + $0xc8] sm:$0xff] }
 0xa69   :  { %1196 = vmatmul.f32.gmra.mxu0 %v3195_v12 }
 0xa95   :  { %v1231_v33 = vpop.xlane.xlu0 %1230 }
 0xa96   :  { %v1232_v34 = vsub.f32 %v1228_v7, %v1231_v33  ;;  %v1535_v33 = vld [vmem:[#allocation12 + $0xa0] sm:$0xff] }
 0xa98   :  { %v1233_v36 = vmul.f32 1.442695, %v1232_v34  ;;  %v1534_v34 = vld [vmem:[#allocation12 + $0x98] sm:$0xff] }
 0xa9f   :  { %v1311_v0 = vpop.xlane.xlu2 %1310 }
 0xaa0   :  { %v1312_v27 = vsub.f32 %v1308_v11, %v1311_v0  ;;  %v1539_v0 = vld [vmem:[#allocation12 + $0xc0] sm:$0xff] }
 0xaa2   :  { %v1313_v29 = vmul.f32 1.442695, %v1312_v27  ;;  %v1538_v27 = vld [vmem:[#allocation12 + $0xb8] sm:$0xff] }
 0xaa4   :  { %2314 = vpow2.f32 %v1313_v29 }
 0xaa5   :  { %2316 = vpow2.f32 %v1233_v36 }
 0xaaa   :  { %v2315_v30 = vpop.eup %2314 }
 0xaab   :  { %v1315_v17 = vsel %vm591_vm1, %v2315_v30, 0.0  ;;  %v2317_v37 = vpop.eup %2316 }
 0xaac   :  { %1316 = vadd.xlane.f32.xlu0 %v1315_v17  ;;  %v1235_v40 = vsel %vm591_vm1, %v2317_v37, 0.0  ;;  %v1536_v17 = vld [vmem:[#allocation12 + $0xa8] sm:$0xff] }
 0xac0   :  { %1333 = vrot.lane.b32.xlu0 %v3171_v55, %s2739_s23 }
 0xae6   :  { %v1197_v38 = vpop.f32.mrf.mxu0 }
 0xae7   :  { %v3202_v39 = vadd.f32 %v3168_v54, %v1197_v38  ;;  %v1533_v38 = vld [vmem:[#allocation12 + $0x90] sm:$0xff] }
 0xae9   :  { %1444 = vrot.lane.b32.xlu2 %v3202_v39, %s2735_s16  ;;  %1446 = vrot.lane.b32.xlu1 %v3202_v39, %s2737_s9 }
 0xaea   :  { %1236 = vadd.xlane.f32.xlu0 %v1235_v40  ;;  %v1532_v40 = vld [vmem:[#allocation12 + $0x88] sm:$0xff] }
 0xaf1   :  { %1253 = vrot.lane.b32.xlu1 %v3171_v55, %s2738_s2 }
 0xaf9   :  { %1366 = vrot.lane.b32.xlu1 %v3202_v39, %s2736_s19 }
 0xb1f   :  { %v1317_v41 = vpop.xlane.xlu0 %1316 }
 0xb20   :  { %2318 = vrcp.f32 %v1317_v41  ;;  %v1329_v46 = vand.u32 2147483648, %v1317_v41  ;;  %v1327_v48 = vand.u32 2147483647, %v1317_v41  ;;  %vm1323_vm7 = vweird.f32 %v1317_v41 }
 0xb22   :  { %v1330_v50 = vor.u32 1.1754944e-38, %v1329_v46  ;;  %vm1328_vm9 = vcmp.eq.f32.partialorder %v1327_v48, 8.507059e+37 }
 0xb26   :  { %v2319_v42 = vpop.eup %2318 }
 0xb27   :  { %v1319_v26 = vmul.f32 %v2319_v42, %v1317_v41  ;;  %vm1324_vm6 = vweird.f32 %v2319_v42  ;;  %v1531_v41 = vld [vmem:[#allocation12 + $0x80] sm:$0xff] }
 0xb28   :  { %vm1325_vm8 = vmor %vm1323_vm7, %vm1324_vm6 }
 0xb29   :  { %v1320_v45 = vsub.f32 1.0, %v1319_v26 }
 0xb2b   :  { %v1321_v47 = vmul.f32 %v2319_v42, %v1320_v45 }
 0xb2d   :  { %v1322_v49 = vadd.f32 %v2319_v42, %v1321_v47 }
 0xb2f   :  { %v1326_v51 = vsel %vm1325_vm8, %v2319_v42, %v1322_v49 }
 0xb30   :  { %v1331_v52 = vsel %vm1328_vm9, %v1330_v50, %v1326_v51 }
 0xb31   :  { %v1332_v53 = vmul.f32 %v2315_v30, %v1331_v52  ;;  %v1537_v30 = vld [vmem:[#allocation12 + $0xb0] sm:$0xff] }
 0xb32   :  { %v1334_v13 = vpop.permute.xlu0 %1333 }
 0xb33   :  { %1354 = vmatpush.msra.mxu3 %v1334_v13 }
 0xb34   :  { %2216 = vmatmul.msk.f32.vlgmr.msra.gmra.mxu3 %vm591_vm1, %v1332_v53 }
 0xb43   :  { %v1445_v55 = vpop.permute.xlu2 %1444 }
 0xb5b   :  { %v1447_v54 = vpop.permute.xlu1 %1446 }
 0xb5c   :  { %2220 = vmatpush.xpose.msk.msrb.mxu3 %vm563_vm15, %v1447_v54 }
 0xb5d   :  { %v1237_v22 = vpop.xlane.xlu0 %1236 }
 0xb5e   :  { %2320 = vrcp.f32 %v1237_v22  ;;  %v1249_v60 = vand.u32 2147483648, %v1237_v22  ;;  %v1247_v62 = vand.u32 2147483647, %v1237_v22  ;;  %vm1243_vm11 = vweird.f32 %v1237_v22 }
 0xb5f   :  { %2221 = vmatmul.msk.f32.vlgmr.msrb.gmra.mxu3 %vm563_vm15, %v1445_v55 }
 0xb60   :  { %v1250_v44 = vor.u32 1.1754944e-38, %v1249_v60  ;;  %vm1248_vm13 = vcmp.eq.f32.partialorder %v1247_v62, 8.507059e+37 }
 0xb63   :  { %v1254_v28 = vpop.permute.xlu1 %1253 }
 0xb64   :  { %v2321_v57 = vpop.eup %2320  ;;  %1274 = vmatpush.msra.mxu2 %v1254_v28 }
 0xb65   :  { %v1239_v58 = vmul.f32 %v2321_v57, %v1237_v22  ;;  %vm1244_vm10 = vweird.f32 %v2321_v57 }
 0xb66   :  { %vm1245_vm12 = vmor %vm1243_vm11, %vm1244_vm10 }
 0xb67   :  { %v1240_v59 = vsub.f32 1.0, %v1239_v58 }
 0xb69   :  { %v1241_v61 = vmul.f32 %v2321_v57, %v1240_v59 }
 0xb6b   :  { %v1242_v63 = vadd.f32 %v2321_v57, %v1241_v61  ;;  %v1367_v2 = vpop.permute.xlu1 %1366 }
 0xb6c   :  { %2217 = vmatpush.xpose.msk.msrb.mxu2 %vm563_vm15, %v1367_v2 }
 0xb6d   :  { %v1246_v3 = vsel %vm1245_vm12, %v2321_v57, %v1242_v63 }
 0xb6e   :  { %v1251_v5 = vsel %vm1248_vm13, %v1250_v44, %v1246_v3 }
 0xb6f   :  { %v1252_v6 = vmul.f32 %v2317_v37, %v1251_v5 }
 0xb71   :  { %2213 = vmatmul.msk.f32.vlgmr.msra.gmra.mxu2 %vm591_vm1, %v1252_v6 }
 0xb72   :  { %1552 = vmatpush.msra.mxu2 %v1546_v20 }
 0xb74   :  { %1553 = vmatpush.msra.mxu2 %v1545_v1 }
 0xb76   :  { %1554 = vmatpush.msra.mxu2 %v1544_v4 }
 0xb78   :  { %1555 = vmatpush.msra.mxu2 %v1543_v21 }
 0xb79   :  { %2218 = vmatmul.msk.f32.vlgmr.msrb.gmra.mxu2 %vm563_vm15, %v3202_v39 }
 0xb7a   :  { %1556 = vmatpush.msra.mxu2 %v1542_v23  ;;  %v1649_v23 = vld [vmem:[#allocation14 + $0xf8] sm:$0xff] }
 0xb7c   :  { %1557 = vmatpush.msra.mxu2 %v1541_v24  ;;  %v1648_v24 = vld [vmem:[#allocation14 + $0xf0] sm:$0xff] }
 0xb7e   :  { %1558 = vmatpush.msra.mxu2 %v1540_v32 }
 0xb80   :  { %1559 = vmatpush.msra.mxu2 %v1539_v0  ;;  %v1646_v0 = vld [vmem:[#allocation14 + $0xe0] sm:$0xff] }
 0xb82   :  { %1560 = vmatpush.msra.mxu2 %v1538_v27  ;;  %v1645_v27 = vld [vmem:[#allocation14 + $0xd8] sm:$0xff] }
 0xb84   :  { %1561 = vmatpush.msra.mxu2 %v1537_v30  ;;  %v1643_v30 = vld [vmem:[#allocation14 + $0xc8] sm:$0xff] }
 0xb86   :  { %1562 = vmatpush.msra.mxu2 %v1536_v17  ;;  %v1642_v17 = vld [vmem:[#allocation14 + $0xc0] sm:$0xff] }
 0xb88   :  { %1563 = vmatpush.msra.mxu2 %v1535_v33  ;;  %v1641_v33 = vld [vmem:[#allocation14 + $0xb8] sm:$0xff] }
 0xb8a   :  { %1564 = vmatpush.msra.mxu2 %v1534_v34  ;;  %v1640_v34 = vld [vmem:[#allocation14 + $0xb0] sm:$0xff] }
 0xb8c   :  { %1565 = vmatpush.msra.mxu2 %v1533_v38  ;;  %v1637_v38 = vld [vmem:[#allocation14 + $0x98] sm:$0xff] }
 0xb8e   :  { %1566 = vmatpush.msra.mxu2 %v1532_v40  ;;  %v1636_v40 = vld [vmem:[#allocation14 + $0x90] sm:$0xff] }
 0xb90   :  { %1567 = vmatpush.msra.mxu2 %v1531_v41  ;;  %v1635_v41 = vld [vmem:[#allocation14 + $0x88] sm:$0xff] }
 0xbb7   :  { %v1356_v7 = vpop.f32.mrf.mxu3 }
 0xbe2   :  { %v1469_v8 = vpop.f32.mrf.mxu3 }
 0xbe3   :  { %v1472_v9 = vmul.f32 0.25, %v1469_v8 }
 0xbe5   :  { %v1473_v10 = vadd.f32 %v3080_v56, %v1472_v9 }
 0xbe7   :  { %v1474_v11 = vsel %vm591_vm1, %v1473_v10, -inf }
 0xbe8   :  { %1475 = vmax.xlane.f32.xlu2 %v1474_v11  ;;  %v3238_v11 = vld [vmem:[%s3334_s10 + $0x1] ss:$0 sm:$0xff] }
 0xbf4   :  { %v1276_v14 = vpop.f32.mrf.mxu2 }
 0xbfc   :  { %v1389_v15 = vpop.f32.mrf.mxu2 }
 0xbfd   :  { %v1392_v16 = vmul.f32 0.25, %v1389_v15 }
 0xbff   :  { %v1393_v18 = vadd.f32 %v3080_v56, %v1392_v16 }
 0xc01   :  { %v1394_v19 = vsel %vm591_vm1, %v1393_v18, -inf }
 0xc02   :  { %1395 = vmax.xlane.f32.xlu1 %v1394_v19 }
 0xc1b   :  { %1360 = vrot.lane.b32.xlu1 %v1356_v7, %s2719_s29 }
 0xc5b   :  { %v1476_v25 = vpop.xlane.xlu2 %1475 }
 0xc5c   :  { %v1477_v56 = vsub.f32 %v1473_v10, %v1476_v25 }
 0xc5e   :  { %v1478_v29 = vmul.f32 1.442695, %v1477_v56  ;;  %v1647_v56 = vld [vmem:[#allocation14 + $0xe8] sm:$0xff] }
 0xc60   :  { %2322 = vpow2.f32 %v1478_v29  ;;  %v1644_v29 = vld [vmem:[#allocation14 + $0xd0] sm:$0xff] }
 0xc66   :  { %v2323_v36 = vpop.eup %2322 }
 0xc67   :  { %v1480_v37 = vsel %vm591_vm1, %v2323_v36, 0.0 }
 0xc68   :  { %1481 = vadd.xlane.f32.xlu0 %v1480_v37  ;;  %v1638_v37 = vld [vmem:[#allocation14 + $0xa0] sm:$0xff] }
 0xc75   :  { %v1396_v42 = vpop.xlane.xlu1 %1395 }
 0xc76   :  { %v1397_v26 = vsub.f32 %v1393_v18, %v1396_v42  ;;  %v1634_v42 = vld [vmem:[#allocation14 + $0x80] sm:$0xff] }
 0xc78   :  { %v1398_v45 = vmul.f32 1.442695, %v1397_v26 }
 0xc7a   :  { %2324 = vpow2.f32 %v1398_v45 }
 0xc7c   :  { %1498 = vrot.lane.b32.xlu0 %v3202_v39, %s2739_s23 }
 0xc80   :  { %v2325_v46 = vpop.eup %2324 }
 0xc81   :  { %v1400_v47 = vsel %vm591_vm1, %v2325_v46, 0.0 }
 0xc82   :  { %1401 = vadd.xlane.f32.xlu2 %v1400_v47 }
 0xc84   :  { %1418 = vrot.lane.b32.xlu0 %v3202_v39, %s2738_s2 }
 0xc8d   :  { %v1361_v48 = vpop.permute.xlu1 %1360 }
 0xc8e   :  { %v1363_v49 = vsel %vm563_vm15, %v1276_v14, %v1361_v48 }
 0xc8f   :  { %2224 = vmatmul.msk.f32.vlgmr.msra.gmra.mxu2 %vm727_vm14, %v1363_v49 }
 0xcdb   :  { %v1482_v50 = vpop.xlane.xlu0 %1481 }
 0xcdc   :  { %2326 = vrcp.f32 %v1482_v50  ;;  %v1494_v13 = vand.u32 2147483648, %v1482_v50  ;;  %v1492_v22 = vand.u32 2147483647, %v1482_v50  ;;  %vm1488_vm3 = vweird.f32 %v1482_v50 }
 0xcde   :  { %v1495_v28 = vor.u32 1.1754944e-38, %v1494_v13  ;;  %vm1493_vm5 = vcmp.eq.f32.partialorder %v1492_v22, 8.507059e+37  ;;  %v3256_v22 = vld [vmem:[%s3336_s12 + $0x1] ss:$0 sm:$0xff] }
 0xce2   :  { %v2327_v51 = vpop.eup %2326 }
 0xce3   :  { %v1484_v52 = vmul.f32 %v2327_v51, %v1482_v50  ;;  %vm1489_vm2 = vweird.f32 %v2327_v51 }
 0xce4   :  { %vm1490_vm4 = vmor %vm1488_vm3, %vm1489_vm2 }
 0xce5   :  { %v1485_v53 = vsub.f32 1.0, %v1484_v52 }
 0xce7   :  { %v1486_v54 = vmul.f32 %v2327_v51, %v1485_v53  ;;  %v3251_v53 = vld [vmem:[%s3335_s11 + $0x1] ss:$0 sm:$0xff] }
 0xce9   :  { %v1487_v55 = vadd.f32 %v2327_v51, %v1486_v54 }
 0xceb   :  { %v1491_v57 = vsel %vm1490_vm4, %v2327_v51, %v1487_v55 }
 0xcec   :  { %v1496_v39 = vsel %vm1493_vm5, %v1495_v28, %v1491_v57  ;;  %v1712_v57 = vld [vmem:[#allocation17 + $0xf8] sm:$0xff] }
 0xced   :  { %v1497_v58 = vmul.f32 %v2323_v36, %v1496_v39  ;;  %v1639_v36 = vld [vmem:[#allocation14 + $0xa8] sm:$0xff]  ;;  %v1711_v39 = vld [vmem:[#allocation17 + $0xf0] sm:$0xff]  ;;  %1718 = vmatpush.msra.mxu3 %v1712_v57 }
 0xcee   :  { %v1499_v59 = vpop.permute.xlu0 %1498 }
 0xcef   :  { %1519 = vmatpush.msra.mxu0 %v1499_v59  ;;  %1719 = vmatpush.msra.mxu3 %v1711_v39  ;;  %v1709_v59 = vld [vmem:[#allocation17 + $0xe0] sm:$0xff] }
 0xcf0   :  { %2222 = vmatmul.msk.f32.vlgmr.msra.gmra.mxu0 %vm591_vm1, %v1497_v58  ;;  %v1710_v58 = vld [vmem:[#allocation17 + $0xe8] sm:$0xff] }
 0xcf1   :  { %1720 = vmatpush.msra.mxu3 %v1710_v58 }
 0xcf3   :  { %1721 = vmatpush.msra.mxu3 %v1709_v59 }
 0xcf5   :  { %v1402_v60 = vpop.xlane.xlu2 %1401 }
 0xcf6   :  { %2328 = vrcp.f32 %v1402_v60  ;;  %v1419_v61 = vpop.permute.xlu0 %1418  ;;  %v1414_v44 = vand.u32 2147483648, %v1402_v60  ;;  %v1412_v5 = vand.u32 2147483647, %v1402_v60  ;;  %vm1408_vm7 = vweird.f32 %v1402_v60 }
 0xcf7   :  { %1439 = vmatpush.msrb.mxu1 %v1419_v61 }
 0xcf8   :  { %v1415_v7 = vor.u32 1.1754944e-38, %v1414_v44  ;;  %vm1413_vm9 = vcmp.eq.f32.partialorder %v1412_v5, 8.507059e+37  ;;  %v1706_v44 = vld [vmem:[#allocation17 + $0xc8] sm:$0xff]  ;;  %v1704_v5 = vld [vmem:[#allocation17 + $0xb8] sm:$0xff] }
 0xcf9   :  { %1655 = vmatpush.msra.mxu1 %v1649_v23 }
 0xcfb   :  { %1656 = vmatpush.msra.mxu1 %v1648_v24 }
 0xcfc   :  { %v2329_v62 = vpop.eup %2328 }
 0xcfd   :  { %v1404_v63 = vmul.f32 %v2329_v62, %v1402_v60  ;;  %vm1409_vm6 = vweird.f32 %v2329_v62  ;;  %1657 = vmatpush.msra.mxu1 %v1647_v56 }
 0xcfe   :  { %vm1410_vm8 = vmor %vm1408_vm7, %vm1409_vm6 }
 0xcff   :  { %v1405_v2 = vsub.f32 1.0, %v1404_v63  ;;  %1658 = vmatpush.msra.mxu1 %v1646_v0  ;;  %v1708_v63 = vld [vmem:[#allocation17 + $0xd8] sm:$0xff] }
 0xd00   :  { %1722 = vmatpush.msra.mxu3 %v1708_v63 }
 0xd01   :  { %v1406_v3 = vmul.f32 %v2329_v62, %v1405_v2  ;;  %1659 = vmatpush.msra.mxu1 %v1645_v27  ;;  %v1707_v2 = vld [vmem:[#allocation17 + $0xd0] sm:$0xff] }
 0xd02   :  { %1723 = vmatpush.msra.mxu3 %v1707_v2 }
 0xd03   :  { %v1407_v6 = vadd.f32 %v2329_v62, %v1406_v3  ;;  %1660 = vmatpush.msra.mxu1 %v1644_v29  ;;  %v1705_v3 = vld [vmem:[#allocation17 + $0xc0] sm:$0xff] }
 0xd04   :  { %1724 = vmatpush.msra.mxu3 %v1706_v44  ;;  %v2275_v29 = vld [vmem:[#allocation18 + $0x1] ss:$0 sm:$0xff] }
 0xd05   :  { %v1411_v8 = vsel %vm1410_vm8, %v2329_v62, %v1407_v6  ;;  %1661 = vmatpush.msra.mxu1 %v1643_v30  ;;  %v1703_v6 = vld [vmem:[#allocation17 + $0xb0] sm:$0xff] }
 0xd06   :  { %v1416_v9 = vsel %vm1413_vm9, %v1415_v7, %v1411_v8  ;;  %1725 = vmatpush.msra.mxu3 %v1705_v3  ;;  %v1702_v7 = vld [vmem:[#allocation17 + $0xa8] sm:$0xff]  ;;  %v1701_v8 = vld [vmem:[#allocation17 + $0xa0] sm:$0xff] }
 0xd07   :  { %v1417_v10 = vmul.f32 %v2325_v46, %v1416_v9  ;;  %1662 = vmatpush.msra.mxu1 %v1642_v17  ;;  %v1700_v9 = vld [vmem:[#allocation17 + $0x98] sm:$0xff] }
 0xd08   :  { %1726 = vmatpush.msra.mxu3 %v1704_v5 }
 0xd09   :  { %2219 = vmatmul.msk.f32.vlgmr.msrb.gmra.mxu1 %vm591_vm1, %v1417_v10  ;;  %v1699_v10 = vld [vmem:[#allocation17 + $0x90] sm:$0xff] }
 0xd0a   :  { %1663 = vmatpush.msra.mxu1 %v1641_v33  ;;  %1727 = vmatpush.msra.mxu3 %v1703_v6 }
 0xd0c   :  { %1664 = vmatpush.msra.mxu1 %v1640_v34  ;;  %1728 = vmatpush.msra.mxu3 %v1702_v7 }
 0xd0e   :  { %1665 = vmatpush.msra.mxu1 %v1639_v36  ;;  %1729 = vmatpush.msra.mxu3 %v1701_v8 }
 0xd10   :  { %1666 = vmatpush.msra.mxu1 %v1638_v37  ;;  %1730 = vmatpush.msra.mxu3 %v1700_v9  ;;  %v1818_v9 = vld [vmem:[#allocation20 + $0x78] sm:$0xff] }
 0xd11   :  { %1823 = vmatpush.msrb.mxu0 %v1818_v9 }
 0xd12   :  { %v1569_v14 = vpop.f32.mrf.mxu2  ;;  %1667 = vmatpush.msra.mxu1 %v1637_v38  ;;  %1731 = vmatpush.msra.mxu3 %v1699_v10  ;;  %v1817_v10 = vld [vmem:[#allocation20 + $0x70] sm:$0xff] }
 0xd13   :  { %v1570_v15 = vadd.f32 %v3238_v11, %v1569_v14  ;;  %v2274_v14 = vld [vmem:[#allocation15 + $0x1] ss:$0 sm:$0xff]  ;;  %1824 = vmatpush.msrb.mxu0 %v1817_v10  ;;  %v1872_v10 = vld [vmem:[#allocation21 + $0xe0] sm:$0xff] }
 0xd14   :  { %1668 = vmatpush.msra.mxu1 %v1636_v40 }
 0xd15   :  { %v1575_v16 = vadd.f32 %v1570_v15, %v3161_v43 }
 0xd16   :  { %1669 = vmatpush.msra.mxu1 %v1635_v41 }
 0xd17   :  { %1581 = vadd.xlane.f32.xlu0 %v1575_v16 }
 0xd18   :  { %1670 = vmatpush.msra.mxu1 %v1634_v42 }
 0xd6d   :  { %v1521_v18 = vpop.f32.mrf.mxu0 }
 0xd6e   :  { %1525 = vrot.lane.b32.xlu2 %v1521_v18, %s2719_s29 }
 0xd86   :  { %v1441_v25 = vpop.f32.mrf.mxu1 }
 0xd8a   :  { %v1582_v19 = vpop.xlane.xlu0 %1581 }
 0xd8b   :  { %v1585_v20 = vmul.f32 %v1582_v19, %v3020_v31 }
 0xd8d   :  { %v1587_v1 = vsub.f32 %v1575_v16, %v1585_v20 }
 0xd8f   :  { %v1589_v4 = vmul.f32 %v3023_v35, %v1587_v1 }
 0xd91   :  { %v1591_v21 = vmul.f32 %v1589_v4, %v1589_v4 }
 0xd93   :  { %1593 = vadd.xlane.f32.xlu1 %v1591_v21 }
 0xdc8   :  { %v1526_v32 = vpop.permute.xlu2 %1525 }
 0xdc9   :  { %v1528_v43 = vsel %vm563_vm15, %v1441_v25, %v1526_v32 }
 0xdca   :  { %2225 = vmatmul.msk.f32.gmra.mxu2 %vm727_vm14, %v1528_v43 }
 0xe06   :  { %v1594_v26 = vpop.xlane.xlu1 %1593 }
 0xe07   :  { %v1597_v45 = vmul.f32 %v1594_v26, %v3020_v31 }
 0xe09   :  { %v1599_v46 = vadd.f32 1e-12, %v1597_v45 }
 0xe0b   :  { %2330 = vrsqrt.f32 %v1599_v46  ;;  %vm1607_vm1 = vweird.f32 %v1599_v46 }
 0xe11   :  { %v2331_v47 = vpop.eup %2330 }
 0xe12   :  { %v1602_v48 = vmul.f32 %v2331_v47, %v1599_v46  ;;  %vm1608_vm15 = vweird.f32 %v2331_v47 }
 0xe13   :  { %vm1609_vm14 = vmor %vm1607_vm1, %vm1608_vm15 }
 0xe14   :  { %v1603_v49 = vmul.f32 %v2331_v47, %v1602_v48 }
 0xe16   :  { %v1604_v50 = vmul.f32 0.5, %v1603_v49 }
 0xe18   :  { %v1605_v51 = vsub.f32 1.5, %v1604_v50 }
 0xe1a   :  { %v1606_v52 = vmul.f32 %v2331_v47, %v1605_v51 }
 0xe1c   :  { %v1610_v13 = vsel %vm1609_vm14, %v2331_v47, %v1606_v52 }
 0xe1d   :  { %v1621_v54 = vmul.f32 %v1610_v13, %v1589_v4 }
 0xe1f   :  { %v1626_v55 = vmul.f32 %v3251_v53, %v1621_v54 }
 0xe21   :  { %v1631_v28 = vadd.f32 %v3256_v22, %v1626_v55 }
 0xe23   :  { %1671 = vmatmul.f32.vlgmr.msra.gmra.mxu1 %v1631_v28 }
 0xe4d   :  { %v1572_v60 = vpop.f32.mrf.mxu2 }
 0xe4e   :  { %v1573_v61 = vadd.f32 %v3238_v11, %v1572_v60  ;;  %v1697_v11 = vld [vmem:[#allocation17 + $0x80] sm:$0xff] }
 0xe50   :  { %v1576_v62 = vadd.f32 %v1573_v61, %v3195_v12  ;;  %v1698_v12 = vld [vmem:[#allocation17 + $0x88] sm:$0xff] }
 0xe51   :  { %1732 = vmatpush.msra.mxu3 %v1698_v12  ;;  %v1816_v12 = vld [vmem:[#allocation20 + $0x68] sm:$0xff] }
 0xe52   :  { %1583 = vadd.xlane.f32.xlu2 %v1576_v62  ;;  %1825 = vmatpush.msrb.mxu0 %v1816_v12  ;;  %v1873_v12 = vld [vmem:[#allocation21 + $0xe8] sm:$0xff] }
 0xe53   :  { %1733 = vmatpush.msra.mxu3 %v1697_v11  ;;  %v1815_v11 = vld [vmem:[#allocation20 + $0x60] sm:$0xff] }
 0xe54   :  { %1826 = vmatpush.msrb.mxu0 %v1815_v11  ;;  %v1874_v11 = vld [vmem:[#allocation21 + $0xf0] sm:$0xff] }
 0xea0   :  { %v1672_v15 = vpop.f32.mrf.mxu1 }
 0xea1   :  { %v1673_v16 = vadd.f32 %v2274_v14, %v1672_v15 }
 0xea3   :  { %v1680_v18 = vmul.f32 0.044715, %v1673_v16  ;;  %v1678_v23 = vmul.f32 0.5, %v1673_v16 }
 0xea5   :  { %v1682_v19 = vmul.f32 %v1680_v18, %v1673_v16  ;;  %v1812_v18 = vld [vmem:[#allocation20 + $0x48] sm:$0xff] }
 0xea7   :  { %v1684_v20 = vmul.f32 %v1682_v19, %v1673_v16  ;;  %v1811_v19 = vld [vmem:[#allocation20 + $0x40] sm:$0xff] }
 0xea9   :  { %v1686_v1 = vadd.f32 %v1684_v20, %v1673_v16  ;;  %v1813_v16 = vld [vmem:[#allocation20 + $0x50] sm:$0xff]  ;;  %v1810_v20 = vld [vmem:[#allocation20 + $0x38] sm:$0xff] }
 0xeab   :  { %v1688_v4 = vmul.f32 0.7978846, %v1686_v1 }
 0xead   :  { %2332 = vtanh.f32 %v1688_v4  ;;  %v1809_v4 = vld [vmem:[#allocation20 + $0x30] sm:$0xff] }
 0xeb3   :  { %v2333_v21 = vpop.eup %2332 }
 0xeb4   :  { %v1692_v24 = vadd.f32 1.0, %v2333_v21  ;;  %v1808_v21 = vld [vmem:[#allocation20 + $0x28] sm:$0xff] }
 0xeb6   :  { %v1694_v25 = vmul.f32 %v1692_v24, %v1678_v23  ;;  %v1807_v23 = vld [vmem:[#allocation20 + $0x20] sm:$0xff]  ;;  %v1806_v24 = vld [vmem:[#allocation20 + $0x18] sm:$0xff] }
 0xeb8   :  { %1734 = vmatmul.f32.vlgmr.msra.gmra.mxu3 %v1694_v25  ;;  %v1805_v25 = vld [vmem:[#allocation20 + $0x10] sm:$0xff] }
 0xec5   :  { %v1584_v32 = vpop.xlane.xlu2 %1583 }
 0xec6   :  { %v1586_v43 = vmul.f32 %v1584_v32, %v3020_v31  ;;  %v1804_v32 = vld [vmem:[#allocation20 + $0x8] sm:$0xff] }
 0xec8   :  { %v1588_v56 = vsub.f32 %v1576_v62, %v1586_v43 }
 0xeca   :  { %v1590_v0 = vmul.f32 %v3023_v35, %v1588_v56  ;;  %v1803_v56 = vld [vmem:[#allocation20] sm:$0xff] }
 0xecc   :  { %v1592_v27 = vmul.f32 %v1590_v0, %v1590_v0 }
 0xece   :  { %1595 = vadd.xlane.f32.xlu0 %v1592_v27 }
 0xf3b   :  { %v1735_v30 = vpop.f32.mrf.mxu3 }
 0xf3c   :  { %v1736_v17 = vadd.f32 %v2275_v29, %v1735_v30  ;;  %v1905_v30 = vld [vmem:[#allocation21 + $0x1e8] sm:$0xff] }
 0xf3d   :  { %1938 = vmatpush.msrb.mxu1 %v1905_v30 }
 0xf3e   :  { %v1741_v33 = vadd.f32 %v1736_v17, %v1631_v28  ;;  %v1906_v17 = vld [vmem:[#allocation21 + $0x1f0] sm:$0xff] }
 0xf3f   :  { %1958 = vmatpush.msrb.mxu3 %v1906_v17  ;;  %v2277_v17 = vld [vmem:[%s3380_s15 + $0x1] ss:$0 sm:$0xff] }
 0xf40   :  { %1747 = vadd.xlane.f32.xlu2 %v1741_v33 }
 0xf41   :  { %v1596_v34 = vpop.xlane.xlu0 %1595 }
 0xf42   :  { %v1598_v36 = vmul.f32 %v1596_v34, %v3020_v31  ;;  %v1907_v34 = vld [vmem:[#allocation21 + $0x1f8] sm:$0xff] }
 0xf44   :  { %v1600_v37 = vadd.f32 1e-12, %v1598_v36  ;;  %v1900_v36 = vld [vmem:[#allocation21 + $0x1c0] sm:$0xff] }
 0xf46   :  { %2334 = vrsqrt.f32 %v1600_v37  ;;  %vm1617_vm11 = vweird.f32 %v1600_v37 }
 0xf4c   :  { %v2335_v38 = vpop.eup %2334 }
 0xf4d   :  { %v1612_v40 = vmul.f32 %v2335_v38, %v1600_v37  ;;  %vm1618_vm10 = vweird.f32 %v2335_v38  ;;  %v1901_v37 = vld [vmem:[#allocation21 + $0x1c8] sm:$0xff] }
 0xf4e   :  { %vm1619_vm12 = vmor %vm1617_vm11, %vm1618_vm10  ;;  %1939 = vmatpush.msrb.mxu1 %v1901_v37  ;;  %v1860_v37 = vld [vmem:[#allocation21 + $0x80] sm:$0xff] }
 0xf4f   :  { %v1613_v41 = vmul.f32 %v2335_v38, %v1612_v40  ;;  %v1902_v40 = vld [vmem:[#allocation21 + $0x1d0] sm:$0xff] }
 0xf50   :  { %1959 = vmatpush.msrb.mxu3 %v1902_v40  ;;  %v1862_v40 = vld [vmem:[#allocation21 + $0x90] sm:$0xff] }
 0xf51   :  { %v1614_v42 = vmul.f32 0.5, %v1613_v41  ;;  %v1903_v41 = vld [vmem:[#allocation21 + $0x1d8] sm:$0xff] }
 0xf53   :  { %v1615_v26 = vsub.f32 1.5, %v1614_v42  ;;  %v1896_v42 = vld [vmem:[#allocation21 + $0x1a0] sm:$0xff] }
 0xf55   :  { %v1616_v45 = vmul.f32 %v2335_v38, %v1615_v26 }
 0xf57   :  { %v1620_v46 = vsel %vm1619_vm12, %v2335_v38, %v1616_v45  ;;  %v1897_v45 = vld [vmem:[#allocation21 + $0x1a8] sm:$0xff] }
 0xf58   :  { %v1622_v47 = vmul.f32 %v1620_v46, %v1590_v0  ;;  %v1898_v46 = vld [vmem:[#allocation21 + $0x1b0] sm:$0xff]  ;;  %1940 = vmatpush.msrb.mxu1 %v1897_v45  ;;  %v1859_v45 = vld [vmem:[#allocation21 + $0x78] sm:$0xff] }
 0xf59   :  { %1960 = vmatpush.msrb.mxu3 %v1898_v46  ;;  %v1852_v46 = vld [vmem:[#allocation21 + $0x40] sm:$0xff] }
 0xf5a   :  { %v1627_v48 = vmul.f32 %v3251_v53, %v1622_v47  ;;  %v1899_v47 = vld [vmem:[#allocation21 + $0x1b8] sm:$0xff] }
 0xf5c   :  { %v1632_v49 = vadd.f32 %v3256_v22, %v1627_v48  ;;  %v1893_v48 = vld [vmem:[#allocation21 + $0x188] sm:$0xff] }
 0xf5d   :  { %1941 = vmatpush.msrb.mxu1 %v1893_v48  ;;  %v1855_v48 = vld [vmem:[#allocation21 + $0x58] sm:$0xff] }
 0xf5e   :  { %1674 = vmatmul.f32.gmra.mxu1 %v1632_v49 }
 0xfb3   :  { %v1748_v50 = vpop.xlane.xlu2 %1747 }
 0xfb4   :  { %v1751_v51 = vmul.f32 %v1748_v50, %v3020_v31  ;;  %v1895_v50 = vld [vmem:[#allocation21 + $0x198] sm:$0xff] }
 0xfb6   :  { %v1753_v52 = vsub.f32 %v1741_v33, %v1751_v51 }
 0xfb8   :  { %v3269_v13 = vmul.f32 %v3023_v35, %v1753_v52  ;;  %v1888_v52 = vld [vmem:[#allocation21 + $0x160] sm:$0xff] }
 0xfba   :  { %v1757_v54 = vmul.f32 %v3269_v13, %v3269_v13 }
 0xfbc   :  { %1759 = vadd.xlane.f32.xlu1 %v1757_v54  ;;  %v1889_v54 = vld [vmem:[#allocation21 + $0x168] sm:$0xff] }
 0xfbd   :  { %1942 = vmatpush.msrb.mxu1 %v1889_v54  ;;  %v1844_v54 = vld [vmem:[#allocation21] sm:$0xff] }
 0xfdb   :  { %v1675_v55 = vpop.f32.mrf.mxu1 }
 0xfdc   :  { %v1676_v28 = vadd.f32 %v2274_v14, %v1675_v55  ;;  %v1814_v14 = vld [vmem:[#allocation20 + $0x58] sm:$0xff]  ;;  %v1890_v55 = vld [vmem:[#allocation21 + $0x170] sm:$0xff] }
 0xfdd   :  { %1827 = vmatpush.msrb.mxu0 %v1814_v14  ;;  %v1875_v14 = vld [vmem:[#allocation21 + $0xf8] sm:$0xff] }
 0xfde   :  { %v1681_v57 = vmul.f32 0.044715, %v1676_v28  ;;  %v1679_v60 = vmul.f32 0.5, %v1676_v28 }
 0xfdf   :  { %1828 = vmatpush.msrb.mxu0 %v1813_v16  ;;  %v1868_v16 = vld [vmem:[#allocation21 + $0xc0] sm:$0xff] }
 0xfe0   :  { %v1683_v39 = vmul.f32 %v1681_v57, %v1676_v28  ;;  %v1884_v57 = vld [vmem:[#allocation21 + $0x140] sm:$0xff] }
 0xfe1   :  { %1829 = vmatpush.msrb.mxu0 %v1812_v18  ;;  %v1869_v18 = vld [vmem:[#allocation21 + $0xc8] sm:$0xff] }
 0xfe2   :  { %v1685_v58 = vmul.f32 %v1683_v39, %v1676_v28  ;;  %v1885_v39 = vld [vmem:[#allocation21 + $0x148] sm:$0xff] }
 0xfe3   :  { %1830 = vmatpush.msrb.mxu0 %v1811_v19  ;;  %1943 = vmatpush.msrb.mxu1 %v1885_v39  ;;  %v1870_v19 = vld [vmem:[#allocation21 + $0xd0] sm:$0xff]  ;;  %v2033_v39 = vld [vmem:[#allocation23 + $0xf8] sm:$0xff] }
 0xfe4   :  { %v1687_v53 = vadd.f32 %v1685_v58, %v1676_v28  ;;  %v1891_v28 = vld [vmem:[#allocation21 + $0x178] sm:$0xff]  ;;  %v1886_v58 = vld [vmem:[#allocation21 + $0x150] sm:$0xff] }
 0xfe5   :  { %1831 = vmatpush.msrb.mxu0 %v1810_v20  ;;  %v1871_v20 = vld [vmem:[#allocation21 + $0xd8] sm:$0xff] }
 0xfe6   :  { %v1689_v59 = vmul.f32 0.7978846, %v1687_v53  ;;  %v1887_v53 = vld [vmem:[#allocation21 + $0x158] sm:$0xff] }
 0xfe7   :  { %1832 = vmatpush.msrb.mxu0 %v1809_v4 }
 0xfe8   :  { %2336 = vtanh.f32 %v1689_v59 }
 0xfe9   :  { %1833 = vmatpush.msrb.mxu0 %v1808_v21  ;;  %v1864_v21 = vld [vmem:[#allocation21 + $0xa0] sm:$0xff] }
 0xfeb   :  { %1834 = vmatpush.msrb.mxu0 %v1807_v23  ;;  %v1865_v23 = vld [vmem:[#allocation21 + $0xa8] sm:$0xff] }
 0xfed   :  { %1835 = vmatpush.msrb.mxu0 %v1806_v24  ;;  %v1866_v24 = vld [vmem:[#allocation21 + $0xb0] sm:$0xff] }
 0xfee   :  { %v2337_v22 = vpop.eup %2336 }
 0xfef   :  { %v1693_v61 = vadd.f32 1.0, %v2337_v22  ;;  %1836 = vmatpush.msrb.mxu0 %v1805_v25  ;;  %v1880_v22 = vld [vmem:[#allocation21 + $0x120] sm:$0xff]  ;;  %v1867_v25 = vld [vmem:[#allocation21 + $0xb8] sm:$0xff] }
 0xff1   :  { %v1695_v62 = vmul.f32 %v1693_v61, %v1679_v60  ;;  %1837 = vmatpush.msrb.mxu0 %v1804_v32  ;;  %v1881_v60 = vld [vmem:[#allocation21 + $0x128] sm:$0xff] }
 0xff2   :  { %1944 = vmatpush.msrb.mxu1 %v1881_v60  ;;  %v2063_v60 = vld [vmem:[#allocation23 + $0x1e8] sm:$0xff] }
 0xff3   :  { %1737 = vmatmul.f32.gmra.mxu3 %v1695_v62  ;;  %1838 = vmatpush.msrb.mxu0 %v1803_v56  ;;  %v1882_v62 = vld [vmem:[#allocation21 + $0x130] sm:$0xff] }
 0xff5   :  { %1978 = vmatpush.msra.mxu0 %v1907_v34 }
 0xff7   :  { %1979 = vmatpush.msra.mxu0 %v1903_v41  ;;  %v1863_v41 = vld [vmem:[#allocation21 + $0x98] sm:$0xff] }
 0xff9   :  { %1980 = vmatpush.msra.mxu0 %v1899_v47  ;;  %v1853_v47 = vld [vmem:[#allocation21 + $0x48] sm:$0xff] }
 0xffb   :  { %1981 = vmatpush.msra.mxu0 %v1895_v50  ;;  %v1849_v50 = vld [vmem:[#allocation21 + $0x28] sm:$0xff] }
 0xffd   :  { %1982 = vmatpush.msra.mxu0 %v1891_v28  ;;  %v1846_v28 = vld [vmem:[#allocation21 + $0x10] sm:$0xff] }
 0xfff   :  { %1983 = vmatpush.msra.mxu0 %v1887_v53  ;;  %v2032_v53 = vld [vmem:[#allocation23 + $0xf0] sm:$0xff] }
0x102f   :  { %v1760_v15 = vpop.xlane.xlu1 %1759 }
0x1076   :  { %v1738_v63 = vpop.f32.mrf.mxu3 }
0x1077   :  { %v1739_v2 = vadd.f32 %v2275_v29, %v1738_v63  ;;  %v1904_v29 = vld [vmem:[#allocation21 + $0x1e0] sm:$0xff]  ;;  %v1883_v63 = vld [vmem:[#allocation21 + $0x138] sm:$0xff] }
0x1078   :  { %1918 = vmatpush.msrb.mxu2 %v1904_v29  ;;  %1984 = vmatpush.msra.mxu0 %v1883_v63  ;;  %v2016_v63 = vld [vmem:[#allocation23 + $0x70] sm:$0xff] }
0x1079   :  { %v1742_v44 = vadd.f32 %v1739_v2, %v1632_v49  ;;  %v1894_v49 = vld [vmem:[#allocation21 + $0x190] sm:$0xff] }
0x107a   :  { %1919 = vmatpush.msrb.mxu2 %v1900_v36  ;;  %1961 = vmatpush.msrb.mxu3 %v1894_v49  ;;  %v1848_v49 = vld [vmem:[#allocation21 + $0x20] sm:$0xff] }
0x107b   :  { %1749 = vadd.xlane.f32.xlu0 %v1742_v44 }
0x107c   :  { %1920 = vmatpush.msrb.mxu2 %v1896_v42  ;;  %1962 = vmatpush.msrb.mxu3 %v1890_v55  ;;  %v1857_v42 = vld [vmem:[#allocation21 + $0x68] sm:$0xff] }
0x107d   :  { %v1845_v55 = vld [vmem:[#allocation21 + $0x8] sm:$0xff] }
0x107e   :  { %1963 = vmatpush.msrb.mxu3 %v1886_v58  ;;  %v2065_v58 = vld [vmem:[#allocation23 + $0x1f8] sm:$0xff] }
0x1080   :  { %1964 = vmatpush.msrb.mxu3 %v1882_v62  ;;  %v2049_v62 = vld [vmem:[#allocation23 + $0x178] sm:$0xff] }
0x10ee   :  { %v1750_v3 = vpop.xlane.xlu0 %1749 }
0x10ef   :  { %v1752_v5 = vmul.f32 %v1750_v3, %v3020_v31  ;;  %v1877_v3 = vld [vmem:[#allocation21 + $0x108] sm:$0xff] }
0x10f0   :  { %1945 = vmatpush.msrb.mxu1 %v1877_v3  ;;  %v2048_v3 = vld [vmem:[#allocation23 + $0x170] sm:$0xff] }
0x10f1   :  { %v1754_v6 = vsub.f32 %v1742_v44, %v1752_v5  ;;  %v1876_v44 = vld [vmem:[#allocation21 + $0x100] sm:$0xff]  ;;  %v1878_v5 = vld [vmem:[#allocation21 + $0x110] sm:$0xff] }
0x10f2   :  { %1965 = vmatpush.msrb.mxu3 %v1878_v5  ;;  %1946 = vmatpush.msrb.mxu1 %v1873_v12  ;;  %v2015_v5 = vld [vmem:[#allocation23 + $0x68] sm:$0xff]  ;;  %v2046_v12 = vld [vmem:[#allocation23 + $0x160] sm:$0xff] }
0x10f3   :  { %v3275_v7 = vmul.f32 %v3023_v35, %v1754_v6  ;;  %v1763_v35 = vmul.f32 %v1760_v15, %v3020_v31  ;;  %v1879_v6 = vld [vmem:[#allocation21 + $0x118] sm:$0xff] }
0x10f4   :  { %1985 = vmatpush.msra.mxu0 %v1879_v6  ;;  %1966 = vmatpush.msrb.mxu3 %v1874_v11  ;;  %v2047_v6 = vld [vmem:[#allocation23 + $0x168] sm:$0xff]  ;;  %v2028_v11 = vld [vmem:[#allocation23 + $0xd0] sm:$0xff] }
0x10f5   :  { %v1758_v8 = vmul.f32 %v3275_v7, %v3275_v7  ;;  %v3280_v1 = vadd.f32 1e-12, %v1763_v35  ;;  %1947 = vmatpush.msrb.mxu1 %v1869_v18  ;;  %v2027_v18 = vld [vmem:[#allocation23 + $0xc8] sm:$0xff] }
0x10f6   :  { %1986 = vmatpush.msra.mxu0 %v1875_v14  ;;  %1967 = vmatpush.msrb.mxu3 %v1870_v19  ;;  %v2060_v14 = vld [vmem:[#allocation23 + $0x1d0] sm:$0xff]  ;;  %v2059_v35 = vld [vmem:[#allocation23 + $0x1c8] sm:$0xff] }
0x10f7   :  { %1761 = vadd.xlane.f32.xlu0 %v1758_v8  ;;  %2338 = vrsqrt.f32 %v3280_v1  ;;  %vm1773_vm2 = vweird.f32 %v3280_v1  ;;  %1948 = vmatpush.msrb.mxu1 %v1865_v23  ;;  %v2012_v19 = vld [vmem:[#allocation23 + $0x50] sm:$0xff]  ;;  %v2043_v23 = vld [vmem:[#allocation23 + $0x148] sm:$0xff] }
0x10f8   :  { %1987 = vmatpush.msra.mxu0 %v1871_v20  ;;  %1968 = vmatpush.msrb.mxu3 %v1866_v24  ;;  %v2044_v20 = vld [vmem:[#allocation23 + $0x150] sm:$0xff]  ;;  %v2025_v24 = vld [vmem:[#allocation23 + $0xb8] sm:$0xff] }
0x10fa   :  { %1988 = vmatpush.msra.mxu0 %v1867_v25  ;;  %1969 = vmatpush.msrb.mxu3 %v1862_v40  ;;  %v2057_v25 = vld [vmem:[#allocation23 + $0x1b8] sm:$0xff] }
0x10fc   :  { %1989 = vmatpush.msra.mxu0 %v1863_v41  ;;  %v2021_v41 = vld [vmem:[#allocation23 + $0x98] sm:$0xff] }
0x10fd   :  { %v3283_v43 = vpop.eup %2338 }
0x10fe   :  { %v1768_v0 = vmul.f32 %v3283_v43, %v3280_v1  ;;  %vm1774_vm13 = vweird.f32 %v3283_v43  ;;  %1990 = vmatpush.msra.mxu0 %v1859_v45  ;;  %v2020_v45 = vld [vmem:[#allocation23 + $0x90] sm:$0xff] }
0x10ff   :  { %vm3298_vm3 = vmor %vm1773_vm2, %vm1774_vm13 }
0x1100   :  { %v1769_v38 = vmul.f32 %v3283_v43, %v1768_v0  ;;  %1991 = vmatpush.msra.mxu0 %v1855_v48  ;;  %v2019_v48 = vld [vmem:[#allocation23 + $0x88] sm:$0xff] }
0x1102   :  { %v1770_v51 = vmul.f32 0.5, %v1769_v38  ;;  %v1861_v38 = vld [vmem:[#allocation21 + $0x88] sm:$0xff] }
0x1103   :  { %1949 = vmatpush.msrb.mxu1 %v1861_v38 }
0x1104   :  { %v1771_v59 = vsub.f32 1.5, %v1770_v51  ;;  %v1850_v51 = vld [vmem:[#allocation21 + $0x30] sm:$0xff] }
0x1105   :  { %1950 = vmatpush.msrb.mxu1 %v1857_v42 }
0x1106   :  { %v1772_v8 = vmul.f32 %v3283_v43, %v1771_v59  ;;  %v2064_v59 = vld [vmem:[#allocation23 + $0x1f0] sm:$0xff] }
0x1107   :  { %1951 = vmatpush.msrb.mxu1 %v1853_v47  ;;  %v2052_v47 = vld [vmem:[#allocation23 + $0x190] sm:$0xff] }
0x1108   :  { %v1776_v4 = vsel %vm3298_vm3, %v3283_v43, %v1772_v8  ;;  %v2276_v43 = vld [vmem:[%s3341_s17 + $0x1] ss:$0 sm:$0xff] }
0x1109   :  { %v1787_v56 = vmul.f32 %v1776_v4, %v3269_v13  ;;  %1952 = vmatpush.msrb.mxu1 %v1849_v50  ;;  %v2029_v8 = vld [vmem:[#allocation23 + $0xd8] sm:$0xff]  ;;  %v2026_v4 = vld [vmem:[#allocation23 + $0xc0] sm:$0xff]  ;;  %v2051_v50 = vld [vmem:[#allocation23 + $0x188] sm:$0xff] }
0x110b   :  { %v1792_v29 = vmul.f32 %v2276_v43, %v1787_v56  ;;  %1953 = vmatpush.msrb.mxu1 %v1845_v55  ;;  %v2042_v56 = vld [vmem:[#allocation23 + $0x140] sm:$0xff] }
0x110c   :  { %v2050_v55 = vld [vmem:[#allocation23 + $0x180] sm:$0xff] }
0x110d   :  { %v1797_v13 = vadd.f32 %v2277_v17, %v1792_v29  ;;  %2090 = vmatpush.msra.mxu1 %v2033_v39  ;;  %v2041_v29 = vld [vmem:[#allocation23 + $0x138] sm:$0xff]  ;;  %v2003_v39 = vld [vmem:[#allocation23 + $0x8] sm:$0xff] }
0x110f   :  { %2091 = vmatpush.msra.mxu1 %v2032_v53  ;;  %v2002_v53 = vld [vmem:[#allocation23] sm:$0xff] }
0x116a   :  { %v1762_v27 = vpop.xlane.xlu0 %1761 }
0x116b   :  { %v1764_v33 = vmul.f32 %v1762_v27, %v3020_v31  ;;  %v1892_v31 = vld [vmem:[#allocation21 + $0x180] sm:$0xff] }
0x116c   :  { %1921 = vmatpush.msrb.mxu2 %v1892_v31  ;;  %v1854_v31 = vld [vmem:[#allocation21 + $0x50] sm:$0xff] }
0x116d   :  { %v3289_v26 = vadd.f32 1e-12, %v1764_v33 }
0x116e   :  { %1922 = vmatpush.msrb.mxu2 %v1888_v52  ;;  %v1851_v52 = vld [vmem:[#allocation21 + $0x38] sm:$0xff] }
0x116f   :  { %2340 = vrsqrt.f32 %v3289_v26  ;;  %vm1783_vm5 = vweird.f32 %v3289_v26  ;;  %1992 = vmatpush.msra.mxu0 %v1851_v52  ;;  %v2018_v52 = vld [vmem:[#allocation23 + $0x80] sm:$0xff] }
0x1170   :  { %1923 = vmatpush.msrb.mxu2 %v1884_v57  ;;  %v1847_v57 = vld [vmem:[#allocation21 + $0x18] sm:$0xff] }
0x1171   :  { %1993 = vmatpush.msra.mxu0 %v1847_v57  ;;  %v2036_v57 = vld [vmem:[#allocation23 + $0x110] sm:$0xff] }
0x1172   :  { %1924 = vmatpush.msrb.mxu2 %v1880_v22  ;;  %v2031_v22 = vld [vmem:[#allocation23 + $0xe8] sm:$0xff] }
0x1173   :  { %2092 = vmatpush.msra.mxu1 %v2031_v22  ;;  %v1908_v22 = vld [vmem:[%s3346_s22] sm:$0xf] }
0x1174   :  { %1925 = vmatpush.msrb.mxu2 %v1876_v44  ;;  %v2062_v44 = vld [vmem:[#allocation23 + $0x1e0] sm:$0xff] }
0x1175   :  { %v2341_v61 = vpop.eup %2340 }
0x1176   :  { %v1778_v2 = vmul.f32 %v2341_v61, %v3289_v26  ;;  %1926 = vmatpush.msrb.mxu2 %v1872_v10  ;;  %vm1784_vm4 = vweird.f32 %v2341_v61  ;;  %v1858_v26 = vld [vmem:[#allocation21 + $0x70] sm:$0xff]  ;;  %v2014_v10 = vld [vmem:[#allocation23 + $0x60] sm:$0xff] }
0x1177   :  { %vm1785_vm6 = vmor %vm1783_vm5, %vm1784_vm4  ;;  %1970 = vmatpush.msrb.mxu3 %v1858_v26  ;;  %v2007_v26 = vld [vmem:[#allocation23 + $0x28] sm:$0xff] }
0x1178   :  { %v1779_v9 = vmul.f32 %v2341_v61, %v1778_v2  ;;  %1927 = vmatpush.msrb.mxu2 %v1868_v16  ;;  %v2030_v2 = vld [vmem:[#allocation23 + $0xe0] sm:$0xff]  ;;  %v2045_v16 = vld [vmem:[#allocation23 + $0x158] sm:$0xff] }
0x1179   :  { %1971 = vmatpush.msrb.mxu3 %v1854_v31  ;;  %2093 = vmatpush.msra.mxu1 %v2030_v2  ;;  %v2006_v31 = vld [vmem:[#allocation23 + $0x20] sm:$0xff] }
0x117a   :  { %v1780_v15 = vmul.f32 0.5, %v1779_v9  ;;  %1928 = vmatpush.msrb.mxu2 %v1864_v21  ;;  %v2061_v9 = vld [vmem:[#allocation23 + $0x1d8] sm:$0xff]  ;;  %v2011_v21 = vld [vmem:[#allocation23 + $0x48] sm:$0xff] }
0x117b   :  { %1972 = vmatpush.msrb.mxu3 %v1850_v51  ;;  %2094 = vmatpush.msra.mxu1 %v2029_v8  ;;  %v2005_v51 = vld [vmem:[#allocation23 + $0x18] sm:$0xff]  ;;  %v1912_v8 = vperm.slane %v1908_v22, 2 }
0x117c   :  { %v1781_v1 = vsub.f32 1.5, %v1780_v15  ;;  %1929 = vmatpush.msrb.mxu2 %v1860_v37  ;;  %v2013_v15 = vld [vmem:[#allocation23 + $0x58] sm:$0xff]  ;;  %v2054_v37 = vld [vmem:[#allocation23 + $0x1a0] sm:$0xff] }
0x117d   :  { %1973 = vmatpush.msrb.mxu3 %v1846_v28  ;;  %2095 = vmatpush.msra.mxu1 %v2028_v11  ;;  %v2004_v28 = vld [vmem:[#allocation23 + $0x10] sm:$0xff] }
0x117e   :  { %v1782_v32 = vmul.f32 %v2341_v61, %v1781_v1  ;;  %v2058_v1 = vld [vmem:[#allocation23 + $0x1c0] sm:$0xff] }
0x117f   :  { %2110 = vmatpush.msra.mxu3 %v2049_v62  ;;  %2096 = vmatpush.msra.mxu1 %v2027_v18 }
0x1180   :  { %v1786_v0 = vsel %vm1785_vm6, %v2341_v61, %v1782_v32  ;;  %v2017_v61 = vld [vmem:[#allocation23 + $0x78] sm:$0xff]  ;;  %v2010_v32 = vld [vmem:[#allocation23 + $0x40] sm:$0xff] }
0x1181   :  { %v1788_v27 = vmul.f32 %v1786_v0, %v3275_v7  ;;  %v1856_v7 = vld [vmem:[#allocation21 + $0x60] sm:$0xff]  ;;  %2111 = vmatpush.msra.mxu3 %v2048_v3  ;;  %2097 = vmatpush.msra.mxu1 %v2026_v4  ;;  %v2056_v0 = vld [vmem:[#allocation23 + $0x1b0] sm:$0xff] }
0x1182   :  { %1930 = vmatpush.msrb.mxu2 %v1856_v7  ;;  %v2053_v7 = vld [vmem:[#allocation23 + $0x198] sm:$0xff] }
0x1183   :  { %v1793_v30 = vmul.f32 %v2276_v43, %v1788_v27  ;;  %2112 = vmatpush.msra.mxu3 %v2047_v6  ;;  %v2024_v43 = vld [vmem:[#allocation23 + $0xb0] sm:$0xff]  ;;  %2098 = vmatpush.msra.mxu1 %v2025_v24  ;;  %v2009_v27 = vld [vmem:[#allocation23 + $0x38] sm:$0xff] }
0x1184   :  { %1931 = vmatpush.msrb.mxu2 %v1852_v46  ;;  %v2039_v46 = vld [vmem:[#allocation23 + $0x128] sm:$0xff] }
0x1185   :  { %v1798_v33 = vadd.f32 %v2277_v17, %v1793_v30  ;;  %2113 = vmatpush.msra.mxu3 %v2046_v12  ;;  %v2278_v30 = vld [vmem:[%s3344_s20] ss:$0 sm:$0xff]  ;;  %v2023_v17 = vld [vmem:[#allocation23 + $0xa8] sm:$0xff]  ;;  %2099 = vmatpush.msra.mxu1 %v2024_v43 }
0x1186   :  { %1932 = vmatpush.msrb.mxu2 %v1848_v49  ;;  %v2038_v49 = vld [vmem:[#allocation23 + $0x120] sm:$0xff] }
0x1187   :  { %v1800_v34 = vrot.slane %v1798_v33, 7  ;;  %2114 = vmatpush.msra.mxu3 %v2045_v16  ;;  %v2055_v33 = vld [vmem:[#allocation23 + $0x1a8] sm:$0xff]  ;;  %2100 = vmatpush.msra.mxu1 %v2023_v17  ;;  %v2279_v16 = vld [vmem:[#allocation24] ss:$0 sm:$0xff] }
0x1188   :  { %1933 = vmatpush.msrb.mxu2 %v1844_v54  ;;  %v2037_v54 = vld [vmem:[#allocation23 + $0x118] sm:$0xff] }
0x1189   :  { %v1802_v36 = vsel %vm434_vm0, %v1797_v13, %v1800_v34  ;;  %2115 = vmatpush.msra.mxu3 %v2044_v20  ;;  %v2008_v13 = vld [vmem:[#allocation23 + $0x30] sm:$0xff] }
0x118a   :  { %1839 = vmatmul.f32.vlgmr.msrb.gmra.mxu0 %v1802_v36  ;;  %2070 = vmatpush.msra.mxu2 %v2017_v61  ;;  %v2040_v34 = vld [vmem:[#allocation23 + $0x130] sm:$0xff]  ;;  %v2022_v36 = vld [vmem:[#allocation23 + $0xa0] sm:$0xff]  ;;  %v1913_v61 = vperm.slane %v1908_v22, 3 }
0x118b   :  { %2130 = vmatpush.msrb.mxu0 %v2065_v58  ;;  %2116 = vmatpush.msra.mxu3 %v2043_v23  ;;  %v2035_v58 = vld [vmem:[#allocation23 + $0x108] sm:$0xff] }
0x118c   :  { %2071 = vmatpush.msra.mxu2 %v2016_v63  ;;  %2101 = vmatpush.msra.mxu1 %v2022_v36 }
0x118d   :  { %2131 = vmatpush.msrb.mxu0 %v2064_v59  ;;  %2117 = vmatpush.msra.mxu3 %v2042_v56  ;;  %v2034_v59 = vld [vmem:[#allocation23 + $0x100] sm:$0xff] }
0x118e   :  { %2072 = vmatpush.msra.mxu2 %v2015_v5  ;;  %2102 = vmatpush.msra.mxu1 %v2021_v41  ;;  %v1910_v5 = vperm.slane %v1908_v22, 0 }
0x118f   :  { %2132 = vmatpush.msrb.mxu0 %v2063_v60  ;;  %2118 = vmatpush.msra.mxu3 %v2041_v29  ;;  %v1911_v60 = vperm.slane %v1908_v22, 1 }
0x1190   :  { %2073 = vmatpush.msra.mxu2 %v2014_v10  ;;  %2103 = vmatpush.msra.mxu1 %v2020_v45 }
0x1191   :  { %2133 = vmatpush.msrb.mxu0 %v2062_v44  ;;  %2119 = vmatpush.msra.mxu3 %v2040_v34 }
0x1192   :  { %2074 = vmatpush.msra.mxu2 %v2013_v15  ;;  %2104 = vmatpush.msra.mxu1 %v2019_v48 }
0x1193   :  { %2134 = vmatpush.msrb.mxu0 %v2061_v9  ;;  %2120 = vmatpush.msra.mxu3 %v2039_v46 }
0x1194   :  { %2075 = vmatpush.msra.mxu2 %v2012_v19  ;;  %2105 = vmatpush.msra.mxu1 %v2018_v52 }
0x1195   :  { %2135 = vmatpush.msrb.mxu0 %v2060_v14  ;;  %2121 = vmatpush.msra.mxu3 %v2038_v49 }
0x1196   :  { %2076 = vmatpush.msra.mxu2 %v2011_v21 }
0x1197   :  { %2136 = vmatpush.msrb.mxu0 %v2059_v35  ;;  %2122 = vmatpush.msra.mxu3 %v2037_v54 }
0x1198   :  { %2077 = vmatpush.msra.mxu2 %v2010_v32 }
0x1199   :  { %2137 = vmatpush.msrb.mxu0 %v2058_v1  ;;  %2123 = vmatpush.msra.mxu3 %v2036_v57 }
0x119a   :  { %2078 = vmatpush.msra.mxu2 %v2009_v27 }
0x119b   :  { %2138 = vmatpush.msrb.mxu0 %v2057_v25  ;;  %2124 = vmatpush.msra.mxu3 %v2035_v58 }
0x119c   :  { %2079 = vmatpush.msra.mxu2 %v2008_v13 }
0x119d   :  { %2139 = vmatpush.msrb.mxu0 %v2056_v0  ;;  %2125 = vmatpush.msra.mxu3 %v2034_v59 }
0x119e   :  { %2080 = vmatpush.msra.mxu2 %v2007_v26 }
0x119f   :  { %2140 = vmatpush.msrb.mxu0 %v2055_v33 }
0x11a0   :  { %2081 = vmatpush.msra.mxu2 %v2006_v31 }
0x11a1   :  { %2141 = vmatpush.msrb.mxu0 %v2054_v37 }
0x11a2   :  { %2082 = vmatpush.msra.mxu2 %v2005_v51 }
0x11a3   :  { %2142 = vmatpush.msrb.mxu0 %v2053_v7 }
0x11a4   :  { %2083 = vmatpush.msra.mxu2 %v2004_v28 }
0x11a5   :  { %2143 = vmatpush.msrb.mxu0 %v2052_v47 }
0x11a6   :  { %2084 = vmatpush.msra.mxu2 %v2003_v39 }
0x11a7   :  { %2144 = vmatpush.msrb.mxu0 %v2051_v50 }
0x11a8   :  { %2085 = vmatpush.msra.mxu2 %v2002_v53 }
0x11a9   :  { %2145 = vmatpush.msrb.mxu0 %v2050_v55 }
0x1207   :  { %v1840_v38 = vpop.f32.mrf.mxu0 }
0x1208   :  { %v1841_v40 = vadd.f32 %v2278_v30, %v1840_v38 }
0x120a   :  { %2342 = vtanh.f32 %v1841_v40 }
0x1210   :  { %v2343_v42 = vpop.eup %2342 }
0x1211   :  { %1934 = vmatmul.f32.vlgmr.msrb.gmra.mxu2 %v2343_v42  ;;  %1954 = vmatmul.f32.vlgmr.msrb.gmra.mxu1 %v2343_v42 }
0x1212   :  { %1974 = vmatmul.f32.vlgmr.msrb.gmra.mxu3 %v2343_v42  ;;  %1994 = vmatmul.f32.vlgmr.msra.gmra.mxu0 %v2343_v42 }
0x128e   :  { %v1955_v62 = vpop.f32.mrf.mxu1 }
0x128f   :  { %v1956_v63 = vadd.f32 %v1955_v62, %v1911_v60  ;;  %v1995_v2 = vpop.f32.mrf.mxu0 }
0x1290   :  { %v1996_v44 = vadd.f32 %v1995_v2, %v1913_v61 }
0x1291   :  { %v1999_v3 = vmax.f32 %v1956_v63, 0.0 }
0x1292   :  { %v2001_v6 = vmax.f32 %v1996_v44, 0.0 }
0x1293   :  { %2106 = vmatmul.f32.vlgmr.msra.gmra.mxu1 %v1999_v3 }
0x1294   :  { %2146 = vmatmul.f32.vlgmr.msrb.gmra.mxu0 %v2001_v6  ;;  %v1935_v9 = vpop.f32.mrf.mxu2 }
0x1295   :  { %v1936_v10 = vadd.f32 %v1935_v9, %v1910_v5  ;;  %v1975_v12 = vpop.f32.mrf.mxu3 }
0x1296   :  { %v1976_v11 = vadd.f32 %v1975_v12, %v1912_v8 }
0x1297   :  { %v1998_v14 = vmax.f32 %v1936_v10, 0.0 }
0x1298   :  { %v2000_v15 = vmax.f32 %v1976_v11, 0.0 }
0x1299   :  { %2086 = vmatmul.f32.vlgmr.msra.gmra.mxu2 %v1998_v14 }
0x129a   :  { %2126 = vmatmul.f32.vlgmr.msra.gmra.mxu3 %v2000_v15 }
0x1310   :  { %v2107_v19 = vpop.f32.mrf.mxu1 }
0x1311   :  { %v2147_v21 = vpop.f32.mrf.mxu0 }
0x131c   :  { %v2087_v18 = vpop.f32.mrf.mxu2 }
0x131d   :  { %v2088_v35 = vadd.f32 %v2279_v16, %v2087_v18  ;;  %v2127_v4 = vpop.f32.mrf.mxu3 }
0x131f   :  { %v2108_v20 = vadd.f32 %v2107_v19, %v2088_v35 }
0x1321   :  { %v2128_v1 = vadd.f32 %v2127_v4, %v2108_v20 }
0x1323   :  { %v2148_v23 = vadd.f32 %v2147_v21, %v2128_v1 }
0x1325   :  { %2344 = vtanh.f32 %v2148_v23 }
0x132b   :  { %v2345_v24 = vpop.eup %2344 }
0x132c   :  { %2151 = vst [vmem:[%s3349_s25] sm:$0x3] %v2345_v24 }
0x132d   :  { %2156 = vsyncpa [#allocation5], 1 }
0x132e   :  { %2157 = vsyncpa [#allocation7], 1 }
0x132f   :  { %2158 = vsyncpa [#allocation10], 1 }
0x1330   :  { %2159 = vsyncpa [#allocation13], 1 }
0x1331   :  { %2160 = vsyncpa [#allocation16], 1 }
0x1332   :  { %2161 = vsyncpa [#allocation19], 1 }
0x1333   :  { %2162 = vsyncpa [#allocation22], 1 }
0x1334   :  { %2163 = vsyncpa [#allocation25], 1 }

</bundles_post_ra>
